<compile_context>
chip_gen: v6e
topology: v6e:2x2x1
jax: 0.10.0
libtpu: 0.0.40
codegen_flags: <defaults>
</compile_context>

<pallas_src>
import functools

import jax
import jax.numpy as jnp
from jax.experimental import pallas as pl
from jax.experimental.pallas import tpu as pltpu

EPS = 1e-5
LANE = 128                      # channel padding (lane-dense, MXU-aligned)
TM_BASE = 256                   # row tile for the M-tiled kernels
VMEM_LIMIT = 32 * 1024 * 1024   # explicit scoped-VMEM budget (safe on v5e/v6e/v7x)


# -----------------------------------------------------------------------------
# Small helpers
# -----------------------------------------------------------------------------
def _round_up(x, m):
    return (x + m - 1) // m * m


def _pad_axis(x, axis, new_size):
    pad = new_size - x.shape[axis]
    if pad <= 0:
        return x
    cfg = [(0, 0)] * x.ndim
    cfg[axis] = (0, pad)
    return jnp.pad(x, cfg)


def _choose_tm(rows):
    tm = min(TM_BASE, _round_up(rows, 16))   # multiple of 16: good for f32 and bf16 tiles
    return tm, _round_up(rows, tm)


# -----------------------------------------------------------------------------
# Pass 1 (1x1 conv): M-tiled matmul + per-channel (sum, sumsq) reduction
# -----------------------------------------------------------------------------
def _matmul_stats_kernel(x_ref, w_ref, y_ref, stats_ref):
    i = pl.program_id(0)
    y = jnp.dot(x_ref[...], w_ref[...], preferred_element_type=jnp.float32)
    y_ref[...] = y

    @pl.when(i == 0)
    def _init():
        stats_ref[...] = jnp.zeros_like(stats_ref)

    stats_ref[...] += jnp.concatenate(
        [jnp.sum(y, axis=0, keepdims=True),
         jnp.sum(y * y, axis=0, keepdims=True)], axis=0)


def _run_matmul_stats(x2d, w2d):
    m, k = x2d.shape
    c = w2d.shape[1]
    tm, m_pad = _choose_tm(m)
    x2d = _pad_axis(x2d.astype(jnp.bfloat16), 0, m_pad)   # zero rows don't affect sums

    y, stats = pl.pallas_call(
        _matmul_stats_kernel,
        out_shape=(jax.ShapeDtypeStruct((m_pad, c), jnp.float32),
                   jax.ShapeDtypeStruct((2, c), jnp.float32)),
        grid=(m_pad // tm,),
        in_specs=[pl.BlockSpec((tm, k), lambda i: (i, 0)),   # activation: tiled over M
                  pl.BlockSpec((k, c), lambda i: (0, 0))],   # weight: resident in VMEM
        out_specs=(pl.BlockSpec((tm, c), lambda i: (i, 0)),
                   pl.BlockSpec((2, c), lambda i: (0, 0))),  # stats accumulator (resident)
        compiler_params=pltpu.CompilerParams(
            dimension_semantics=("arbitrary",),              # M is the stats reduction axis
            vmem_limit_bytes=VMEM_LIMIT),
        cost_estimate=pl.CostEstimate(
            flops=2 * m_pad * k * c, transcendentals=0,
            bytes_accessed=2 * m_pad * k + 2 * k * c + 4 * m_pad * c + 8 * c),
    )(x2d, w2d)
    return y, stats


# -----------------------------------------------------------------------------
# Pass 2: BatchNorm apply (+ residual) (+ ReLU), M-parallel
# -----------------------------------------------------------------------------
def _bn_apply_kernel(y_ref, stats_ref, gamma_ref, beta_ref, *rest,
                     inv_count, eps, relu, has_res):
    if has_res:
        res_ref, out_ref = rest
    else:
        (out_ref,) = rest
    st = stats_ref[...]
    mean = st[0:1, :] * inv_count
    var = jnp.maximum(st[1:2, :] * inv_count - mean * mean, 0.0)
    scale = gamma_ref[...] * jax.lax.rsqrt(var + eps)
    shift = beta_ref[...] - mean * scale
    y = y_ref[...] * scale + shift
    if has_res:
        y = y + res_ref[...].astype(jnp.float32)
    if relu:
        y = jnp.maximum(y, 0.0)
    out_ref[...] = y.astype(out_ref.dtype)


def _run_bn_apply(y, stats, gamma, beta, *, m_true, residual=None, relu=True,
                  out_dtype=jnp.bfloat16, eps=EPS):
    rows, c = y.shape
    tm, rows_pad = _choose_tm(rows)
    y = _pad_axis(y, 0, rows_pad)

    inputs = [y, stats, gamma, beta]
    in_specs = [pl.BlockSpec((tm, c), lambda i: (i, 0)),
                pl.BlockSpec((2, c), lambda i: (0, 0)),
                pl.BlockSpec((1, c), lambda i: (0, 0)),
                pl.BlockSpec((1, c), lambda i: (0, 0))]
    if residual is not None:
        inputs.append(_pad_axis(residual, 0, rows_pad))
        in_specs.append(pl.BlockSpec((tm, c), lambda i: (i, 0)))

    kernel = functools.partial(
        _bn_apply_kernel, inv_count=1.0 / float(m_true), eps=eps, relu=relu,
        has_res=residual is not None)

    out = pl.pallas_call(
        kernel,
        out_shape=jax.ShapeDtypeStruct((rows_pad, c), out_dtype),
        grid=(rows_pad // tm,),
        in_specs=in_specs,
        out_specs=pl.BlockSpec((tm, c), lambda i: (i, 0)),
        compiler_params=pltpu.CompilerParams(
            dimension_semantics=("parallel",),               # independent M tiles
            vmem_limit_bytes=VMEM_LIMIT),
    )(*inputs)
    return out[:m_true] if rows_pad != m_true else out


def fused_conv1x1_bn(x2d, w2d, gamma, beta, *, residual=None, relu=True,
                     out_dtype=jnp.bfloat16):
    y, stats = _run_matmul_stats(x2d, w2d)
    return _run_bn_apply(y, stats, gamma, beta, m_true=x2d.shape[0],
                         residual=residual, relu=relu, out_dtype=out_dtype)


# -----------------------------------------------------------------------------
# 3x3 conv pass 1: polyphase, im2col-free, one image resident per grid step
# -----------------------------------------------------------------------------
def _make_conv3x3_stats_kernel(num_phases, taps, ho, wo, cin_p, cout_p):
    def kernel(*refs):
        phase_refs = refs[:num_phases]
        w_ref = refs[num_phases]
        y_ref = refs[num_phases + 1]
        stats_ref = refs[num_phases + 2]
        n = pl.program_id(0)

        acc = jnp.zeros((ho * wo, cout_p), jnp.float32)
        for k, (p_idx, oy, ox) in enumerate(taps):            # 9 taps, fully unrolled
            patch = phase_refs[p_idx][0, oy:oy + ho, ox:ox + wo, :]
            acc = acc + jnp.dot(patch.reshape(ho * wo, cin_p), w_ref[k],
                                preferred_element_type=jnp.float32)
        y_ref[0] = acc

        @pl.when(n == 0)
        def _init():
            stats_ref[...] = jnp.zeros_like(stats_ref)

        stats_ref[...] += jnp.concatenate(
            [jnp.sum(acc, axis=0, keepdims=True),
             jnp.sum(acc * acc, axis=0, keepdims=True)], axis=0)
    return kernel


def _conv3x3_phases(x_nhwc, stride, ho, wo):
    """Polyphase split of the zero-padded 3x3 input: stride**2 arrays of shape
    (N, ho+2, wo+2, C).  Tap (dy, dx) reads phase (dy%s, dx%s) at static offset
    (dy//s, dx//s).  Total HBM volume ~1x the input (vs 9x for im2col)."""
    xp = jnp.pad(x_nhwc, ((0, 0), (1, 1), (1, 1), (0, 0)))
    phases = []
    for py in range(stride):
        for px in range(stride):
            sub = xp[:, py::stride, px::stride, :][:, :ho + 2, :wo + 2, :]
            sub = jnp.pad(sub, ((0, 0), (0, ho + 2 - sub.shape[1]),
                                (0, wo + 2 - sub.shape[2]), (0, 0)))
            phases.append(sub)
    return phases


def conv3x3_stats(x_nhwc, w9, stride):
    n, h, w, cin_p = x_nhwc.shape
    cout_p = w9.shape[2]
    ho = (h - 1) // stride + 1
    wo = (w - 1) // stride + 1

    phases = _conv3x3_phases(x_nhwc, stride, ho, wo)
    nph = len(phases)
    taps = [((dy % stride) * stride + (dx % stride), dy // stride, dx // stride)
            for dy in range(3) for dx in range(3)]
    kernel = _make_conv3x3_stats_kernel(nph, taps, ho, wo, cin_p, cout_p)

    phase_spec = pl.BlockSpec((1, ho + 2, wo + 2, cin_p), lambda b: (b, 0, 0, 0))
    y, stats = pl.pallas_call(
        kernel,
        out_shape=(jax.ShapeDtypeStruct((n, ho * wo, cout_p), jnp.float32),
                   jax.ShapeDtypeStruct((2, cout_p), jnp.float32)),
        grid=(n,),
        in_specs=[phase_spec] * nph
                 + [pl.BlockSpec((9, cin_p, cout_p), lambda b: (0, 0, 0))],
        out_specs=(pl.BlockSpec((1, ho * wo, cout_p), lambda b: (b, 0, 0)),
                   pl.BlockSpec((2, cout_p), lambda b: (0, 0))),
        compiler_params=pltpu.CompilerParams(
            dimension_semantics=("arbitrary",),               # stats reduce across the batch
            vmem_limit_bytes=VMEM_LIMIT),
        cost_estimate=pl.CostEstimate(
            flops=2 * 9 * n * ho * wo * cin_p * cout_p, transcendentals=0,
            bytes_accessed=(2 * nph * n * (ho + 2) * (wo + 2) * cin_p
                            + 2 * 9 * cin_p * cout_p
                            + 4 * n * ho * wo * cout_p + 8 * cout_p)),
    )(*phases, w9)
    return y.reshape(n * ho * wo, cout_p), stats, (ho, wo)


# -----------------------------------------------------------------------------
# Parameter preparation (channel pad to 128 lanes, bf16 weights, done once)
# -----------------------------------------------------------------------------
def _prep_w1x1(w, k_pad, c_pad):               # torch (Co, Ci, 1, 1) -> (k_pad, c_pad) bf16
    w2 = jnp.transpose(w[:, :, 0, 0], (1, 0))
    return _pad_axis(_pad_axis(w2, 0, k_pad), 1, c_pad).astype(jnp.bfloat16)


def _prep_w3x3(w, k_pad, c_pad):               # torch (Co, Ci, 3, 3) -> (9, k_pad, c_pad) bf16
    cout, cin = w.shape[0], w.shape[1]
    w9 = jnp.transpose(w, (2, 3, 1, 0)).reshape(9, cin, cout)   # tap order (dy, dx)
    return _pad_axis(_pad_axis(w9, 1, k_pad), 2, c_pad).astype(jnp.bfloat16)


def _prep_bn(g, b, c_pad):
    return (_pad_axis(g.reshape(1, -1).astype(jnp.float32), 1, c_pad),
            _pad_axis(b.reshape(1, -1).astype(jnp.float32), 1, c_pad))


# -----------------------------------------------------------------------------
# Bottleneck forward
# -----------------------------------------------------------------------------
def bottleneck_forward_nhwc(x, params, *, stride, upsample):
    n, h, w, cin = x.shape
    channels = params["conv1_w"].shape[0]
    out_ch = 4 * channels
    cin_p = _round_up(cin, LANE)
    cmid_p = _round_up(channels, LANE)
    cout_p = _round_up(out_ch, LANE)

    w1 = _prep_w1x1(params["conv1_w"], cin_p, cmid_p)
    w2 = _prep_w3x3(params["conv2_w"], cmid_p, cmid_p)
    w3 = _prep_w1x1(params["conv3_w"], cmid_p, cout_p)
    g1, b1 = _prep_bn(params["bn1_g"], params["bn1_b"], cmid_p)
    g2, b2 = _prep_bn(params["bn2_g"], params["bn2_b"], cmid_p)
    g3, b3 = _prep_bn(params["bn3_g"], params["bn3_b"], cout_p)

    xb = _pad_axis(x, 3, cin_p).astype(jnp.bfloat16)           # (N,H,W,cin_p) bf16

    # conv1 (1x1, no bias) -> bn1 -> relu
    a1 = fused_conv1x1_bn(xb.reshape(n * h * w, cin_p), w1, g1, b1,
                          relu=True, out_dtype=jnp.bfloat16)
    a1 = a1.reshape(n, h, w, cmid_p)

    # conv2 (3x3, stride, pad=1) -> bn2 -> relu.
    # conv2's bias is mathematically cancelled by the BatchNorm mean subtraction,
    # so it is intentionally not applied (saves a VPU pass + a DMA).
    y2, stats2, (ho, wo) = conv3x3_stats(a1, w2, stride)
    a2 = _run_bn_apply(y2, stats2, g2, b2, m_true=n * ho * wo,
                       relu=True, out_dtype=jnp.bfloat16)

    # residual branch
    if upsample:
        wup = _prep_w1x1(params["up_conv_w"], cin_p, cout_p)
        gup, bup = _prep_bn(params["up_bn_g"], params["up_bn_b"], cout_p)
        xs = xb[:, ::stride, ::stride, :]                      # 1x1 conv stride == subsample
        res = fused_conv1x1_bn(xs.reshape(n * ho * wo, cin_p), wup, gup, bup,
                               relu=False, out_dtype=jnp.float32)
    else:
        assert cin == out_ch and stride == 1
        res = _pad_axis(x.astype(jnp.float32), 3, cout_p).reshape(n * h * w, cout_p)

    # conv3 (1x1, no bias) -> bn3 -> (+ residual) -> relu   (residual fused in pass 2)
    out = fused_conv1x1_bn(a2, w3, g3, b3, residual=res, relu=True,
                           out_dtype=jnp.float32)
    return out.reshape(n, ho, wo, cout_p)[..., :out_ch]


def bottleneck_forward(x_nchw, params, *, stride, upsample):
    """NCHW adapter around the NHWC core (matches the PyTorch module interface)."""
    x = jnp.transpose(x_nchw, (0, 2, 3, 1))
    out = bottleneck_forward_nhwc(x, params, stride=stride, upsample=upsample)
    return jnp.transpose(out, (0, 3, 1, 2))


# -----------------------------------------------------------------------------
# Pure-JAX reference (NCHW, mirrors the PyTorch ops; bf16 MXU operands emulated)
# -----------------------------------------------------------------------------
def reference_forward(x, params, *, stride, upsample):
    def conv(x, w, s=1, p=0, bias=None):
        y = jax.lax.conv_general_dilated(
            x.astype(jnp.bfloat16), w.astype(jnp.bfloat16), (s, s),
            [(p, p), (p, p)], dimension_numbers=("NCHW", "OIHW", "NCHW"),
            preferred_element_type=jnp.float32)
        if bias is not None:
            y = y + bias.reshape(1, -1, 1, 1)
        return y

    def bn(x, g, b):
        mean = jnp.mean(x, axis=(0, 2, 3), keepdims=True)
        var = jnp.mean((x - mean) ** 2, axis=(0, 2, 3), keepdims=True)
        return ((x - mean) * jax.lax.rsqrt(var + EPS)
                * g.reshape(1, -1, 1, 1) + b.reshape(1, -1, 1, 1))

    residual = x.astype(jnp.float32)
    out = jax.nn.relu(bn(conv(x, params["conv1_w"]), params["bn1_g"], params["bn1_b"]))
    out = jax.nn.relu(bn(conv(out, params["conv2_w"], s=stride, p=1,
                              bias=params["conv2_bias"]),
                         params["bn2_g"], params["bn2_b"]))
    out = bn(conv(out, params["conv3_w"]), params["bn3_g"], params["bn3_b"])
    if upsample:
        residual = bn(conv(x, params["up_conv_w"], s=stride),
                      params["up_bn_g"], params["up_bn_b"])
    return jax.nn.relu(out + residual)


# -----------------------------------------------------------------------------
def init_params(key, in_channels, channels):
    ks = jax.random.split(key, 12)
    out_ch = 4 * channels
    return {
        "conv1_w": 0.2 * jax.random.normal(ks[0], (channels, in_channels, 1, 1), jnp.float32),
        "bn1_g": 1.0 + 0.1 * jax.random.normal(ks[1], (channels,), jnp.float32),
        "bn1_b": 0.1 * jax.random.normal(ks[2], (channels,), jnp.float32),
        "conv2_w": 0.2 * jax.random.normal(ks[3], (channels, channels, 3, 3), jnp.float32),
        "conv2_bias": 0.1 * jax.random.normal(ks[4], (channels,), jnp.float32),
        "bn2_g": 1.0 + 0.1 * jax.random.normal(ks[5], (channels,), jnp.float32),
        "bn2_b": 0.1 * jax.random.normal(ks[6], (channels,), jnp.float32),
        "conv3_w": 0.2 * jax.random.normal(ks[7], (out_ch, channels, 1, 1), jnp.float32),
        "bn3_g": 1.0 + 0.1 * jax.random.normal(ks[8], (out_ch,), jnp.float32),
        "bn3_b": 0.1 * jax.random.normal(ks[9], (out_ch,), jnp.float32),
        "up_conv_w": 0.2 * jax.random.normal(ks[10], (out_ch, in_channels, 1, 1), jnp.float32),
        "up_bn_g": jnp.ones((out_ch,), jnp.float32),
        "up_bn_b": jnp.zeros((out_ch,), jnp.float32),
    }


if __name__ == "__main__":
    key = jax.random.PRNGKey(0)
    k_x, k_p = jax.random.split(key)

    # Bottleneck(in_channels=4, channels=4, stride=2, upsample=True)
    in_channels, channels, stride, upsample = 4, 4, 2, True
    x = jax.random.normal(k_x, (2, in_channels, 16, 16), jnp.float32)  # NCHW
    params = init_params(k_p, in_channels, channels)

    fwd = jax.jit(functools.partial(bottleneck_forward, stride=stride, upsample=upsample))
    out = jax.block_until_ready(fwd(x, params))

    ref = reference_forward(x, params, stride=stride, upsample=upsample)
    assert out.shape == (2, 4 * channels, 8, 8), out.shape
    max_err = float(jnp.max(jnp.abs(out - ref)))
    assert jnp.allclose(out, ref, atol=2e-2, rtol=2e-2), max_err

    print("KERNEL_OK")
</pallas_src>

<mosaic_0001>
module attributes {stable_mosaic.version = 11 : i64} {
  func.func @_matmul_stats_kernel(%arg0: i32, %arg1: memref<256x128xbf16, #tpu.memory_space<vmem>>, %arg2: memref<128x128xbf16, #tpu.memory_space<vmem>>, %arg3: memref<256x128xf32, #tpu.memory_space<vmem>>, %arg4: memref<2x128xf32, #tpu.memory_space<vmem>>) attributes {dimension_semantics = [#tpu.dimension_semantics<arbitrary>], iteration_bounds = array<i64: 2>, scalar_prefetch = 0 : i64, scratch_operands = 0 : i64, tpu.core_type = #tpu.core_type<tc>, window_params = [{transform_indices = @transform_0, window_bounds = array<i64: 256, 128>}, {pipeline_mode = #tpu.pipeline_mode<synchronous>, transform_indices = @transform_1, window_bounds = array<i64: 128, 128>}, {transform_indices = @transform_2, window_bounds = array<i64: 256, 128>}, {pipeline_mode = #tpu.pipeline_mode<synchronous>, transform_indices = @transform_3, window_bounds = array<i64: 2, 128>}]} {
    %c0 = arith.constant 0 : index
    %c0_0 = arith.constant 0 : index
    %0 = vector.load %arg1[%c0, %c0_0] : memref<256x128xbf16, #tpu.memory_space<vmem>>, vector<256x128xbf16>
    %c0_1 = arith.constant 0 : index
    %c0_2 = arith.constant 0 : index
    %1 = vector.load %arg2[%c0_1, %c0_2] : memref<128x128xbf16, #tpu.memory_space<vmem>>, vector<128x128xbf16>
    %cst = arith.constant dense<0.000000e+00> : vector<256x128xf32>
    %2 = tpu.matmul %0, %1, %cst {dimension_numbers = #tpu.dot_dimension_numbers<[1], [0], [0], [1], [0, 0, 1, 1], [], []>} : vector<256x128xbf16>, vector<128x128xbf16>, vector<256x128xf32> -> vector<256x128xf32>
    %c0_3 = arith.constant 0 : index
    %c0_4 = arith.constant 0 : index
    %3 = vector.load %arg3[%c0_3, %c0_4] : memref<256x128xf32, #tpu.memory_space<vmem>>, vector<256x128xf32>
    tpu.vector_store %arg3[%c0_3, %c0_4], %2 {strides = array<i32>} : memref<256x128xf32, #tpu.memory_space<vmem>>, vector<256x128xf32>,
    %c0_i32 = arith.constant 0 : i32
    %4 = arith.cmpi eq, %arg0, %c0_i32 : i32
    %5 = arith.extui %4 : i1 to i32
    %c0_i32_5 = arith.constant 0 : i32
    %6 = arith.cmpi ne, %5, %c0_i32_5 : i32
    scf.if %6 {
      %cst_12 = arith.constant 0.000000e+00 : f32
      %16 = vector.broadcast %cst_12 : f32 to vector<2x128xf32>
      %c0_13 = arith.constant 0 : index
      %c0_14 = arith.constant 0 : index
      %17 = vector.load %arg4[%c0_13, %c0_14] : memref<2x128xf32, #tpu.memory_space<vmem>>, vector<2x128xf32>
      tpu.vector_store %arg4[%c0_13, %c0_14], %16 {strides = array<i32>} : memref<2x128xf32, #tpu.memory_space<vmem>>, vector<2x128xf32>,
    } else {
    }
    %c0_6 = arith.constant 0 : index
    %c0_7 = arith.constant 0 : index
    %7 = vector.load %arg4[%c0_6, %c0_7] : memref<2x128xf32, #tpu.memory_space<vmem>>, vector<2x128xf32>
    %cst_8 = arith.constant dense<0.000000e+00> : vector<128xf32>
    %8 = vector.multi_reduction <add>, %2, %cst_8 [0] : vector<256x128xf32> to vector<128xf32>
    %9 = vector.shape_cast %8 : vector<128xf32> to vector<1x128xf32>
    %10 = arith.mulf %2, %2 : vector<256x128xf32>
    %cst_9 = arith.constant dense<0.000000e+00> : vector<128xf32>
    %11 = vector.multi_reduction <add>, %10, %cst_9 [0] : vector<256x128xf32> to vector<128xf32>
    %12 = vector.shape_cast %11 : vector<128xf32> to vector<1x128xf32>
    %13 = tpu.concatenate %9, %12 in 0 : vector<1x128xf32>, vector<1x128xf32> -> vector<2x128xf32>
    %14 = arith.addf %7, %13 : vector<2x128xf32>
    %c0_10 = arith.constant 0 : index
    %c0_11 = arith.constant 0 : index
    %15 = vector.load %arg4[%c0_10, %c0_11] : memref<2x128xf32, #tpu.memory_space<vmem>>, vector<2x128xf32>
    tpu.vector_store %arg4[%c0_10, %c0_11], %14 {strides = array<i32>} : memref<2x128xf32, #tpu.memory_space<vmem>>, vector<2x128xf32>,
    return
  }
  func.func @transform_0(%arg0: i32) -> (i32, i32) {
    %c0_i32 = arith.constant 0 : i32
    %c0_i32_0 = arith.constant 0 : i32
    return %arg0, %c0_i32 : i32, i32
  }
  func.func @transform_1(%arg0: i32) -> (i32, i32) {
    %c0_i32 = arith.constant 0 : i32
    %c0_i32_0 = arith.constant 0 : i32
    %c0_i32_1 = arith.constant 0 : i32
    return %c0_i32, %c0_i32_0 : i32, i32
  }
  func.func @transform_2(%arg0: i32) -> (i32, i32) {
    %c0_i32 = arith.constant 0 : i32
    %c0_i32_0 = arith.constant 0 : i32
    return %arg0, %c0_i32 : i32, i32
  }
  func.func @transform_3(%arg0: i32) -> (i32, i32) {
    %c0_i32 = arith.constant 0 : i32
    %c0_i32_0 = arith.constant 0 : i32
    %c0_i32_1 = arith.constant 0 : i32
    return %c0_i32, %c0_i32_0 : i32, i32
  }
}

module attributes {stable_mosaic.version = 11 : i64} {
  func.func @_bn_apply_kernel(%arg0: i32, %arg1: memref<256x128xf32, #tpu.memory_space<vmem>>, %arg2: memref<2x128xf32, #tpu.memory_space<vmem>>, %arg3: memref<1x128xf32, #tpu.memory_space<vmem>>, %arg4: memref<1x128xf32, #tpu.memory_space<vmem>>, %arg5: memref<256x128xbf16, #tpu.memory_space<vmem>>) attributes {dimension_semantics = [#tpu.dimension_semantics<parallel>], iteration_bounds = array<i64: 2>, scalar_prefetch = 0 : i64, scratch_operands = 0 : i64, tpu.core_type = #tpu.core_type<tc>, window_params = [{transform_indices = @transform_0, window_bounds = array<i64: 256, 128>}, {pipeline_mode = #tpu.pipeline_mode<synchronous>, transform_indices = @transform_1, window_bounds = array<i64: 2, 128>}, {pipeline_mode = #tpu.pipeline_mode<synchronous>, transform_indices = @transform_2, window_bounds = array<i64: 1, 128>}, {pipeline_mode = #tpu.pipeline_mode<synchronous>, transform_indices = @transform_3, window_bounds = array<i64: 1, 128>}, {transform_indices = @transform_4, window_bounds = array<i64: 256, 128>}]} {
    %c0 = arith.constant 0 : index
    %c0_0 = arith.constant 0 : index
    %0 = vector.load %arg2[%c0, %c0_0] : memref<2x128xf32, #tpu.memory_space<vmem>>, vector<2x128xf32>
    %1 = vector.extract_strided_slice %0 {offsets = [0, 0], sizes = [1, 128], strides = [1, 1]} : vector<2x128xf32> to vector<1x128xf32>
    %cst = arith.constant 0.001953125 : f32
    %2 = vector.broadcast %cst : f32 to vector<1x128xf32>
    %3 = arith.mulf %1, %2 : vector<1x128xf32>
    %4 = vector.extract_strided_slice %0 {offsets = [1, 0], sizes = [1, 128], strides = [1, 1]} : vector<2x128xf32> to vector<1x128xf32>
    %cst_1 = arith.constant 0.001953125 : f32
    %5 = vector.broadcast %cst_1 : f32 to vector<1x128xf32>
    %6 = arith.mulf %4, %5 : vector<1x128xf32>
    %7 = arith.mulf %3, %3 : vector<1x128xf32>
    %8 = arith.subf %6, %7 : vector<1x128xf32>
    %cst_2 = arith.constant 0.000000e+00 : f32
    %9 = vector.broadcast %cst_2 : f32 to vector<1x128xf32>
    %10 = arith.maximumf %8, %9 : vector<1x128xf32>
    %c0_3 = arith.constant 0 : index
    %c0_4 = arith.constant 0 : index
    %11 = vector.load %arg3[%c0_3, %c0_4] : memref<1x128xf32, #tpu.memory_space<vmem>>, vector<1x128xf32>
    %cst_5 = arith.constant 9.99999974E-6 : f32
    %12 = vector.broadcast %cst_5 : f32 to vector<1x128xf32>
    %13 = arith.addf %10, %12 : vector<1x128xf32>
    %14 = math.rsqrt %13 : vector<1x128xf32>
    %15 = arith.mulf %11, %14 : vector<1x128xf32>
    %c0_6 = arith.constant 0 : index
    %c0_7 = arith.constant 0 : index
    %16 = vector.load %arg4[%c0_6, %c0_7] : memref<1x128xf32, #tpu.memory_space<vmem>>, vector<1x128xf32>
    %17 = arith.mulf %3, %15 : vector<1x128xf32>
    %18 = arith.subf %16, %17 : vector<1x128xf32>
    %c0_8 = arith.constant 0 : index
    %c0_9 = arith.constant 0 : index
    %19 = vector.load %arg1[%c0_8, %c0_9] : memref<256x128xf32, #tpu.memory_space<vmem>>, vector<256x128xf32>
    %20 = vector.broadcast %15 : vector<1x128xf32> to vector<256x128xf32>
    %21 = arith.mulf %19, %20 : vector<256x128xf32>
    %22 = vector.broadcast %18 : vector<1x128xf32> to vector<256x128xf32>
    %23 = arith.addf %21, %22 : vector<256x128xf32>
    %cst_10 = arith.constant 0.000000e+00 : f32
    %24 = vector.broadcast %cst_10 : f32 to vector<256x128xf32>
    %25 = arith.maximumf %23, %24 : vector<256x128xf32>
    %26 = arith.truncf %25 : vector<256x128xf32> to vector<256x128xbf16>
    %c0_11 = arith.constant 0 : index
    %c0_12 = arith.constant 0 : index
    %27 = vector.load %arg5[%c0_11, %c0_12] : memref<256x128xbf16, #tpu.memory_space<vmem>>, vector<256x128xbf16>
    tpu.vector_store %arg5[%c0_11, %c0_12], %26 {strides = array<i32>} : memref<256x128xbf16, #tpu.memory_space<vmem>>, vector<256x128xbf16>,
    return
  }
  func.func @transform_0(%arg0: i32) -> (i32, i32) {
    %c0_i32 = arith.constant 0 : i32
    %c0_i32_0 = arith.constant 0 : i32
    return %arg0, %c0_i32 : i32, i32
  }
  func.func @transform_1(%arg0: i32) -> (i32, i32) {
    %c0_i32 = arith.constant 0 : i32
    %c0_i32_0 = arith.constant 0 : i32
    %c0_i32_1 = arith.constant 0 : i32
    return %c0_i32, %c0_i32_0 : i32, i32
  }
  func.func @transform_2(%arg0: i32) -> (i32, i32) {
    %c0_i32 = arith.constant 0 : i32
    %c0_i32_0 = arith.constant 0 : i32
    %c0_i32_1 = arith.constant 0 : i32
    return %c0_i32, %c0_i32_0 : i32, i32
  }
  func.func @transform_3(%arg0: i32) -> (i32, i32) {
    %c0_i32 = arith.constant 0 : i32
    %c0_i32_0 = arith.constant 0 : i32
    %c0_i32_1 = arith.constant 0 : i32
    return %c0_i32, %c0_i32_0 : i32, i32
  }
  func.func @transform_4(%arg0: i32) -> (i32, i32) {
    %c0_i32 = arith.constant 0 : i32
    %c0_i32_0 = arith.constant 0 : i32
    return %arg0, %c0_i32 : i32, i32
  }
}

module attributes {stable_mosaic.version = 11 : i64} {
  func.func @_bn_apply_kernel(%arg0: i32, %arg1: memref<128x128xf32, #tpu.memory_space<vmem>>, %arg2: memref<2x128xf32, #tpu.memory_space<vmem>>, %arg3: memref<1x128xf32, #tpu.memory_space<vmem>>, %arg4: memref<1x128xf32, #tpu.memory_space<vmem>>, %arg5: memref<128x128xbf16, #tpu.memory_space<vmem>>) attributes {dimension_semantics = [#tpu.dimension_semantics<parallel>], iteration_bounds = array<i64: 1>, scalar_prefetch = 0 : i64, scratch_operands = 0 : i64, tpu.core_type = #tpu.core_type<tc>, window_params = [{transform_indices = @transform_0, window_bounds = array<i64: 128, 128>}, {pipeline_mode = #tpu.pipeline_mode<synchronous>, transform_indices = @transform_1, window_bounds = array<i64: 2, 128>}, {pipeline_mode = #tpu.pipeline_mode<synchronous>, transform_indices = @transform_2, window_bounds = array<i64: 1, 128>}, {pipeline_mode = #tpu.pipeline_mode<synchronous>, transform_indices = @transform_3, window_bounds = array<i64: 1, 128>}, {transform_indices = @transform_4, window_bounds = array<i64: 128, 128>}]} {
    %c0 = arith.constant 0 : index
    %c0_0 = arith.constant 0 : index
    %0 = vector.load %arg2[%c0, %c0_0] : memref<2x128xf32, #tpu.memory_space<vmem>>, vector<2x128xf32>
    %1 = vector.extract_strided_slice %0 {offsets = [0, 0], sizes = [1, 128], strides = [1, 1]} : vector<2x128xf32> to vector<1x128xf32>
    %cst = arith.constant 7.812500e-03 : f32
    %2 = vector.broadcast %cst : f32 to vector<1x128xf32>
    %3 = arith.mulf %1, %2 : vector<1x128xf32>
    %4 = vector.extract_strided_slice %0 {offsets = [1, 0], sizes = [1, 128], strides = [1, 1]} : vector<2x128xf32> to vector<1x128xf32>
    %cst_1 = arith.constant 7.812500e-03 : f32
    %5 = vector.broadcast %cst_1 : f32 to vector<1x128xf32>
    %6 = arith.mulf %4, %5 : vector<1x128xf32>
    %7 = arith.mulf %3, %3 : vector<1x128xf32>
    %8 = arith.subf %6, %7 : vector<1x128xf32>
    %cst_2 = arith.constant 0.000000e+00 : f32
    %9 = vector.broadcast %cst_2 : f32 to vector<1x128xf32>
    %10 = arith.maximumf %8, %9 : vector<1x128xf32>
    %c0_3 = arith.constant 0 : index
    %c0_4 = arith.constant 0 : index
    %11 = vector.load %arg3[%c0_3, %c0_4] : memref<1x128xf32, #tpu.memory_space<vmem>>, vector<1x128xf32>
    %cst_5 = arith.constant 9.99999974E-6 : f32
    %12 = vector.broadcast %cst_5 : f32 to vector<1x128xf32>
    %13 = arith.addf %10, %12 : vector<1x128xf32>
    %14 = math.rsqrt %13 : vector<1x128xf32>
    %15 = arith.mulf %11, %14 : vector<1x128xf32>
    %c0_6 = arith.constant 0 : index
    %c0_7 = arith.constant 0 : index
    %16 = vector.load %arg4[%c0_6, %c0_7] : memref<1x128xf32, #tpu.memory_space<vmem>>, vector<1x128xf32>
    %17 = arith.mulf %3, %15 : vector<1x128xf32>
    %18 = arith.subf %16, %17 : vector<1x128xf32>
    %c0_8 = arith.constant 0 : index
    %c0_9 = arith.constant 0 : index
    %19 = vector.load %arg1[%c0_8, %c0_9] : memref<128x128xf32, #tpu.memory_space<vmem>>, vector<128x128xf32>
    %20 = vector.broadcast %15 : vector<1x128xf32> to vector<128x128xf32>
    %21 = arith.mulf %19, %20 : vector<128x128xf32>
    %22 = vector.broadcast %18 : vector<1x128xf32> to vector<128x128xf32>
    %23 = arith.addf %21, %22 : vector<128x128xf32>
    %cst_10 = arith.constant 0.000000e+00 : f32
    %24 = vector.broadcast %cst_10 : f32 to vector<128x128xf32>
    %25 = arith.maximumf %23, %24 : vector<128x128xf32>
    %26 = arith.truncf %25 : vector<128x128xf32> to vector<128x128xbf16>
    %c0_11 = arith.constant 0 : index
    %c0_12 = arith.constant 0 : index
    %27 = vector.load %arg5[%c0_11, %c0_12] : memref<128x128xbf16, #tpu.memory_space<vmem>>, vector<128x128xbf16>
    tpu.vector_store %arg5[%c0_11, %c0_12], %26 {strides = array<i32>} : memref<128x128xbf16, #tpu.memory_space<vmem>>, vector<128x128xbf16>,
    return
  }
  func.func @transform_0(%arg0: i32) -> (i32, i32) {
    %c0_i32 = arith.constant 0 : i32
    %c0_i32_0 = arith.constant 0 : i32
    return %arg0, %c0_i32 : i32, i32
  }
  func.func @transform_1(%arg0: i32) -> (i32, i32) {
    %c0_i32 = arith.constant 0 : i32
    %c0_i32_0 = arith.constant 0 : i32
    %c0_i32_1 = arith.constant 0 : i32
    return %c0_i32, %c0_i32_0 : i32, i32
  }
  func.func @transform_2(%arg0: i32) -> (i32, i32) {
    %c0_i32 = arith.constant 0 : i32
    %c0_i32_0 = arith.constant 0 : i32
    %c0_i32_1 = arith.constant 0 : i32
    return %c0_i32, %c0_i32_0 : i32, i32
  }
  func.func @transform_3(%arg0: i32) -> (i32, i32) {
    %c0_i32 = arith.constant 0 : i32
    %c0_i32_0 = arith.constant 0 : i32
    %c0_i32_1 = arith.constant 0 : i32
    return %c0_i32, %c0_i32_0 : i32, i32
  }
  func.func @transform_4(%arg0: i32) -> (i32, i32) {
    %c0_i32 = arith.constant 0 : i32
    %c0_i32_0 = arith.constant 0 : i32
    return %arg0, %c0_i32 : i32, i32
  }
}

module attributes {stable_mosaic.version = 11 : i64} {
  func.func @kernel(%arg0: i32, %arg1: memref<1x10x10x128xbf16, #tpu.memory_space<vmem>>, %arg2: memref<1x10x10x128xbf16, #tpu.memory_space<vmem>>, %arg3: memref<1x10x10x128xbf16, #tpu.memory_space<vmem>>, %arg4: memref<1x10x10x128xbf16, #tpu.memory_space<vmem>>, %arg5: memref<9x128x128xbf16, #tpu.memory_space<vmem>>, %arg6: memref<1x64x128xf32, #tpu.memory_space<vmem>>, %arg7: memref<2x128xf32, #tpu.memory_space<vmem>>) attributes {dimension_semantics = [#tpu.dimension_semantics<arbitrary>], iteration_bounds = array<i64: 2>, scalar_prefetch = 0 : i64, scratch_operands = 0 : i64, tpu.core_type = #tpu.core_type<tc>, window_params = [{transform_indices = @transform_0, window_bounds = array<i64: 1, 10, 10, 128>}, {transform_indices = @transform_1, window_bounds = array<i64: 1, 10, 10, 128>}, {transform_indices = @transform_2, window_bounds = array<i64: 1, 10, 10, 128>}, {transform_indices = @transform_3, window_bounds = array<i64: 1, 10, 10, 128>}, {pipeline_mode = #tpu.pipeline_mode<synchronous>, transform_indices = @transform_4, window_bounds = array<i64: 9, 128, 128>}, {transform_indices = @transform_5, window_bounds = array<i64: 1, 64, 128>}, {pipeline_mode = #tpu.pipeline_mode<synchronous>, transform_indices = @transform_6, window_bounds = array<i64: 2, 128>}]} {
    %cst = arith.constant 0.000000e+00 : f32
    %0 = vector.broadcast %cst : f32 to vector<64x128xf32>
    %c0 = arith.constant 0 : index
    %c0_0 = arith.constant 0 : index
    %c0_1 = arith.constant 0 : index
    %c0_2 = arith.constant 0 : index
    %1 = vector.load %arg1[%c0, %c0_0, %c0_1, %c0_2] : memref<1x10x10x128xbf16, #tpu.memory_space<vmem>>, vector<1x8x8x128xbf16>
    %2 = vector.shape_cast %1 : vector<1x8x8x128xbf16> to vector<8x8x128xbf16>
    %3 = vector.shape_cast %2 : vector<8x8x128xbf16> to vector<64x128xbf16>
    %c0_3 = arith.constant 0 : index
    %c0_4 = arith.constant 0 : index
    %c0_5 = arith.constant 0 : index
    %4 = vector.load %arg5[%c0_3, %c0_4, %c0_5] : memref<9x128x128xbf16, #tpu.memory_space<vmem>>, vector<1x128x128xbf16>
    %5 = vector.shape_cast %4 : vector<1x128x128xbf16> to vector<128x128xbf16>
    %cst_6 = arith.constant dense<0.000000e+00> : vector<64x128xf32>
    %6 = tpu.matmul %3, %5, %cst_6 {dimension_numbers = #tpu.dot_dimension_numbers<[1], [0], [0], [1], [0, 0, 1, 1], [], []>} : vector<64x128xbf16>, vector<128x128xbf16>, vector<64x128xf32> -> vector<64x128xf32>
    %7 = arith.addf %0, %6 : vector<64x128xf32>
    %c0_7 = arith.constant 0 : index
    %c0_8 = arith.constant 0 : index
    %c0_9 = arith.constant 0 : index
    %c0_10 = arith.constant 0 : index
    %8 = vector.load %arg2[%c0_7, %c0_8, %c0_9, %c0_10] : memref<1x10x10x128xbf16, #tpu.memory_space<vmem>>, vector<1x8x8x128xbf16>
    %9 = vector.shape_cast %8 : vector<1x8x8x128xbf16> to vector<8x8x128xbf16>
    %10 = vector.shape_cast %9 : vector<8x8x128xbf16> to vector<64x128xbf16>
    %c1 = arith.constant 1 : index
    %c0_11 = arith.constant 0 : index
    %c0_12 = arith.constant 0 : index
    %11 = vector.load %arg5[%c1, %c0_11, %c0_12] : memref<9x128x128xbf16, #tpu.memory_space<vmem>>, vector<1x128x128xbf16>
    %12 = vector.shape_cast %11 : vector<1x128x128xbf16> to vector<128x128xbf16>
    %cst_13 = arith.constant dense<0.000000e+00> : vector<64x128xf32>
    %13 = tpu.matmul %10, %12, %cst_13 {dimension_numbers = #tpu.dot_dimension_numbers<[1], [0], [0], [1], [0, 0, 1, 1], [], []>} : vector<64x128xbf16>, vector<128x128xbf16>, vector<64x128xf32> -> vector<64x128xf32>
    %14 = arith.addf %7, %13 : vector<64x128xf32>
    %c0_14 = arith.constant 0 : index
    %c0_15 = arith.constant 0 : index
    %c1_16 = arith.constant 1 : index
    %c0_17 = arith.constant 0 : index
    %15 = vector.load %arg1[%c0_14, %c0_15, %c1_16, %c0_17] : memref<1x10x10x128xbf16, #tpu.memory_space<vmem>>, vector<1x8x8x128xbf16>
    %16 = vector.shape_cast %15 : vector<1x8x8x128xbf16> to vector<8x8x128xbf16>
    %17 = vector.shape_cast %16 : vector<8x8x128xbf16> to vector<64x128xbf16>
    %c2 = arith.constant 2 : index
    %c0_18 = arith.constant 0 : index
    %c0_19 = arith.constant 0 : index
    %18 = vector.load %arg5[%c2, %c0_18, %c0_19] : memref<9x128x128xbf16, #tpu.memory_space<vmem>>, vector<1x128x128xbf16>
    %19 = vector.shape_cast %18 : vector<1x128x128xbf16> to vector<128x128xbf16>
    %cst_20 = arith.constant dense<0.000000e+00> : vector<64x128xf32>
    %20 = tpu.matmul %17, %19, %cst_20 {dimension_numbers = #tpu.dot_dimension_numbers<[1], [0], [0], [1], [0, 0, 1, 1], [], []>} : vector<64x128xbf16>, vector<128x128xbf16>, vector<64x128xf32> -> vector<64x128xf32>
    %21 = arith.addf %14, %20 : vector<64x128xf32>
    %c0_21 = arith.constant 0 : index
    %c0_22 = arith.constant 0 : index
    %c0_23 = arith.constant 0 : index
    %c0_24 = arith.constant 0 : index
    %22 = vector.load %arg3[%c0_21, %c0_22, %c0_23, %c0_24] : memref<1x10x10x128xbf16, #tpu.memory_space<vmem>>, vector<1x8x8x128xbf16>
    %23 = vector.shape_cast %22 : vector<1x8x8x128xbf16> to vector<8x8x128xbf16>
    %24 = vector.shape_cast %23 : vector<8x8x128xbf16> to vector<64x128xbf16>
    %c3 = arith.constant 3 : index
    %c0_25 = arith.constant 0 : index
    %c0_26 = arith.constant 0 : index
    %25 = vector.load %arg5[%c3, %c0_25, %c0_26] : memref<9x128x128xbf16, #tpu.memory_space<vmem>>, vector<1x128x128xbf16>
    %26 = vector.shape_cast %25 : vector<1x128x128xbf16> to vector<128x128xbf16>
    %cst_27 = arith.constant dense<0.000000e+00> : vector<64x128xf32>
    %27 = tpu.matmul %24, %26, %cst_27 {dimension_numbers = #tpu.dot_dimension_numbers<[1], [0], [0], [1], [0, 0, 1, 1], [], []>} : vector<64x128xbf16>, vector<128x128xbf16>, vector<64x128xf32> -> vector<64x128xf32>
    %28 = arith.addf %21, %27 : vector<64x128xf32>
    %c0_28 = arith.constant 0 : index
    %c0_29 = arith.constant 0 : index
    %c0_30 = arith.constant 0 : index
    %c0_31 = arith.constant 0 : index
    %29 = vector.load %arg4[%c0_28, %c0_29, %c0_30, %c0_31] : memref<1x10x10x128xbf16, #tpu.memory_space<vmem>>, vector<1x8x8x128xbf16>
    %30 = vector.shape_cast %29 : vector<1x8x8x128xbf16> to vector<8x8x128xbf16>
    %31 = vector.shape_cast %30 : vector<8x8x128xbf16> to vector<64x128xbf16>
    %c4 = arith.constant 4 : index
    %c0_32 = arith.constant 0 : index
    %c0_33 = arith.constant 0 : index
    %32 = vector.load %arg5[%c4, %c0_32, %c0_33] : memref<9x128x128xbf16, #tpu.memory_space<vmem>>, vector<1x128x128xbf16>
    %33 = vector.shape_cast %32 : vector<1x128x128xbf16> to vector<128x128xbf16>
    %cst_34 = arith.constant dense<0.000000e+00> : vector<64x128xf32>
    %34 = tpu.matmul %31, %33, %cst_34 {dimension_numbers = #tpu.dot_dimension_numbers<[1], [0], [0], [1], [0, 0, 1, 1], [], []>} : vector<64x128xbf16>, vector<128x128xbf16>, vector<64x128xf32> -> vector<64x128xf32>
    %35 = arith.addf %28, %34 : vector<64x128xf32>
    %c0_35 = arith.constant 0 : index
    %c0_36 = arith.constant 0 : index
    %c1_37 = arith.constant 1 : index
    %c0_38 = arith.constant 0 : index
    %36 = vector.load %arg3[%c0_35, %c0_36, %c1_37, %c0_38] : memref<1x10x10x128xbf16, #tpu.memory_space<vmem>>, vector<1x8x8x128xbf16>
    %37 = vector.shape_cast %36 : vector<1x8x8x128xbf16> to vector<8x8x128xbf16>
    %38 = vector.shape_cast %37 : vector<8x8x128xbf16> to vector<64x128xbf16>
    %c5 = arith.constant 5 : index
    %c0_39 = arith.constant 0 : index
    %c0_40 = arith.constant 0 : index
    %39 = vector.load %arg5[%c5, %c0_39, %c0_40] : memref<9x128x128xbf16, #tpu.memory_space<vmem>>, vector<1x128x128xbf16>
    %40 = vector.shape_cast %39 : vector<1x128x128xbf16> to vector<128x128xbf16>
    %cst_41 = arith.constant dense<0.000000e+00> : vector<64x128xf32>
    %41 = tpu.matmul %38, %40, %cst_41 {dimension_numbers = #tpu.dot_dimension_numbers<[1], [0], [0], [1], [0, 0, 1, 1], [], []>} : vector<64x128xbf16>, vector<128x128xbf16>, vector<64x128xf32> -> vector<64x128xf32>
    %42 = arith.addf %35, %41 : vector<64x128xf32>
    %c0_42 = arith.constant 0 : index
    %c1_43 = arith.constant 1 : index
    %c0_44 = arith.constant 0 : index
    %c0_45 = arith.constant 0 : index
    %43 = vector.load %arg1[%c0_42, %c1_43, %c0_44, %c0_45] : memref<1x10x10x128xbf16, #tpu.memory_space<vmem>>, vector<1x8x8x128xbf16>
    %44 = vector.shape_cast %43 : vector<1x8x8x128xbf16> to vector<8x8x128xbf16>
    %45 = vector.shape_cast %44 : vector<8x8x128xbf16> to vector<64x128xbf16>
    %c6 = arith.constant 6 : index
    %c0_46 = arith.constant 0 : index
    %c0_47 = arith.constant 0 : index
    %46 = vector.load %arg5[%c6, %c0_46, %c0_47] : memref<9x128x128xbf16, #tpu.memory_space<vmem>>, vector<1x128x128xbf16>
    %47 = vector.shape_cast %46 : vector<1x128x128xbf16> to vector<128x128xbf16>
    %cst_48 = arith.constant dense<0.000000e+00> : vector<64x128xf32>
    %48 = tpu.matmul %45, %47, %cst_48 {dimension_numbers = #tpu.dot_dimension_numbers<[1], [0], [0], [1], [0, 0, 1, 1], [], []>} : vector<64x128xbf16>, vector<128x128xbf16>, vector<64x128xf32> -> vector<64x128xf32>
    %49 = arith.addf %42, %48 : vector<64x128xf32>
    %c0_49 = arith.constant 0 : index
    %c1_50 = arith.constant 1 : index
    %c0_51 = arith.constant 0 : index
    %c0_52 = arith.constant 0 : index
    %50 = vector.load %arg2[%c0_49, %c1_50, %c0_51, %c0_52] : memref<1x10x10x128xbf16, #tpu.memory_space<vmem>>, vector<1x8x8x128xbf16>
    %51 = vector.shape_cast %50 : vector<1x8x8x128xbf16> to vector<8x8x128xbf16>
    %52 = vector.shape_cast %51 : vector<8x8x128xbf16> to vector<64x128xbf16>
    %c7 = arith.constant 7 : index
    %c0_53 = arith.constant 0 : index
    %c0_54 = arith.constant 0 : index
    %53 = vector.load %arg5[%c7, %c0_53, %c0_54] : memref<9x128x128xbf16, #tpu.memory_space<vmem>>, vector<1x128x128xbf16>
    %54 = vector.shape_cast %53 : vector<1x128x128xbf16> to vector<128x128xbf16>
    %cst_55 = arith.constant dense<0.000000e+00> : vector<64x128xf32>
    %55 = tpu.matmul %52, %54, %cst_55 {dimension_numbers = #tpu.dot_dimension_numbers<[1], [0], [0], [1], [0, 0, 1, 1], [], []>} : vector<64x128xbf16>, vector<128x128xbf16>, vector<64x128xf32> -> vector<64x128xf32>
    %56 = arith.addf %49, %55 : vector<64x128xf32>
    %c0_56 = arith.constant 0 : index
    %c1_57 = arith.constant 1 : index
    %c1_58 = arith.constant 1 : index
    %c0_59 = arith.constant 0 : index
    %57 = vector.load %arg1[%c0_56, %c1_57, %c1_58, %c0_59] : memref<1x10x10x128xbf16, #tpu.memory_space<vmem>>, vector<1x8x8x128xbf16>
    %58 = vector.shape_cast %57 : vector<1x8x8x128xbf16> to vector<8x8x128xbf16>
    %59 = vector.shape_cast %58 : vector<8x8x128xbf16> to vector<64x128xbf16>
    %c8 = arith.constant 8 : index
    %c0_60 = arith.constant 0 : index
    %c0_61 = arith.constant 0 : index
    %60 = vector.load %arg5[%c8, %c0_60, %c0_61] : memref<9x128x128xbf16, #tpu.memory_space<vmem>>, vector<1x128x128xbf16>
    %61 = vector.shape_cast %60 : vector<1x128x128xbf16> to vector<128x128xbf16>
    %cst_62 = arith.constant dense<0.000000e+00> : vector<64x128xf32>
    %62 = tpu.matmul %59, %61, %cst_62 {dimension_numbers = #tpu.dot_dimension_numbers<[1], [0], [0], [1], [0, 0, 1, 1], [], []>} : vector<64x128xbf16>, vector<128x128xbf16>, vector<64x128xf32> -> vector<64x128xf32>
    %63 = arith.addf %56, %62 : vector<64x128xf32>
    %c0_63 = arith.constant 0 : index
    %c0_64 = arith.constant 0 : index
    %c0_65 = arith.constant 0 : index
    %64 = vector.load %arg6[%c0_63, %c0_64, %c0_65] : memref<1x64x128xf32, #tpu.memory_space<vmem>>, vector<1x64x128xf32>
    %65 = vector.shape_cast %64 : vector<1x64x128xf32> to vector<64x128xf32>
    %66 = vector.shape_cast %63 : vector<64x128xf32> to vector<1x64x128xf32>
    tpu.vector_store %arg6[%c0_63, %c0_64, %c0_65], %66 {strides = array<i32>} : memref<1x64x128xf32, #tpu.memory_space<vmem>>, vector<1x64x128xf32>,
    %c0_i32 = arith.constant 0 : i32
    %67 = arith.cmpi eq, %arg0, %c0_i32 : i32
    %68 = arith.extui %67 : i1 to i32
    %c0_i32_66 = arith.constant 0 : i32
    %69 = arith.cmpi ne, %68, %c0_i32_66 : i32
    scf.if %69 {
      %cst_73 = arith.constant 0.000000e+00 : f32
      %79 = vector.broadcast %cst_73 : f32 to vector<2x128xf32>
      %c0_74 = arith.constant 0 : index
      %c0_75 = arith.constant 0 : index
      %80 = vector.load %arg7[%c0_74, %c0_75] : memref<2x128xf32, #tpu.memory_space<vmem>>, vector<2x128xf32>
      tpu.vector_store %arg7[%c0_74, %c0_75], %79 {strides = array<i32>} : memref<2x128xf32, #tpu.memory_space<vmem>>, vector<2x128xf32>,
    } else {
    }
    %c0_67 = arith.constant 0 : index
    %c0_68 = arith.constant 0 : index
    %70 = vector.load %arg7[%c0_67, %c0_68] : memref<2x128xf32, #tpu.memory_space<vmem>>, vector<2x128xf32>
    %cst_69 = arith.constant dense<0.000000e+00> : vector<128xf32>
    %71 = vector.multi_reduction <add>, %63, %cst_69 [0] : vector<64x128xf32> to vector<128xf32>
    %72 = vector.shape_cast %71 : vector<128xf32> to vector<1x128xf32>
    %73 = arith.mulf %63, %63 : vector<64x128xf32>
    %cst_70 = arith.constant dense<0.000000e+00> : vector<128xf32>
    %74 = vector.multi_reduction <add>, %73, %cst_70 [0] : vector<64x128xf32> to vector<128xf32>
    %75 = vector.shape_cast %74 : vector<128xf32> to vector<1x128xf32>
    %76 = tpu.concatenate %72, %75 in 0 : vector<1x128xf32>, vector<1x128xf32> -> vector<2x128xf32>
    %77 = arith.addf %70, %76 : vector<2x128xf32>
    %c0_71 = arith.constant 0 : index
    %c0_72 = arith.constant 0 : index
    %78 = vector.load %arg7[%c0_71, %c0_72] : memref<2x128xf32, #tpu.memory_space<vmem>>, vector<2x128xf32>
    tpu.vector_store %arg7[%c0_71, %c0_72], %77 {strides = array<i32>} : memref<2x128xf32, #tpu.memory_space<vmem>>, vector<2x128xf32>,
    return
  }
  func.func @transform_0(%arg0: i32) -> (i32, i32, i32, i32) {
    %c0_i32 = arith.constant 0 : i32
    %c0_i32_0 = arith.constant 0 : i32
    %c0_i32_1 = arith.constant 0 : i32
    %c0_i32_2 = arith.constant 0 : i32
    return %arg0, %c0_i32, %c0_i32_0, %c0_i32_1 : i32, i32, i32, i32
  }
  func.func @transform_1(%arg0: i32) -> (i32, i32, i32, i32) {
    %c0_i32 = arith.constant 0 : i32
    %c0_i32_0 = arith.constant 0 : i32
    %c0_i32_1 = arith.constant 0 : i32
    %c0_i32_2 = arith.constant 0 : i32
    return %arg0, %c0_i32, %c0_i32_0, %c0_i32_1 : i32, i32, i32, i32
  }
  func.func @transform_2(%arg0: i32) -> (i32, i32, i32, i32) {
    %c0_i32 = arith.constant 0 : i32
    %c0_i32_0 = arith.constant 0 : i32
    %c0_i32_1 = arith.constant 0 : i32
    %c0_i32_2 = arith.constant 0 : i32
    return %arg0, %c0_i32, %c0_i32_0, %c0_i32_1 : i32, i32, i32, i32
  }
  func.func @transform_3(%arg0: i32) -> (i32, i32, i32, i32) {
    %c0_i32 = arith.constant 0 : i32
    %c0_i32_0 = arith.constant 0 : i32
    %c0_i32_1 = arith.constant 0 : i32
    %c0_i32_2 = arith.constant 0 : i32
    return %arg0, %c0_i32, %c0_i32_0, %c0_i32_1 : i32, i32, i32, i32
  }
  func.func @transform_4(%arg0: i32) -> (i32, i32, i32) {
    %c0_i32 = arith.constant 0 : i32
    %c0_i32_0 = arith.constant 0 : i32
    %c0_i32_1 = arith.constant 0 : i32
    %c0_i32_2 = arith.constant 0 : i32
    return %c0_i32, %c0_i32_0, %c0_i32_1 : i32, i32, i32
  }
  func.func @transform_5(%arg0: i32) -> (i32, i32, i32) {
    %c0_i32 = arith.constant 0 : i32
    %c0_i32_0 = arith.constant 0 : i32
    %c0_i32_1 = arith.constant 0 : i32
    return %arg0, %c0_i32, %c0_i32_0 : i32, i32, i32
  }
  func.func @transform_6(%arg0: i32) -> (i32, i32) {
    %c0_i32 = arith.constant 0 : i32
    %c0_i32_0 = arith.constant 0 : i32
    %c0_i32_1 = arith.constant 0 : i32
    return %c0_i32, %c0_i32_0 : i32, i32
  }
}

module attributes {stable_mosaic.version = 11 : i64} {
  func.func @_matmul_stats_kernel(%arg0: i32, %arg1: memref<128x128xbf16, #tpu.memory_space<vmem>>, %arg2: memref<128x128xbf16, #tpu.memory_space<vmem>>, %arg3: memref<128x128xf32, #tpu.memory_space<vmem>>, %arg4: memref<2x128xf32, #tpu.memory_space<vmem>>) attributes {dimension_semantics = [#tpu.dimension_semantics<arbitrary>], iteration_bounds = array<i64: 1>, scalar_prefetch = 0 : i64, scratch_operands = 0 : i64, tpu.core_type = #tpu.core_type<tc>, window_params = [{transform_indices = @transform_0, window_bounds = array<i64: 128, 128>}, {pipeline_mode = #tpu.pipeline_mode<synchronous>, transform_indices = @transform_1, window_bounds = array<i64: 128, 128>}, {transform_indices = @transform_2, window_bounds = array<i64: 128, 128>}, {pipeline_mode = #tpu.pipeline_mode<synchronous>, transform_indices = @transform_3, window_bounds = array<i64: 2, 128>}]} {
    %c0 = arith.constant 0 : index
    %c0_0 = arith.constant 0 : index
    %0 = vector.load %arg1[%c0, %c0_0] : memref<128x128xbf16, #tpu.memory_space<vmem>>, vector<128x128xbf16>
    %c0_1 = arith.constant 0 : index
    %c0_2 = arith.constant 0 : index
    %1 = vector.load %arg2[%c0_1, %c0_2] : memref<128x128xbf16, #tpu.memory_space<vmem>>, vector<128x128xbf16>
    %cst = arith.constant dense<0.000000e+00> : vector<128x128xf32>
    %2 = tpu.matmul %0, %1, %cst {dimension_numbers = #tpu.dot_dimension_numbers<[1], [0], [0], [1], [0, 0, 1, 1], [], []>} : vector<128x128xbf16>, vector<128x128xbf16>, vector<128x128xf32> -> vector<128x128xf32>
    %c0_3 = arith.constant 0 : index
    %c0_4 = arith.constant 0 : index
    %3 = vector.load %arg3[%c0_3, %c0_4] : memref<128x128xf32, #tpu.memory_space<vmem>>, vector<128x128xf32>
    tpu.vector_store %arg3[%c0_3, %c0_4], %2 {strides = array<i32>} : memref<128x128xf32, #tpu.memory_space<vmem>>, vector<128x128xf32>,
    %c0_i32 = arith.constant 0 : i32
    %4 = arith.cmpi eq, %arg0, %c0_i32 : i32
    %5 = arith.extui %4 : i1 to i32
    %c0_i32_5 = arith.constant 0 : i32
    %6 = arith.cmpi ne, %5, %c0_i32_5 : i32
    scf.if %6 {
      %cst_12 = arith.constant 0.000000e+00 : f32
      %16 = vector.broadcast %cst_12 : f32 to vector<2x128xf32>
      %c0_13 = arith.constant 0 : index
      %c0_14 = arith.constant 0 : index
      %17 = vector.load %arg4[%c0_13, %c0_14] : memref<2x128xf32, #tpu.memory_space<vmem>>, vector<2x128xf32>
      tpu.vector_store %arg4[%c0_13, %c0_14], %16 {strides = array<i32>} : memref<2x128xf32, #tpu.memory_space<vmem>>, vector<2x128xf32>,
    } else {
    }
    %c0_6 = arith.constant 0 : index
    %c0_7 = arith.constant 0 : index
    %7 = vector.load %arg4[%c0_6, %c0_7] : memref<2x128xf32, #tpu.memory_space<vmem>>, vector<2x128xf32>
    %cst_8 = arith.constant dense<0.000000e+00> : vector<128xf32>
    %8 = vector.multi_reduction <add>, %2, %cst_8 [0] : vector<128x128xf32> to vector<128xf32>
    %9 = vector.shape_cast %8 : vector<128xf32> to vector<1x128xf32>
    %10 = arith.mulf %2, %2 : vector<128x128xf32>
    %cst_9 = arith.constant dense<0.000000e+00> : vector<128xf32>
    %11 = vector.multi_reduction <add>, %10, %cst_9 [0] : vector<128x128xf32> to vector<128xf32>
    %12 = vector.shape_cast %11 : vector<128xf32> to vector<1x128xf32>
    %13 = tpu.concatenate %9, %12 in 0 : vector<1x128xf32>, vector<1x128xf32> -> vector<2x128xf32>
    %14 = arith.addf %7, %13 : vector<2x128xf32>
    %c0_10 = arith.constant 0 : index
    %c0_11 = arith.constant 0 : index
    %15 = vector.load %arg4[%c0_10, %c0_11] : memref<2x128xf32, #tpu.memory_space<vmem>>, vector<2x128xf32>
    tpu.vector_store %arg4[%c0_10, %c0_11], %14 {strides = array<i32>} : memref<2x128xf32, #tpu.memory_space<vmem>>, vector<2x128xf32>,
    return
  }
  func.func @transform_0(%arg0: i32) -> (i32, i32) {
    %c0_i32 = arith.constant 0 : i32
    %c0_i32_0 = arith.constant 0 : i32
    return %arg0, %c0_i32 : i32, i32
  }
  func.func @transform_1(%arg0: i32) -> (i32, i32) {
    %c0_i32 = arith.constant 0 : i32
    %c0_i32_0 = arith.constant 0 : i32
    %c0_i32_1 = arith.constant 0 : i32
    return %c0_i32, %c0_i32_0 : i32, i32
  }
  func.func @transform_2(%arg0: i32) -> (i32, i32) {
    %c0_i32 = arith.constant 0 : i32
    %c0_i32_0 = arith.constant 0 : i32
    return %arg0, %c0_i32 : i32, i32
  }
  func.func @transform_3(%arg0: i32) -> (i32, i32) {
    %c0_i32 = arith.constant 0 : i32
    %c0_i32_0 = arith.constant 0 : i32
    %c0_i32_1 = arith.constant 0 : i32
    return %c0_i32, %c0_i32_0 : i32, i32
  }
}

module attributes {stable_mosaic.version = 11 : i64} {
  func.func @_bn_apply_kernel(%arg0: i32, %arg1: memref<128x128xf32, #tpu.memory_space<vmem>>, %arg2: memref<2x128xf32, #tpu.memory_space<vmem>>, %arg3: memref<1x128xf32, #tpu.memory_space<vmem>>, %arg4: memref<1x128xf32, #tpu.memory_space<vmem>>, %arg5: memref<128x128xf32, #tpu.memory_space<vmem>>) attributes {dimension_semantics = [#tpu.dimension_semantics<parallel>], iteration_bounds = array<i64: 1>, scalar_prefetch = 0 : i64, scratch_operands = 0 : i64, tpu.core_type = #tpu.core_type<tc>, window_params = [{transform_indices = @transform_0, window_bounds = array<i64: 128, 128>}, {pipeline_mode = #tpu.pipeline_mode<synchronous>, transform_indices = @transform_1, window_bounds = array<i64: 2, 128>}, {pipeline_mode = #tpu.pipeline_mode<synchronous>, transform_indices = @transform_2, window_bounds = array<i64: 1, 128>}, {pipeline_mode = #tpu.pipeline_mode<synchronous>, transform_indices = @transform_3, window_bounds = array<i64: 1, 128>}, {transform_indices = @transform_4, window_bounds = array<i64: 128, 128>}]} {
    %c0 = arith.constant 0 : index
    %c0_0 = arith.constant 0 : index
    %0 = vector.load %arg2[%c0, %c0_0] : memref<2x128xf32, #tpu.memory_space<vmem>>, vector<2x128xf32>
    %1 = vector.extract_strided_slice %0 {offsets = [0, 0], sizes = [1, 128], strides = [1, 1]} : vector<2x128xf32> to vector<1x128xf32>
    %cst = arith.constant 7.812500e-03 : f32
    %2 = vector.broadcast %cst : f32 to vector<1x128xf32>
    %3 = arith.mulf %1, %2 : vector<1x128xf32>
    %4 = vector.extract_strided_slice %0 {offsets = [1, 0], sizes = [1, 128], strides = [1, 1]} : vector<2x128xf32> to vector<1x128xf32>
    %cst_1 = arith.constant 7.812500e-03 : f32
    %5 = vector.broadcast %cst_1 : f32 to vector<1x128xf32>
    %6 = arith.mulf %4, %5 : vector<1x128xf32>
    %7 = arith.mulf %3, %3 : vector<1x128xf32>
    %8 = arith.subf %6, %7 : vector<1x128xf32>
    %cst_2 = arith.constant 0.000000e+00 : f32
    %9 = vector.broadcast %cst_2 : f32 to vector<1x128xf32>
    %10 = arith.maximumf %8, %9 : vector<1x128xf32>
    %c0_3 = arith.constant 0 : index
    %c0_4 = arith.constant 0 : index
    %11 = vector.load %arg3[%c0_3, %c0_4] : memref<1x128xf32, #tpu.memory_space<vmem>>, vector<1x128xf32>
    %cst_5 = arith.constant 9.99999974E-6 : f32
    %12 = vector.broadcast %cst_5 : f32 to vector<1x128xf32>
    %13 = arith.addf %10, %12 : vector<1x128xf32>
    %14 = math.rsqrt %13 : vector<1x128xf32>
    %15 = arith.mulf %11, %14 : vector<1x128xf32>
    %c0_6 = arith.constant 0 : index
    %c0_7 = arith.constant 0 : index
    %16 = vector.load %arg4[%c0_6, %c0_7] : memref<1x128xf32, #tpu.memory_space<vmem>>, vector<1x128xf32>
    %17 = arith.mulf %3, %15 : vector<1x128xf32>
    %18 = arith.subf %16, %17 : vector<1x128xf32>
    %c0_8 = arith.constant 0 : index
    %c0_9 = arith.constant 0 : index
    %19 = vector.load %arg1[%c0_8, %c0_9] : memref<128x128xf32, #tpu.memory_space<vmem>>, vector<128x128xf32>
    %20 = vector.broadcast %15 : vector<1x128xf32> to vector<128x128xf32>
    %21 = arith.mulf %19, %20 : vector<128x128xf32>
    %22 = vector.broadcast %18 : vector<1x128xf32> to vector<128x128xf32>
    %23 = arith.addf %21, %22 : vector<128x128xf32>
    %c0_10 = arith.constant 0 : index
    %c0_11 = arith.constant 0 : index
    %24 = vector.load %arg5[%c0_10, %c0_11] : memref<128x128xf32, #tpu.memory_space<vmem>>, vector<128x128xf32>
    tpu.vector_store %arg5[%c0_10, %c0_11], %23 {strides = array<i32>} : memref<128x128xf32, #tpu.memory_space<vmem>>, vector<128x128xf32>,
    return
  }
  func.func @transform_0(%arg0: i32) -> (i32, i32) {
    %c0_i32 = arith.constant 0 : i32
    %c0_i32_0 = arith.constant 0 : i32
    return %arg0, %c0_i32 : i32, i32
  }
  func.func @transform_1(%arg0: i32) -> (i32, i32) {
    %c0_i32 = arith.constant 0 : i32
    %c0_i32_0 = arith.constant 0 : i32
    %c0_i32_1 = arith.constant 0 : i32
    return %c0_i32, %c0_i32_0 : i32, i32
  }
  func.func @transform_2(%arg0: i32) -> (i32, i32) {
    %c0_i32 = arith.constant 0 : i32
    %c0_i32_0 = arith.constant 0 : i32
    %c0_i32_1 = arith.constant 0 : i32
    return %c0_i32, %c0_i32_0 : i32, i32
  }
  func.func @transform_3(%arg0: i32) -> (i32, i32) {
    %c0_i32 = arith.constant 0 : i32
    %c0_i32_0 = arith.constant 0 : i32
    %c0_i32_1 = arith.constant 0 : i32
    return %c0_i32, %c0_i32_0 : i32, i32
  }
  func.func @transform_4(%arg0: i32) -> (i32, i32) {
    %c0_i32 = arith.constant 0 : i32
    %c0_i32_0 = arith.constant 0 : i32
    return %arg0, %c0_i32 : i32, i32
  }
}

module attributes {stable_mosaic.version = 11 : i64} {
  func.func @_bn_apply_kernel(%arg0: i32, %arg1: memref<128x128xf32, #tpu.memory_space<vmem>>, %arg2: memref<2x128xf32, #tpu.memory_space<vmem>>, %arg3: memref<1x128xf32, #tpu.memory_space<vmem>>, %arg4: memref<1x128xf32, #tpu.memory_space<vmem>>, %arg5: memref<128x128xf32, #tpu.memory_space<vmem>>, %arg6: memref<128x128xf32, #tpu.memory_space<vmem>>) attributes {dimension_semantics = [#tpu.dimension_semantics<parallel>], iteration_bounds = array<i64: 1>, scalar_prefetch = 0 : i64, scratch_operands = 0 : i64, tpu.core_type = #tpu.core_type<tc>, window_params = [{transform_indices = @transform_0, window_bounds = array<i64: 128, 128>}, {pipeline_mode = #tpu.pipeline_mode<synchronous>, transform_indices = @transform_1, window_bounds = array<i64: 2, 128>}, {pipeline_mode = #tpu.pipeline_mode<synchronous>, transform_indices = @transform_2, window_bounds = array<i64: 1, 128>}, {pipeline_mode = #tpu.pipeline_mode<synchronous>, transform_indices = @transform_3, window_bounds = array<i64: 1, 128>}, {transform_indices = @transform_4, window_bounds = array<i64: 128, 128>}, {transform_indices = @transform_5, window_bounds = array<i64: 128, 128>}]} {
    %c0 = arith.constant 0 : index
    %c0_0 = arith.constant 0 : index
    %0 = vector.load %arg2[%c0, %c0_0] : memref<2x128xf32, #tpu.memory_space<vmem>>, vector<2x128xf32>
    %1 = vector.extract_strided_slice %0 {offsets = [0, 0], sizes = [1, 128], strides = [1, 1]} : vector<2x128xf32> to vector<1x128xf32>
    %cst = arith.constant 7.812500e-03 : f32
    %2 = vector.broadcast %cst : f32 to vector<1x128xf32>
    %3 = arith.mulf %1, %2 : vector<1x128xf32>
    %4 = vector.extract_strided_slice %0 {offsets = [1, 0], sizes = [1, 128], strides = [1, 1]} : vector<2x128xf32> to vector<1x128xf32>
    %cst_1 = arith.constant 7.812500e-03 : f32
    %5 = vector.broadcast %cst_1 : f32 to vector<1x128xf32>
    %6 = arith.mulf %4, %5 : vector<1x128xf32>
    %7 = arith.mulf %3, %3 : vector<1x128xf32>
    %8 = arith.subf %6, %7 : vector<1x128xf32>
    %cst_2 = arith.constant 0.000000e+00 : f32
    %9 = vector.broadcast %cst_2 : f32 to vector<1x128xf32>
    %10 = arith.maximumf %8, %9 : vector<1x128xf32>
    %c0_3 = arith.constant 0 : index
    %c0_4 = arith.constant 0 : index
    %11 = vector.load %arg3[%c0_3, %c0_4] : memref<1x128xf32, #tpu.memory_space<vmem>>, vector<1x128xf32>
    %cst_5 = arith.constant 9.99999974E-6 : f32
    %12 = vector.broadcast %cst_5 : f32 to vector<1x128xf32>
    %13 = arith.addf %10, %12 : vector<1x128xf32>
    %14 = math.rsqrt %13 : vector<1x128xf32>
    %15 = arith.mulf %11, %14 : vector<1x128xf32>
    %c0_6 = arith.constant 0 : index
    %c0_7 = arith.constant 0 : index
    %16 = vector.load %arg4[%c0_6, %c0_7] : memref<1x128xf32, #tpu.memory_space<vmem>>, vector<1x128xf32>
    %17 = arith.mulf %3, %15 : vector<1x128xf32>
    %18 = arith.subf %16, %17 : vector<1x128xf32>
    %c0_8 = arith.constant 0 : index
    %c0_9 = arith.constant 0 : index
    %19 = vector.load %arg1[%c0_8, %c0_9] : memref<128x128xf32, #tpu.memory_space<vmem>>, vector<128x128xf32>
    %20 = vector.broadcast %15 : vector<1x128xf32> to vector<128x128xf32>
    %21 = arith.mulf %19, %20 : vector<128x128xf32>
    %22 = vector.broadcast %18 : vector<1x128xf32> to vector<128x128xf32>
    %23 = arith.addf %21, %22 : vector<128x128xf32>
    %c0_10 = arith.constant 0 : index
    %c0_11 = arith.constant 0 : index
    %24 = vector.load %arg5[%c0_10, %c0_11] : memref<128x128xf32, #tpu.memory_space<vmem>>, vector<128x128xf32>
    %25 = arith.addf %23, %24 : vector<128x128xf32>
    %cst_12 = arith.constant 0.000000e+00 : f32
    %26 = vector.broadcast %cst_12 : f32 to vector<128x128xf32>
    %27 = arith.maximumf %25, %26 : vector<128x128xf32>
    %c0_13 = arith.constant 0 : index
    %c0_14 = arith.constant 0 : index
    %28 = vector.load %arg6[%c0_13, %c0_14] : memref<128x128xf32, #tpu.memory_space<vmem>>, vector<128x128xf32>
    tpu.vector_store %arg6[%c0_13, %c0_14], %27 {strides = array<i32>} : memref<128x128xf32, #tpu.memory_space<vmem>>, vector<128x128xf32>,
    return
  }
  func.func @transform_0(%arg0: i32) -> (i32, i32) {
    %c0_i32 = arith.constant 0 : i32
    %c0_i32_0 = arith.constant 0 : i32
    return %arg0, %c0_i32 : i32, i32
  }
  func.func @transform_1(%arg0: i32) -> (i32, i32) {
    %c0_i32 = arith.constant 0 : i32
    %c0_i32_0 = arith.constant 0 : i32
    %c0_i32_1 = arith.constant 0 : i32
    return %c0_i32, %c0_i32_0 : i32, i32
  }
  func.func @transform_2(%arg0: i32) -> (i32, i32) {
    %c0_i32 = arith.constant 0 : i32
    %c0_i32_0 = arith.constant 0 : i32
    %c0_i32_1 = arith.constant 0 : i32
    return %c0_i32, %c0_i32_0 : i32, i32
  }
  func.func @transform_3(%arg0: i32) -> (i32, i32) {
    %c0_i32 = arith.constant 0 : i32
    %c0_i32_0 = arith.constant 0 : i32
    %c0_i32_1 = arith.constant 0 : i32
    return %c0_i32, %c0_i32_0 : i32, i32
  }
  func.func @transform_4(%arg0: i32) -> (i32, i32) {
    %c0_i32 = arith.constant 0 : i32
    %c0_i32_0 = arith.constant 0 : i32
    return %arg0, %c0_i32 : i32, i32
  }
  func.func @transform_5(%arg0: i32) -> (i32, i32) {
    %c0_i32 = arith.constant 0 : i32
    %c0_i32_0 = arith.constant 0 : i32
    return %arg0, %c0_i32 : i32, i32
  }
}

</mosaic_0001>

<bundles_post_ra>
// kernel: bottleneck_forward.9
= control target key start
LH: loop header
LB: loop body
LE: loop exit
PB: predicated region body
PF: predicated region fallthrough
CT: control target
= control target key end

     0   :  { %s804_s15 = smov 0   ;;  %s954_s0 = inlined_call_operand.vmem [shape: f32[512,128], index: 0, kind: input, shape index: {}]   ;;  %s955_s1 = inlined_call_operand.vmem [shape: f32[2,128], index: 1, kind: input, shape index: {}]   ;;  %s956_s2 = inlined_call_operand.vmem [shape: f32[1,128], index: 2, kind: input, shape index: {}]   ;;  %s957_s3 = inlined_call_operand.vmem [shape: f32[1,128], index: 3, kind: input, shape index: {}]   ;;  %s958_s4 = inlined_call_operand.vmem [shape: bf16[512,128], index: 4, kind: output, shape index: {}]  }
   0x1 LB: > { %s589_s16 = sadd.s32 4294967295, %s776_s15   ;;  %p593_p0 = scmp.ge.s32.totalorder %s776_s15, 1  ;;  %s776_s15 = sphi %s804_s15, %s14_s15  }
   0x2   : > { %p163_p1 = scmp.lt.s32.totalorder %s776_s15, 3 }
   0x4   : > { %p164_p2 = pnand %p593_p0, %p163_p1 }
   0x5   : > { %s594_s19 = sshll.u32 (!%p164_p2), %s589_s16, 5 }
   0x6   : > { %167 = sbr.rel (%p164_p2) target bundleno = 82 (0x52), region = 36  ;;  %p190_p3 = scmp.lt.s32.totalorder (!%p164_p2), %s594_s19, 63 }
   0xb   : > { %v201_v0 = vld [vmem:[%s955_s1] sm:$0x3]  ;;  %v778_v7 = vmov 1966171168   ;;  %v216_v9 = vlaneseq  ;;  %s960_s19 = smov (!%p190_p3, %s594_s19), 63 }
   0xc   : > { %v202_v1 = vmul.f32 0.001953125, %v201_v0  ;;  %v214_v8 = vunpack.c.l.s4 %v778_v7  ;;  %s595_s20 = sshll.u32 %s960_s19, 3  ;;  %v209_v16 = vld [vmem:[%s956_s2] sm:$0x1]  ;;  %s597_s28 = sshll.u32 %s960_s19, 2 }
   0xd   : > { %v217_v11 = vshrl.u32 %v216_v9, 7  ;;  %s821_s23 = scalar_lea.vmem %s954_s0, %s595_s20  ;;  %v230_v20 = vld [vmem:[%s957_s3] sm:$0x1]  ;;  %s873_s5 = scalar_lea.vmem %s958_s4, %s597_s28 }
   0xe   : > { %v203_v2 = vmul.f32 %v202_v1, %v202_v1  ;;  %v215_v10 = vunpack.c.0.s8 %v214_v8  ;;  %v233_v21 = vld [vmem:[%s821_s23] sm:$0xff]  ;;  %v234_v22 = vld [vmem:[%s821_s23 + $0x8] sm:$0xff]  ;;  %v235_v23 = vld [vmem:[%s821_s23 + $0x10] sm:$0xff] }
   0xf   : > { %v268_v18 = vsub.s32 0, %v217_v11  ;;  %v236_v24 = vld [vmem:[%s821_s23 + $0x18] sm:$0xff]  ;;  %v237_v25 = vld [vmem:[%s821_s23 + $0x20] sm:$0xff]  ;;  %v238_v28 = vld [vmem:[%s821_s23 + $0x28] sm:$0xff] }
  0x10   : > { %v205_v3 = vrot.slane %v203_v2, 7  ;;  %v218_v12 = vsub.s32 %v215_v10, %v217_v11  ;;  %v239_v29 = vld [vmem:[%s821_s23 + $0x30] sm:$0xff]  ;;  %v240_v30 = vld [vmem:[%s821_s23 + $0x38] sm:$0xff]  ;;  %v241_v31 = vld [vmem:[%s821_s23 + $0x40] sm:$0xff] }
  0x11   : > { %v242_v32 = vld [vmem:[%s821_s23 + $0x48] sm:$0xff]  ;;  %v243_v33 = vld [vmem:[%s821_s23 + $0x50] sm:$0xff]  ;;  %v244_v38 = vld [vmem:[%s821_s23 + $0x58] sm:$0xff] }
  0x12   : > { %v207_v4 = vsub.f32 %v202_v1, %v205_v3  ;;  %v245_v39 = vld [vmem:[%s821_s23 + $0x60] sm:$0xff]  ;;  %v246_v40 = vld [vmem:[%s821_s23 + $0x68] sm:$0xff]  ;;  %v247_v9 = vld [vmem:[%s821_s23 + $0x70] sm:$0xff] }
  0x13   : > { %v248_v10 = vld [vmem:[%s821_s23 + $0x78] sm:$0xff] }
  0x14   : > { %v208_v5 = vmax.f32 %v207_v4, 0.0 }
  0x16   : > { %v210_v6 = vadd.f32 1e-05, %v208_v5 }
  0x18   : > { %768 = vrsqrt.f32 %v210_v6 }
  0x25   : > { %v769_v13 = vpop.eup %768 }
  0x26   : > { %v219_v14 = vrot.slane %v769_v13, %v218_v12 }
  0x28   : > { %v220_v15 = vcombine.high %v219_v14, %v219_v14 }
  0x2a   : > { %v227_v17 = vrot.slane %v220_v15, %v218_v12  ;;  %v249_v15 = vld [vmem:[%s821_s23 + $0x80] sm:$0xff] }
  0x2c   : > { %v229_v19 = vmul.f32 %v227_v17, %v209_v16 }
  0x2e   : > { %v231_v26 = vmul.f32 %v229_v19, %v202_v1  ;;  %v834_v27 = vrot.slane %v229_v19, %v268_v18 }
  0x30   : > { %v232_v34 = vsub.f32 %v230_v20, %v231_v26  ;;  %v271_v35 = vmul.f32 %v834_v27, %v233_v21  ;;  %v272_v36 = vmul.f32 %v834_v27, %v234_v22  ;;  %v273_v37 = vmul.f32 %v834_v27, %v235_v23  ;;  %v250_v20 = vld [vmem:[%s821_s23 + $0x88] sm:$0xff]  ;;  %v252_v26 = vld [vmem:[%s821_s23 + $0x98] sm:$0xff] }
  0x31   : > { %v274_v41 = vmul.f32 %v834_v27, %v236_v24  ;;  %v275_v42 = vmul.f32 %v834_v27, %v237_v25  ;;  %v276_v43 = vmul.f32 %v834_v27, %v238_v28  ;;  %v277_v44 = vmul.f32 %v834_v27, %v239_v29  ;;  %v251_v25 = vld [vmem:[%s821_s23 + $0x90] sm:$0xff] }
  0x32   : > { %v852_v45 = vrot.slane %v232_v34, %v268_v18  ;;  %v278_v46 = vmul.f32 %v834_v27, %v240_v30  ;;  %v279_v47 = vmul.f32 %v834_v27, %v241_v31  ;;  %v280_v48 = vmul.f32 %v834_v27, %v242_v32  ;;  %v253_v32 = vld [vmem:[%s821_s23 + $0xa0] sm:$0xff] }
  0x33   : > { %v281_v49 = vmul.f32 %v834_v27, %v243_v33  ;;  %v282_v50 = vmul.f32 %v834_v27, %v244_v38  ;;  %v283_v51 = vmul.f32 %v834_v27, %v245_v39  ;;  %v284_v52 = vmul.f32 %v834_v27, %v246_v40 }
  0x34   : > { %v309_v53 = vadd.f32 %v852_v45, %v271_v35  ;;  %v310_v54 = vadd.f32 %v852_v45, %v272_v36  ;;  %v311_v55 = vadd.f32 %v852_v45, %v273_v37  ;;  %v312_v56 = vadd.f32 %v852_v45, %v274_v41  ;;  %v254_v37 = vld [vmem:[%s821_s23 + $0xa8] sm:$0xff] }
  0x35   : > { %v313_v57 = vadd.f32 %v852_v45, %v275_v42  ;;  %v314_v58 = vadd.f32 %v852_v45, %v276_v43  ;;  %v315_v59 = vadd.f32 %v852_v45, %v277_v44  ;;  %v316_v60 = vadd.f32 %v852_v45, %v278_v46  ;;  %v255_v42 = vld [vmem:[%s821_s23 + $0xb0] sm:$0xff] }
  0x36   : > { %v341_v61 = vmax.f32 %v309_v53, 0.0  ;;  %v342_v62 = vmax.f32 %v310_v54, 0.0  ;;  %v343_v63 = vmax.f32 %v311_v55, 0.0  ;;  %v344_v0 = vmax.f32 %v312_v56, 0.0  ;;  %v257_v53 = vld [vmem:[%s821_s23 + $0xc0] sm:$0xff] }
  0x37   : > { %v345_v1 = vmax.f32 %v313_v57, 0.0  ;;  %v346_v2 = vmax.f32 %v314_v58, 0.0  ;;  %v347_v3 = vmax.f32 %v315_v59, 0.0  ;;  %v348_v4 = vmax.f32 %v316_v60, 0.0  ;;  %v258_v58 = vld [vmem:[%s821_s23 + $0xc8] sm:$0xff] }
  0x38   : > { %v667_v5 = vpack.c.bf16 %v342_v62, %v341_v61  ;;  %v672_v6 = vpack.c.bf16 %v344_v0, %v343_v63  ;;  %v317_v7 = vadd.f32 %v852_v45, %v279_v47  ;;  %v318_v8 = vadd.f32 %v852_v45, %v280_v48  ;;  %v256_v48 = vld [vmem:[%s821_s23 + $0xb8] sm:$0xff]  ;;  %v259_v63 = vld [vmem:[%s821_s23 + $0xd0] sm:$0xff] }
  0x39   : > { %v677_v11 = vpack.c.bf16 %v346_v2, %v345_v1  ;;  %v682_v12 = vpack.c.bf16 %v348_v4, %v347_v3  ;;  %v319_v13 = vadd.f32 %v852_v45, %v281_v49  ;;  %v320_v14 = vadd.f32 %v852_v45, %v282_v50  ;;  %v260_v0 = vld [vmem:[%s821_s23 + $0xd8] sm:$0xff] }
  0x3a   : > { %668 = vst [vmem:[%s873_s5] sm:$0xff] %v667_v5   ;;  %744 = vst [vmem:[%s873_s5 + $0x8] sm:$0xff] %v672_v6   ;;  %v349_v16 = vmax.f32 %v317_v7, 0.0  ;;  %v350_v17 = vmax.f32 %v318_v8, 0.0  ;;  %v321_v18 = vadd.f32 %v852_v45, %v283_v51  ;;  %v322_v19 = vadd.f32 %v852_v45, %v284_v52  ;;  %v261_v5 = vld [vmem:[%s821_s23 + $0xe0] sm:$0xff] }
  0x3b   : > { %745 = vst [vmem:[%s873_s5 + $0x10] sm:$0xff] %v677_v11   ;;  %746 = vst [vmem:[%s873_s5 + $0x18] sm:$0xff] %v682_v12   ;;  %v351_v21 = vmax.f32 %v319_v13, 0.0  ;;  %v352_v22 = vmax.f32 %v320_v14, 0.0  ;;  %v285_v23 = vmul.f32 %v834_v27, %v247_v9  ;;  %v286_v24 = vmul.f32 %v834_v27, %v248_v10  ;;  %v262_v10 = vld [vmem:[%s821_s23 + $0xe8] sm:$0xff] }
  0x3c   : > { %v687_v28 = vpack.c.bf16 %v350_v17, %v349_v16  ;;  %v353_v29 = vmax.f32 %v321_v18, 0.0  ;;  %v354_v30 = vmax.f32 %v322_v19, 0.0  ;;  %v287_v31 = vmul.f32 %v834_v27, %v249_v15  ;;  %v263_v15 = vld [vmem:[%s821_s23 + $0xf0] sm:$0xff] }
  0x3d   : > { %v692_v33 = vpack.c.bf16 %v352_v22, %v351_v21  ;;  %v323_v34 = vadd.f32 %v852_v45, %v285_v23  ;;  %v324_v35 = vadd.f32 %v852_v45, %v286_v24  ;;  %v288_v36 = vmul.f32 %v834_v27, %v250_v20  ;;  %v264_v20 = vld [vmem:[%s821_s23 + $0xf8] sm:$0xff] }
  0x3e   : > { %747 = vst [vmem:[%s873_s5 + $0x20] sm:$0xff] %v687_v28   ;;  %v697_v38 = vpack.c.bf16 %v354_v30, %v353_v29  ;;  %v325_v39 = vadd.f32 %v852_v45, %v287_v31  ;;  %v289_v40 = vmul.f32 %v834_v27, %v251_v25  ;;  %v290_v41 = vmul.f32 %v834_v27, %v252_v26 }
  0x3f   : > { %748 = vst [vmem:[%s873_s5 + $0x28] sm:$0xff] %v692_v33   ;;  %v355_v43 = vmax.f32 %v323_v34, 0.0  ;;  %v356_v44 = vmax.f32 %v324_v35, 0.0  ;;  %v326_v46 = vadd.f32 %v852_v45, %v288_v36  ;;  %v291_v47 = vmul.f32 %v834_v27, %v253_v32 }
  0x40   : > { %749 = vst [vmem:[%s873_s5 + $0x30] sm:$0xff] %v697_v38   ;;  %v357_v49 = vmax.f32 %v325_v39, 0.0  ;;  %v327_v50 = vadd.f32 %v852_v45, %v289_v40  ;;  %v328_v51 = vadd.f32 %v852_v45, %v290_v41  ;;  %v292_v52 = vmul.f32 %v834_v27, %v254_v37 }
  0x41   : > { %v702_v54 = vpack.c.bf16 %v356_v44, %v355_v43  ;;  %v358_v55 = vmax.f32 %v326_v46, 0.0  ;;  %v329_v56 = vadd.f32 %v852_v45, %v291_v47  ;;  %v293_v57 = vmul.f32 %v834_v27, %v255_v42 }
  0x42   : > { %v359_v59 = vmax.f32 %v327_v50, 0.0  ;;  %v360_v60 = vmax.f32 %v328_v51, 0.0  ;;  %v330_v61 = vadd.f32 %v852_v45, %v292_v52  ;;  %v294_v62 = vmul.f32 %v834_v27, %v256_v48 }
  0x43   : > { %750 = vst [vmem:[%s873_s5 + $0x38] sm:$0xff] %v702_v54   ;;  %v707_v1 = vpack.c.bf16 %v358_v55, %v357_v49  ;;  %v361_v2 = vmax.f32 %v329_v56, 0.0  ;;  %v331_v3 = vadd.f32 %v852_v45, %v293_v57  ;;  %v295_v4 = vmul.f32 %v834_v27, %v257_v53 }
  0x44   : > { %v712_v6 = vpack.c.bf16 %v360_v60, %v359_v59  ;;  %v362_v7 = vmax.f32 %v330_v61, 0.0  ;;  %v332_v8 = vadd.f32 %v852_v45, %v294_v62  ;;  %v296_v9 = vmul.f32 %v834_v27, %v258_v58 }
  0x45   : > { %751 = vst [vmem:[%s873_s5 + $0x40] sm:$0xff] %v707_v1   ;;  %v363_v11 = vmax.f32 %v331_v3, 0.0  ;;  %v333_v12 = vadd.f32 %v852_v45, %v295_v4  ;;  %v297_v13 = vmul.f32 %v834_v27, %v259_v63  ;;  %v298_v14 = vmul.f32 %v834_v27, %v260_v0 }
  0x46   : > { %752 = vst [vmem:[%s873_s5 + $0x48] sm:$0xff] %v712_v6   ;;  %v717_v16 = vpack.c.bf16 %v362_v7, %v361_v2  ;;  %v364_v17 = vmax.f32 %v332_v8, 0.0  ;;  %v334_v18 = vadd.f32 %v852_v45, %v296_v9  ;;  %v299_v19 = vmul.f32 %v834_v27, %v261_v5 }
  0x47   : > { %v365_v21 = vmax.f32 %v333_v12, 0.0  ;;  %v335_v22 = vadd.f32 %v852_v45, %v297_v13  ;;  %v336_v23 = vadd.f32 %v852_v45, %v298_v14  ;;  %v300_v24 = vmul.f32 %v834_v27, %v262_v10 }
  0x48   : > { %753 = vst [vmem:[%s873_s5 + $0x50] sm:$0xff] %v717_v16   ;;  %v722_v25 = vpack.c.bf16 %v364_v17, %v363_v11  ;;  %v366_v26 = vmax.f32 %v334_v18, 0.0  ;;  %v337_v28 = vadd.f32 %v852_v45, %v299_v19  ;;  %v301_v29 = vmul.f32 %v834_v27, %v263_v15 }
  0x49   : > { %v367_v30 = vmax.f32 %v335_v22, 0.0  ;;  %v368_v31 = vmax.f32 %v336_v23, 0.0  ;;  %v338_v32 = vadd.f32 %v852_v45, %v300_v24  ;;  %v302_v33 = vmul.f32 %v834_v27, %v264_v20 }
  0x4a   : > { %754 = vst [vmem:[%s873_s5 + $0x58] sm:$0xff] %v722_v25   ;;  %v727_v34 = vpack.c.bf16 %v366_v26, %v365_v21  ;;  %v369_v35 = vmax.f32 %v337_v28, 0.0  ;;  %v339_v36 = vadd.f32 %v852_v45, %v301_v29 }
  0x4b   : > { %v732_v37 = vpack.c.bf16 %v368_v31, %v367_v30  ;;  %v370_v38 = vmax.f32 %v338_v32, 0.0  ;;  %v340_v39 = vadd.f32 %v852_v45, %v302_v33 }
  0x4c   : > { %755 = vst [vmem:[%s873_s5 + $0x60] sm:$0xff] %v727_v34   ;;  %v371_v40 = vmax.f32 %v339_v36, 0.0 }
  0x4d   : > { %756 = vst [vmem:[%s873_s5 + $0x68] sm:$0xff] %v732_v37   ;;  %v737_v41 = vpack.c.bf16 %v370_v38, %v369_v35  ;;  %v372_v42 = vmax.f32 %v340_v39, 0.0 }
  0x4f   : > { %757 = vst [vmem:[%s873_s5 + $0x70] sm:$0xff] %v737_v41   ;;  %v742_v43 = vpack.c.bf16 %v372_v42, %v371_v40 }
  0x51   : > { %758 = vst [vmem:[%s873_s5 + $0x78] sm:$0xff] %v742_v43  }
  0x52 PF: > { %s14_s15 = sadd.s32 1, %s776_s15  }
  0x53   : > { %p11_p4 = scmp.ge.s32.totalorder %s14_s15, 4  }
  0x55   :  { %13 = sbr.rel (!%p11_p4) target bundleno = 1 (0x1), region = 66 }

// kernel: bottleneck_forward.8
= control target key start
LH: loop header
LB: loop body
LE: loop exit
PB: predicated region body
PF: predicated region fallthrough
CT: control target
= control target key end

     0   :  { %s922_s12 = smov 0   ;;  %s1164_s0 = inlined_call_operand.vmem [shape: bf16[512,128], index: 0, kind: input, shape index: {}]   ;;  %s1165_s1 = inlined_call_operand.vmem [shape: bf16[128,128], index: 1, kind: input, shape index: {}]   ;;  %s1166_s2 = inlined_call_operand.vmem [shape: f32[512,128], index: 2, kind: output, shape index: {0}]   ;;  %s1167_s3 = inlined_call_operand.vmem [shape: f32[2,128], index: 3, kind: output, shape index: {1}]  }
   0x1 LB: > { %s736_s13 = sadd.s32 4294967295, %s899_s12   ;;  %p740_p0 = scmp.ge.s32.totalorder %s899_s12, 1  ;;  %s899_s12 = sphi %s922_s12, %s14_s12  }
   0x2   : > { %p136_p1 = scmp.lt.s32.totalorder %s899_s12, 3 }
   0x4   : > { %p137_p2 = pnand %p740_p0, %p136_p1 }
   0x5   : > { %s741_s16 = sshll.u32 (!%p137_p2), %s736_s13, 5  ;;  %p769_p4 = scmp.ne.s32.totalorder (!%p137_p2), %s736_s13, 0 }
   0x6   : > { %140 = sbr.rel (%p137_p2) target bundleno = 350 (0x15e), region = 28  ;;  %p161_p3 = scmp.lt.s32.totalorder (!%p137_p2), %s741_s16, 63 }
   0xb   : > { %v869_v0 = vld [vmem:[%s1165_s1 + $0x38] sm:$0xff]   ;;  %v870_v1 = vld [vmem:[%s1165_s1 + $0x30] sm:$0xff]   ;;  %s1169_s16 = smov (!%p161_p3, %s741_s16), 63  ;;  %v871_v2 = vld [vmem:[%s1165_s1 + $0x28] sm:$0xff]  }
   0xc   : > { %796 = vmatprep.subr.bf16.mxu0 %v869_v0  ;;  %844 = vmatprep.subr.bf16.mxu1 %v869_v0  ;;  %s742_s21 = sshll.u32 %s1169_s16, 2  ;;  %v872_v3 = vld [vmem:[%s1165_s1 + $0x20] sm:$0xff]   ;;  %v873_v6 = vld [vmem:[%s1165_s1 + $0x18] sm:$0xff]   ;;  %v874_v7 = vld [vmem:[%s1165_s1 + $0x10] sm:$0xff]   ;;  %s744_s8 = sshll.u32 %s1169_s16, 3 }
   0xd   : > { %797 = vmatpush3.bf16.msra.mxu0 %v869_v0  ;;  %852 = vmatpush3.bf16.msra.mxu1 %v869_v0  ;;  %s947_s24 = scalar_lea.vmem %s1164_s0, %s742_s21  ;;  %v875_v8 = vld [vmem:[%s1165_s1 + $0x8] sm:$0xff]   ;;  %v876_v9 = vld [vmem:[%s1165_s1] sm:$0xff]   ;;  %s984_s11 = scalar_lea.vmem %s1166_s2, %s744_s8 }
   0xe   : > { %798 = vmatprep.subr.bf16.mxu0 %v870_v1  ;;  %845 = vmatprep.subr.bf16.mxu1 %v870_v1  ;;  %v877_v4 = vld [vmem:[%s947_s24] sm:$0xff]   ;;  %v879_v10 = vld [vmem:[%s947_s24 + $0x8] sm:$0xff]   ;;  %v881_v12 = vld [vmem:[%s947_s24 + $0x10] sm:$0xff]  }
   0xf   : > { %v878_v5 = vld [vmem:[%s947_s24 + $0x40] sm:$0xff]   ;;  %812 = vmatprep.mubr.bf16.mxu0 %v877_v4  ;;  %v880_v11 = vld [vmem:[%s947_s24 + $0x48] sm:$0xff]   ;;  %v882_v13 = vld [vmem:[%s947_s24 + $0x50] sm:$0xff]  }
  0x10   : > { %828 = vmatprep.mubr.bf16.mxu1 %v878_v5  ;;  %v883_v14 = vld [vmem:[%s947_s24 + $0x18] sm:$0xff]   ;;  %v885_v16 = vld [vmem:[%s947_s24 + $0x20] sm:$0xff]   ;;  %v887_v18 = vld [vmem:[%s947_s24 + $0x28] sm:$0xff]  }
  0x11   : > { %799 = vmatpush3.bf16.msra.mxu0 %v870_v1  ;;  %853 = vmatpush3.bf16.msra.mxu1 %v870_v1  ;;  %v884_v15 = vld [vmem:[%s947_s24 + $0x58] sm:$0xff]   ;;  %v886_v17 = vld [vmem:[%s947_s24 + $0x60] sm:$0xff]   ;;  %v888_v19 = vld [vmem:[%s947_s24 + $0x68] sm:$0xff]  }
  0x12   : > { %800 = vmatprep.subr.bf16.mxu0 %v871_v2  ;;  %846 = vmatprep.subr.bf16.mxu1 %v871_v2  ;;  %v889_v20 = vld [vmem:[%s947_s24 + $0x30] sm:$0xff]   ;;  %v891_v22 = vld [vmem:[%s947_s24 + $0x38] sm:$0xff]  }
  0x13   : > { %v890_v21 = vld [vmem:[%s947_s24 + $0x70] sm:$0xff]   ;;  %v892_v23 = vld [vmem:[%s947_s24 + $0x78] sm:$0xff]  }
  0x15   : > { %801 = vmatpush3.bf16.msra.mxu0 %v871_v2  ;;  %854 = vmatpush3.bf16.msra.mxu1 %v871_v2 }
  0x16   : > { %802 = vmatprep.subr.bf16.mxu0 %v872_v3  ;;  %847 = vmatprep.subr.bf16.mxu1 %v872_v3 }
  0x19   : > { %803 = vmatpush3.bf16.msra.mxu0 %v872_v3  ;;  %855 = vmatpush3.bf16.msra.mxu1 %v872_v3 }
  0x1a   : > { %804 = vmatprep.subr.bf16.mxu0 %v873_v6  ;;  %848 = vmatprep.subr.bf16.mxu1 %v873_v6 }
  0x1d   : > { %805 = vmatpush3.bf16.msra.mxu0 %v873_v6  ;;  %856 = vmatpush3.bf16.msra.mxu1 %v873_v6 }
  0x1e   : > { %806 = vmatprep.subr.bf16.mxu0 %v874_v7  ;;  %849 = vmatprep.subr.bf16.mxu1 %v874_v7 }
  0x21   : > { %807 = vmatpush3.bf16.msra.mxu0 %v874_v7  ;;  %857 = vmatpush3.bf16.msra.mxu1 %v874_v7 }
  0x22   : > { %808 = vmatprep.subr.bf16.mxu0 %v875_v8  ;;  %850 = vmatprep.subr.bf16.mxu1 %v875_v8 }
  0x25   : > { %809 = vmatpush3.bf16.msra.mxu0 %v875_v8  ;;  %858 = vmatpush3.bf16.msra.mxu1 %v875_v8 }
  0x26   : > { %810 = vmatprep.subr.bf16.mxu0 %v876_v9  ;;  %851 = vmatprep.subr.bf16.mxu1 %v876_v9 }
  0x29   : > { %811 = vmatpush3.bf16.msra.mxu0 %v876_v9  ;;  %859 = vmatpush3.bf16.msra.mxu1 %v876_v9 }
  0x2c   : > { %813 = vmatmul.mubr.bf16.vlgmr.msra.gmra.mxu0 %v879_v10  ;;  %829 = vmatmul.mubr.bf16.vlgmr.msra.gmra.mxu1 %v880_v11 }
  0x2d   : > { %816 = vmatprep.mubr.bf16.mxu0 %v881_v12  ;;  %832 = vmatprep.mubr.bf16.mxu1 %v882_v13 }
  0x34   : > { %817 = vmatmul.mubr.bf16.gmra.mxu0 %v883_v14  ;;  %833 = vmatmul.mubr.bf16.gmra.mxu1 %v884_v15 }
  0x35   : > { %820 = vmatprep.mubr.bf16.mxu0 %v885_v16  ;;  %836 = vmatprep.mubr.bf16.mxu1 %v886_v17 }
  0x3c   : > { %821 = vmatmul.mubr.bf16.gmra.mxu0 %v887_v18  ;;  %837 = vmatmul.mubr.bf16.gmra.mxu1 %v888_v19 }
  0x3d   : > { %824 = vmatprep.mubr.bf16.mxu0 %v889_v20  ;;  %840 = vmatprep.mubr.bf16.mxu1 %v890_v21 }
  0x44   : > { %825 = vmatmul.mubr.bf16.gmra.mxu0 %v891_v22  ;;  %841 = vmatmul.mubr.bf16.gmra.mxu1 %v892_v23 }
  0xec   : > { %v986_v24 = vpop.f32.mrf.mxu0  ;;  %v988_v25 = vpop.f32.mrf.mxu1 }
  0xed   : > { %528 = vst [vmem:[%s984_s11 + $0x10] sm:$0xff] %v986_v24  ;;  %544 = vst [vmem:[%s984_s11 + $0x90] sm:$0xff] %v988_v25 }
  0xee   : > { %v994_v26 = vpop.f32.mrf.mxu0  ;;  %v996_v27 = vpop.f32.mrf.mxu1 }
  0xef   : > { %526 = vst [vmem:[%s984_s11] sm:$0xff] %v994_v26  ;;  %542 = vst [vmem:[%s984_s11 + $0x80] sm:$0xff] %v996_v27 }
  0xf0   : > { %v1002_v28 = vpop.f32.mrf.mxu0  ;;  %v1004_v29 = vpop.f32.mrf.mxu1 }
  0xf1   : > { %529 = vst [vmem:[%s984_s11 + $0x18] sm:$0xff] %v1002_v28  ;;  %545 = vst [vmem:[%s984_s11 + $0x98] sm:$0xff] %v1004_v29 }
  0xf2   : > { %v402_v30 = vpop.f32.mrf.mxu0  ;;  %v1010_v31 = vpop.f32.mrf.mxu1 }
  0xf3   : > { %527 = vst [vmem:[%s984_s11 + $0x8] sm:$0xff] %v402_v30  ;;  %543 = vst [vmem:[%s984_s11 + $0x88] sm:$0xff] %v1010_v31 }
  0xf4   : > { %v1015_v32 = vpop.f32.mrf.mxu0  ;;  %v1017_v33 = vpop.f32.mrf.mxu1 }
  0xf5   : > { %532 = vst [vmem:[%s984_s11 + $0x30] sm:$0xff] %v1015_v32  ;;  %548 = vst [vmem:[%s984_s11 + $0xb0] sm:$0xff] %v1017_v33 }
  0xf6   : > { %v415_v34 = vpop.f32.mrf.mxu0  ;;  %v1023_v35 = vpop.f32.mrf.mxu1 }
  0xf7   : > { %530 = vst [vmem:[%s984_s11 + $0x20] sm:$0xff] %v415_v34  ;;  %546 = vst [vmem:[%s984_s11 + $0xa0] sm:$0xff] %v1023_v35 }
  0xf8   : > { %v1028_v36 = vpop.f32.mrf.mxu0  ;;  %v1030_v37 = vpop.f32.mrf.mxu1 }
  0xf9   : > { %533 = vst [vmem:[%s984_s11 + $0x38] sm:$0xff] %v1028_v36  ;;  %549 = vst [vmem:[%s984_s11 + $0xb8] sm:$0xff] %v1030_v37 }
  0xfa   : > { %v418_v38 = vpop.f32.mrf.mxu0  ;;  %v1036_v39 = vpop.f32.mrf.mxu1 }
  0xfb   : > { %531 = vst [vmem:[%s984_s11 + $0x28] sm:$0xff] %v418_v38  ;;  %547 = vst [vmem:[%s984_s11 + $0xa8] sm:$0xff] %v1036_v39 }
  0xfc   : > { %v1041_v40 = vpop.f32.mrf.mxu0  ;;  %v1043_v41 = vpop.f32.mrf.mxu1 }
  0xfd   : > { %536 = vst [vmem:[%s984_s11 + $0x50] sm:$0xff] %v1041_v40  ;;  %552 = vst [vmem:[%s984_s11 + $0xd0] sm:$0xff] %v1043_v41 }
  0xfe   : > { %v431_v42 = vpop.f32.mrf.mxu0  ;;  %v1049_v43 = vpop.f32.mrf.mxu1 }
  0xff   : > { %534 = vst [vmem:[%s984_s11 + $0x40] sm:$0xff] %v431_v42  ;;  %550 = vst [vmem:[%s984_s11 + $0xc0] sm:$0xff] %v1049_v43 }
 0x100   : > { %v823_v44 = vpop.f32.mrf.mxu0  ;;  %v1054_v45 = vpop.f32.mrf.mxu1 }
 0x101   : > { %537 = vst [vmem:[%s984_s11 + $0x58] sm:$0xff] %v823_v44  ;;  %553 = vst [vmem:[%s984_s11 + $0xd8] sm:$0xff] %v1054_v45 }
 0x102   : > { %v434_v46 = vpop.f32.mrf.mxu0  ;;  %v1059_v47 = vpop.f32.mrf.mxu1 }
 0x103   : > { %535 = vst [vmem:[%s984_s11 + $0x48] sm:$0xff] %v434_v46  ;;  %551 = vst [vmem:[%s984_s11 + $0xc8] sm:$0xff] %v1059_v47 }
 0x104   : > { %v826_v48 = vpop.f32.mrf.mxu0  ;;  %v1064_v49 = vpop.f32.mrf.mxu1 }
 0x105   : > { %540 = vst [vmem:[%s984_s11 + $0x70] sm:$0xff] %v826_v48  ;;  %556 = vst [vmem:[%s984_s11 + $0xf0] sm:$0xff] %v1064_v49 }
 0x106   : > { %v447_v50 = vpop.f32.mrf.mxu0  ;;  %v1069_v51 = vpop.f32.mrf.mxu1 }
 0x107   : > { %538 = vst [vmem:[%s984_s11 + $0x60] sm:$0xff] %v447_v50  ;;  %554 = vst [vmem:[%s984_s11 + $0xe0] sm:$0xff] %v1069_v51  ;;  %561 = sbr.rel (%p769_p4) target bundleno = 270 (0x10e), region = 32 }
 0x108   : > { %v827_v52 = vpop.f32.mrf.mxu0  ;;  %v1074_v53 = vpop.f32.mrf.mxu1 }
 0x109   : > { %541 = vst [vmem:[%s984_s11 + $0x78] sm:$0xff] %v827_v52  ;;  %557 = vst [vmem:[%s984_s11 + $0xf8] sm:$0xff] %v1074_v53 }
 0x10a   : > { %v450_v54 = vpop.f32.mrf.mxu0  ;;  %v1079_v55 = vpop.f32.mrf.mxu1 }
 0x10b   : > { %539 = vst [vmem:[%s984_s11 + $0x68] sm:$0xff] %v450_v54  ;;  %555 = vst [vmem:[%s984_s11 + $0xe8] sm:$0xff] %v1079_v55 }
 0x10c   : > { %v901_v56 = vmov 0.0  }
 0x10d   : > { %562 = vst [vmem:[%s1167_s3] sm:$0x3] %v901_v56 }
 0x10e PF: > { %v564_v57 = vadd.f32 %v402_v30, %v994_v26  ;;  %v601_v60 = vmul.f32 %v994_v26, %v994_v26  ;;  %v602_v61 = vmul.f32 %v402_v30, %v402_v30  ;;  %v603_v63 = vmul.f32 %v986_v24, %v986_v24 }
 0x10f   : > { %v604_v1 = vmul.f32 %v1002_v28, %v1002_v28  ;;  %v605_v4 = vmul.f32 %v415_v34, %v415_v34  ;;  %v606_v7 = vmul.f32 %v418_v38, %v418_v38  ;;  %v607_v10 = vmul.f32 %v1015_v32, %v1015_v32 }
 0x110   : > { %v565_v58 = vadd.f32 %v986_v24, %v564_v57  ;;  %v633_v2 = vadd.f32 %v602_v61, %v601_v60  ;;  %v608_v13 = vmul.f32 %v1028_v36, %v1028_v36  ;;  %v609_v16 = vmul.f32 %v431_v42, %v431_v42 }
 0x111   : > { %v610_v19 = vmul.f32 %v434_v46, %v434_v46  ;;  %v611_v22 = vmul.f32 %v1041_v40, %v1041_v40  ;;  %v612_v26 = vmul.f32 %v823_v44, %v823_v44  ;;  %v615_v57 = vmul.f32 %v826_v48, %v826_v48 }
 0x112   : > { %v566_v59 = vadd.f32 %v1002_v28, %v565_v58  ;;  %v634_v5 = vadd.f32 %v633_v2, %v603_v63  ;;  %vm670_vm0 = vcmask 1040384  }
 0x114   : > { %v567_v62 = vadd.f32 %v566_v59, %v415_v34  ;;  %v635_v8 = vadd.f32 %v634_v5, %v604_v1  ;;  %v616_v59 = vmul.f32 %v827_v52, %v827_v52  ;;  %v620_v1 = vmul.f32 %v1004_v29, %v1004_v29 }
 0x115   : > { %v622_v5 = vmul.f32 %v1036_v39, %v1036_v39 }
 0x116   : > { %v568_v0 = vadd.f32 %v567_v62, %v418_v38  ;;  %v636_v11 = vadd.f32 %v635_v8, %v605_v4  ;;  %v614_v38 = vmul.f32 %v450_v54, %v450_v54 }
 0x118   : > { %v569_v3 = vadd.f32 %v1015_v32, %v568_v0  ;;  %v637_v14 = vadd.f32 %v636_v11, %v606_v7  ;;  %v613_v32 = vmul.f32 %v447_v50, %v447_v50  ;;  %v623_v7 = vmul.f32 %v1017_v33, %v1017_v33 }
 0x119   : > { %v625_v11 = vmul.f32 %v1049_v43, %v1049_v43 }
 0x11a   : > { %v570_v6 = vadd.f32 %v1028_v36, %v569_v3  ;;  %v638_v17 = vadd.f32 %v637_v14, %v607_v10  ;;  %v621_v3 = vmul.f32 %v1023_v35, %v1023_v35 }
 0x11c   : > { %v571_v9 = vadd.f32 %v570_v6, %v431_v42  ;;  %v639_v20 = vadd.f32 %v638_v17, %v608_v13  ;;  %v626_v13 = vmul.f32 %v1059_v47, %v1059_v47  ;;  %v628_v17 = vmul.f32 %v1054_v45, %v1054_v45 }
 0x11e   : > { %v572_v12 = vadd.f32 %v571_v9, %v434_v46  ;;  %v640_v23 = vadd.f32 %v639_v20, %v609_v16  ;;  %v624_v9 = vmul.f32 %v1030_v37, %v1030_v37 }
 0x120   : > { %v573_v15 = vadd.f32 %v1041_v40, %v572_v12  ;;  %v641_v28 = vadd.f32 %v640_v23, %v610_v19  ;;  %v629_v19 = vmul.f32 %v1069_v51, %v1069_v51  ;;  %v631_v23 = vmul.f32 %v1064_v49, %v1064_v49 }
 0x122   : > { %v574_v18 = vadd.f32 %v823_v44, %v573_v15  ;;  %v642_v34 = vadd.f32 %v641_v28, %v611_v22  ;;  %v617_v44 = vmul.f32 %v996_v27, %v996_v27  ;;  %v627_v15 = vmul.f32 %v1043_v41, %v1043_v41 }
 0x124   : > { %v575_v21 = vadd.f32 %v574_v18, %v447_v50  ;;  %v643_v56 = vadd.f32 %v642_v34, %v612_v26 }
 0x126   : > { %v576_v24 = vadd.f32 %v575_v21, %v450_v54  ;;  %v644_v58 = vadd.f32 %v643_v56, %v613_v32  ;;  %v618_v54 = vmul.f32 %v1010_v31, %v1010_v31  ;;  %v630_v21 = vmul.f32 %v1079_v55, %v1079_v55 }
 0x128   : > { %v577_v30 = vadd.f32 %v826_v48, %v576_v24  ;;  %v645_v60 = vadd.f32 %v644_v58, %v614_v38  ;;  %v619_v48 = vmul.f32 %v988_v25, %v988_v25 }
 0x12a   : > { %v578_v36 = vadd.f32 %v827_v52, %v577_v30  ;;  %v646_v61 = vadd.f32 %v645_v60, %v615_v57 }
 0x12c   : > { %v579_v42 = vadd.f32 %v578_v36, %v996_v27  ;;  %v647_v62 = vadd.f32 %v646_v61, %v616_v59 }
 0x12e   : > { %v580_v46 = vadd.f32 %v579_v42, %v1010_v31  ;;  %v648_v0 = vadd.f32 %v647_v62, %v617_v44 }
 0x130   : > { %v581_v40 = vadd.f32 %v988_v25, %v580_v46  ;;  %v649_v2 = vadd.f32 %v648_v0, %v618_v54 }
 0x132   : > { %v582_v50 = vadd.f32 %v1004_v29, %v581_v40  ;;  %v650_v4 = vadd.f32 %v649_v2, %v619_v48 }
 0x134   : > { %v583_v63 = vadd.f32 %v582_v50, %v1023_v35  ;;  %v651_v6 = vadd.f32 %v650_v4, %v620_v1 }
 0x136   : > { %v584_v52 = vadd.f32 %v583_v63, %v1036_v39  ;;  %v652_v8 = vadd.f32 %v651_v6, %v621_v3 }
 0x138   : > { %v585_v27 = vadd.f32 %v1017_v33, %v584_v52  ;;  %v653_v10 = vadd.f32 %v652_v8, %v622_v5 }
 0x13a   : > { %v586_v31 = vadd.f32 %v1030_v37, %v585_v27  ;;  %v654_v12 = vadd.f32 %v653_v10, %v623_v7 }
 0x13c   : > { %v587_v25 = vadd.f32 %v586_v31, %v1049_v43  ;;  %v655_v14 = vadd.f32 %v654_v12, %v624_v9 }
 0x13e   : > { %v588_v29 = vadd.f32 %v587_v25, %v1059_v47  ;;  %v656_v16 = vadd.f32 %v655_v14, %v625_v11 }
 0x140   : > { %v589_v35 = vadd.f32 %v1043_v41, %v588_v29  ;;  %v657_v18 = vadd.f32 %v656_v16, %v626_v13 }
 0x142   : > { %v590_v39 = vadd.f32 %v1054_v45, %v589_v35  ;;  %v658_v20 = vadd.f32 %v657_v18, %v627_v15  ;;  %v632_v45 = vmul.f32 %v1074_v53, %v1074_v53 }
 0x144   : > { %v591_v33 = vadd.f32 %v590_v39, %v1069_v51  ;;  %v659_v22 = vadd.f32 %v658_v20, %v628_v17 }
 0x146   : > { %v592_v37 = vadd.f32 %v591_v33, %v1079_v55  ;;  %v660_v24 = vadd.f32 %v659_v22, %v629_v19 }
 0x148   : > { %v593_v43 = vadd.f32 %v1064_v49, %v592_v37  ;;  %v661_v28 = vadd.f32 %v660_v24, %v630_v21  ;;  %v563_v49 = vld [vmem:[%s1167_s3] sm:$0x3] }
 0x14a   : > { %v594_v47 = vadd.f32 %v1074_v53, %v593_v43  ;;  %v662_v32 = vadd.f32 %v661_v28, %v631_v23 }
 0x14c   : > { %v595_v41 = vrot.slane %v594_v47, 4  ;;  %v663_v51 = vadd.f32 %v662_v32, %v632_v45 }
 0x14e   : > { %v596_v26 = vadd.f32 %v595_v41, %v594_v47  ;;  %v664_v36 = vrot.slane %v663_v51, 4 }
 0x150   : > { %v597_v30 = vrot.slane %v596_v26, 2  ;;  %v665_v38 = vadd.f32 %v664_v36, %v663_v51 }
 0x152   : > { %v598_v34 = vadd.f32 %v597_v30, %v596_v26  ;;  %v666_v42 = vrot.slane %v665_v38, 2 }
 0x154   : > { %v599_v56 = vrot.slane %v598_v34, 1  ;;  %v667_v55 = vadd.f32 %v666_v42, %v665_v38 }
 0x156   : > { %v600_v57 = vadd.f32 %v599_v56, %v598_v34  ;;  %v668_v58 = vrot.slane %v667_v55, 1 }
 0x158   : > { %v669_v46 = vadd.f32 %v668_v58, %v667_v55 }
 0x15a   : > { %v671_v59 = vsel %vm670_vm0, %v600_v57, %v669_v46 }
 0x15b   : > { %v672_v53 = vadd.f32 %v671_v59, %v563_v49 }
 0x15d   : > { %673 = vst [vmem:[%s1167_s3] sm:$0x3] %v672_v53 }
 0x15e PF: > { %s14_s12 = sadd.s32 1, %s899_s12  }
 0x15f   : > { %p11_p5 = scmp.ge.s32.totalorder %s14_s12, 4  }
 0x161   :  { %13 = sbr.rel (!%p11_p5) target bundleno = 1 (0x1), region = 70 }

// kernel: bottleneck_forward.11
= control target key start
LH: loop header
LB: loop body
LE: loop exit
PB: predicated region body
PF: predicated region fallthrough
CT: control target
= control target key end

     0   :  { %v291_v7 = vmov 1966171168   ;;  %v32_v9 = vlaneseq  ;;  %s416_s1 = inlined_call_operand.vmem [shape: f32[2,128], index: 1, kind: input, shape index: {}]   ;;  %s417_s2 = inlined_call_operand.vmem [shape: f32[1,128], index: 2, kind: input, shape index: {}]   ;;  %s418_s0 = inlined_call_operand.vmem [shape: f32[128,128], index: 0, kind: input, shape index: {}]   ;;  %s419_s3 = inlined_call_operand.vmem [shape: f32[1,128], index: 3, kind: input, shape index: {}]   ;;  %s420_s4 = inlined_call_operand.vmem [shape: bf16[128,128], index: 4, kind: output, shape index: {}]  }
   0x1   :  { %v17_v0 = vld [vmem:[%s416_s1] sm:$0x3]  ;;  %v30_v8 = vunpack.c.l.s4 %v291_v7  ;;  %v50_v22 = vld [vmem:[%s418_s0 + $0x8] sm:$0xff]  ;;  %v51_v23 = vld [vmem:[%s418_s0 + $0x10] sm:$0xff] }
   0x2   :  { %v18_v1 = vmul.f32 0.0078125, %v17_v0  ;;  %v33_v11 = vshrl.u32 %v32_v9, 7  ;;  %v25_v16 = vld [vmem:[%s417_s2] sm:$0x1]  ;;  %v52_v24 = vld [vmem:[%s418_s0 + $0x18] sm:$0xff]  ;;  %v54_v28 = vld [vmem:[%s418_s0 + $0x28] sm:$0xff] }
   0x3   :  { %v31_v10 = vunpack.c.0.s8 %v30_v8  ;;  %v46_v20 = vld [vmem:[%s419_s3] sm:$0x1]  ;;  %v55_v29 = vld [vmem:[%s418_s0 + $0x30] sm:$0xff]  ;;  %v56_v30 = vld [vmem:[%s418_s0 + $0x38] sm:$0xff] }
   0x4   :  { %v19_v2 = vmul.f32 %v18_v1, %v18_v1  ;;  %v68_v18 = vsub.s32 0, %v33_v11  ;;  %v49_v21 = vld [vmem:[%s418_s0] sm:$0xff]  ;;  %v58_v32 = vld [vmem:[%s418_s0 + $0x48] sm:$0xff]  ;;  %v59_v33 = vld [vmem:[%s418_s0 + $0x50] sm:$0xff] }
   0x5   :  { %v34_v12 = vsub.s32 %v31_v10, %v33_v11  ;;  %v53_v25 = vld [vmem:[%s418_s0 + $0x20] sm:$0xff]  ;;  %v60_v38 = vld [vmem:[%s418_s0 + $0x58] sm:$0xff]  ;;  %v62_v40 = vld [vmem:[%s418_s0 + $0x68] sm:$0xff] }
   0x6   :  { %v21_v3 = vrot.slane %v19_v2, 7  ;;  %v57_v31 = vld [vmem:[%s418_s0 + $0x40] sm:$0xff]  ;;  %v63_v9 = vld [vmem:[%s418_s0 + $0x70] sm:$0xff]  ;;  %v64_v10 = vld [vmem:[%s418_s0 + $0x78] sm:$0xff] }
   0x7   :  { %v61_v39 = vld [vmem:[%s418_s0 + $0x60] sm:$0xff] }
   0x8   :  { %v23_v4 = vsub.f32 %v18_v1, %v21_v3 }
   0xa   :  { %v24_v5 = vmax.f32 %v23_v4, 0.0 }
   0xc   :  { %v26_v6 = vadd.f32 1e-05, %v24_v5 }
   0xe   :  { %289 = vrsqrt.f32 %v26_v6 }
  0x1b   :  { %v290_v13 = vpop.eup %289 }
  0x1c   :  { %v35_v14 = vrot.slane %v290_v13, %v34_v12 }
  0x1e   :  { %v36_v15 = vcombine.high %v35_v14, %v35_v14 }
  0x20   :  { %v43_v17 = vrot.slane %v36_v15, %v34_v12 }
  0x22   :  { %v45_v19 = vmul.f32 %v43_v17, %v25_v16 }
  0x24   :  { %v47_v26 = vmul.f32 %v45_v19, %v18_v1  ;;  %v341_v27 = vrot.slane %v45_v19, %v68_v18 }
  0x26   :  { %v48_v34 = vsub.f32 %v46_v20, %v47_v26  ;;  %v71_v35 = vmul.f32 %v341_v27, %v49_v21  ;;  %v72_v36 = vmul.f32 %v341_v27, %v50_v22  ;;  %v73_v37 = vmul.f32 %v341_v27, %v51_v23 }
  0x27   :  { %v74_v41 = vmul.f32 %v341_v27, %v52_v24  ;;  %v75_v42 = vmul.f32 %v341_v27, %v53_v25  ;;  %v76_v43 = vmul.f32 %v341_v27, %v54_v28  ;;  %v77_v44 = vmul.f32 %v341_v27, %v55_v29 }
  0x28   :  { %v91_v45 = vrot.slane %v48_v34, %v68_v18  ;;  %v78_v46 = vmul.f32 %v341_v27, %v56_v30  ;;  %v79_v47 = vmul.f32 %v341_v27, %v57_v31  ;;  %v80_v48 = vmul.f32 %v341_v27, %v58_v32 }
  0x29   :  { %v81_v49 = vmul.f32 %v341_v27, %v59_v33  ;;  %v82_v50 = vmul.f32 %v341_v27, %v60_v38  ;;  %v83_v51 = vmul.f32 %v341_v27, %v61_v39  ;;  %v84_v52 = vmul.f32 %v341_v27, %v62_v40 }
  0x2a   :  { %v93_v53 = vadd.f32 %v91_v45, %v71_v35  ;;  %v94_v54 = vadd.f32 %v91_v45, %v72_v36  ;;  %v95_v55 = vadd.f32 %v91_v45, %v73_v37  ;;  %v96_v56 = vadd.f32 %v91_v45, %v74_v41 }
  0x2b   :  { %v97_v57 = vadd.f32 %v91_v45, %v75_v42  ;;  %v98_v58 = vadd.f32 %v91_v45, %v76_v43  ;;  %v99_v59 = vadd.f32 %v91_v45, %v77_v44  ;;  %v100_v60 = vadd.f32 %v91_v45, %v78_v46 }
  0x2c   :  { %v109_v61 = vmax.f32 %v93_v53, 0.0  ;;  %v110_v62 = vmax.f32 %v94_v54, 0.0  ;;  %v111_v63 = vmax.f32 %v95_v55, 0.0  ;;  %v112_v0 = vmax.f32 %v96_v56, 0.0 }
  0x2d   :  { %v113_v1 = vmax.f32 %v97_v57, 0.0  ;;  %v114_v2 = vmax.f32 %v98_v58, 0.0  ;;  %v115_v3 = vmax.f32 %v99_v59, 0.0  ;;  %v116_v4 = vmax.f32 %v100_v60, 0.0 }
  0x2e   :  { %v244_v5 = vpack.c.bf16 %v110_v62, %v109_v61  ;;  %v249_v6 = vpack.c.bf16 %v112_v0, %v111_v63  ;;  %v101_v7 = vadd.f32 %v91_v45, %v79_v47  ;;  %v102_v8 = vadd.f32 %v91_v45, %v80_v48 }
  0x2f   :  { %v254_v11 = vpack.c.bf16 %v114_v2, %v113_v1  ;;  %v259_v12 = vpack.c.bf16 %v116_v4, %v115_v3  ;;  %v103_v13 = vadd.f32 %v91_v45, %v81_v49  ;;  %v104_v14 = vadd.f32 %v91_v45, %v82_v50 }
  0x30   :  { %245 = vst [vmem:[%s420_s4] sm:$0xff] %v244_v5   ;;  %281 = vst [vmem:[%s420_s4 + $0x8] sm:$0xff] %v249_v6   ;;  %v117_v15 = vmax.f32 %v101_v7, 0.0  ;;  %v118_v16 = vmax.f32 %v102_v8, 0.0  ;;  %v105_v17 = vadd.f32 %v91_v45, %v83_v51  ;;  %v106_v18 = vadd.f32 %v91_v45, %v84_v52 }
  0x31   :  { %282 = vst [vmem:[%s420_s4 + $0x10] sm:$0xff] %v254_v11   ;;  %283 = vst [vmem:[%s420_s4 + $0x18] sm:$0xff] %v259_v12   ;;  %v119_v19 = vmax.f32 %v103_v13, 0.0  ;;  %v120_v20 = vmax.f32 %v104_v14, 0.0  ;;  %v85_v21 = vmul.f32 %v341_v27, %v63_v9  ;;  %v86_v22 = vmul.f32 %v341_v27, %v64_v10 }
  0x32   :  { %v264_v23 = vpack.c.bf16 %v118_v16, %v117_v15  ;;  %v121_v24 = vmax.f32 %v105_v17, 0.0  ;;  %v122_v25 = vmax.f32 %v106_v18, 0.0 }
  0x33   :  { %v269_v26 = vpack.c.bf16 %v120_v20, %v119_v19  ;;  %v107_v28 = vadd.f32 %v91_v45, %v85_v21  ;;  %v108_v29 = vadd.f32 %v91_v45, %v86_v22 }
  0x34   :  { %284 = vst [vmem:[%s420_s4 + $0x20] sm:$0xff] %v264_v23   ;;  %v274_v30 = vpack.c.bf16 %v122_v25, %v121_v24 }
  0x35   :  { %285 = vst [vmem:[%s420_s4 + $0x28] sm:$0xff] %v269_v26   ;;  %v123_v31 = vmax.f32 %v107_v28, 0.0  ;;  %v124_v32 = vmax.f32 %v108_v29, 0.0 }
  0x36   :  { %286 = vst [vmem:[%s420_s4 + $0x30] sm:$0xff] %v274_v30  }
  0x37   :  { %v279_v27 = vpack.c.bf16 %v124_v32, %v123_v31 }
  0x39   :  { %287 = vst [vmem:[%s420_s4 + $0x38] sm:$0xff] %v279_v27  }

// kernel: bottleneck_forward.14
= control target key start
LH: loop header
LB: loop body
LE: loop exit
PB: predicated region body
PF: predicated region fallthrough
CT: control target
= control target key end

     0   :  { %v428_v16 = vmov 0.0   ;;  %vm319_vm0 = vcmask 1040384   ;;  %s554_s1 = inlined_call_operand.vmem [shape: bf16[128,128], index: 1, kind: input, shape index: {}]   ;;  %s555_s0 = inlined_call_operand.vmem [shape: bf16[128,128], index: 0, kind: input, shape index: {}]   ;;  %s556_s3 = inlined_call_operand.vmem [shape: f32[2,128], index: 3, kind: output, shape index: {1}]   ;;  %s557_s2 = inlined_call_operand.vmem [shape: f32[128,128], index: 2, kind: output, shape index: {0}]  }
   0x1   :  { %v412_v0 = vld [vmem:[%s554_s1 + $0x38] sm:$0xff]   ;;  %v413_v1 = vld [vmem:[%s554_s1 + $0x30] sm:$0xff]   ;;  %v414_v2 = vld [vmem:[%s554_s1 + $0x28] sm:$0xff]   ;;  %259 = vst [vmem:[%s556_s3] sm:$0x3] %v428_v16 }
   0x2   :  { %363 = vmatprep.subr.bf16.mxu0 %v412_v0  ;;  %395 = vmatprep.subr.bf16.mxu1 %v412_v0  ;;  %v415_v3 = vld [vmem:[%s554_s1 + $0x20] sm:$0xff]   ;;  %v416_v5 = vld [vmem:[%s554_s1 + $0x18] sm:$0xff]   ;;  %v417_v7 = vld [vmem:[%s554_s1 + $0x10] sm:$0xff]  }
   0x3   :  { %364 = vmatpush3.bf16.msra.mxu0 %v412_v0  ;;  %403 = vmatpush3.bf16.msra.mxu1 %v412_v0  ;;  %v420_v4 = vld [vmem:[%s555_s0] sm:$0xff]   ;;  %v418_v8 = vld [vmem:[%s554_s1 + $0x8] sm:$0xff]   ;;  %v422_v12 = vld [vmem:[%s555_s0 + $0x10] sm:$0xff]  }
   0x4   :  { %365 = vmatprep.subr.bf16.mxu0 %v413_v1  ;;  %396 = vmatprep.subr.bf16.mxu1 %v413_v1  ;;  %v424_v6 = vld [vmem:[%s555_s0 + $0x20] sm:$0xff]   ;;  %v421_v10 = vld [vmem:[%s555_s0 + $0x8] sm:$0xff]   ;;  %v426_v13 = vld [vmem:[%s555_s0 + $0x30] sm:$0xff]  }
   0x5   :  { %379 = vmatprep.mubr.bf16.mxu0 %v420_v4  ;;  %387 = vmatprep.mubr.bf16.mxu1 %v424_v6  ;;  %v419_v9 = vld [vmem:[%s554_s1] sm:$0xff]   ;;  %v425_v11 = vld [vmem:[%s555_s0 + $0x28] sm:$0xff]   ;;  %v423_v14 = vld [vmem:[%s555_s0 + $0x18] sm:$0xff]  }
   0x6   :  { %v427_v15 = vld [vmem:[%s555_s0 + $0x38] sm:$0xff]  }
   0x7   :  { %366 = vmatpush3.bf16.msra.mxu0 %v413_v1  ;;  %404 = vmatpush3.bf16.msra.mxu1 %v413_v1 }
   0x8   :  { %367 = vmatprep.subr.bf16.mxu0 %v414_v2  ;;  %397 = vmatprep.subr.bf16.mxu1 %v414_v2 }
   0xb   :  { %368 = vmatpush3.bf16.msra.mxu0 %v414_v2  ;;  %405 = vmatpush3.bf16.msra.mxu1 %v414_v2 }
   0xc   :  { %369 = vmatprep.subr.bf16.mxu0 %v415_v3  ;;  %398 = vmatprep.subr.bf16.mxu1 %v415_v3 }
   0xf   :  { %370 = vmatpush3.bf16.msra.mxu0 %v415_v3  ;;  %406 = vmatpush3.bf16.msra.mxu1 %v415_v3 }
  0x10   :  { %371 = vmatprep.subr.bf16.mxu0 %v416_v5  ;;  %399 = vmatprep.subr.bf16.mxu1 %v416_v5 }
  0x13   :  { %372 = vmatpush3.bf16.msra.mxu0 %v416_v5  ;;  %407 = vmatpush3.bf16.msra.mxu1 %v416_v5 }
  0x14   :  { %373 = vmatprep.subr.bf16.mxu0 %v417_v7  ;;  %400 = vmatprep.subr.bf16.mxu1 %v417_v7 }
  0x17   :  { %374 = vmatpush3.bf16.msra.mxu0 %v417_v7  ;;  %408 = vmatpush3.bf16.msra.mxu1 %v417_v7 }
  0x18   :  { %375 = vmatprep.subr.bf16.mxu0 %v418_v8  ;;  %401 = vmatprep.subr.bf16.mxu1 %v418_v8 }
  0x1b   :  { %376 = vmatpush3.bf16.msra.mxu0 %v418_v8  ;;  %409 = vmatpush3.bf16.msra.mxu1 %v418_v8 }
  0x1c   :  { %377 = vmatprep.subr.bf16.mxu0 %v419_v9  ;;  %402 = vmatprep.subr.bf16.mxu1 %v419_v9 }
  0x1f   :  { %378 = vmatpush3.bf16.msra.mxu0 %v419_v9  ;;  %410 = vmatpush3.bf16.msra.mxu1 %v419_v9 }
  0x22   :  { %380 = vmatmul.mubr.bf16.vlgmr.msra.gmra.mxu0 %v421_v10  ;;  %388 = vmatmul.mubr.bf16.vlgmr.msra.gmra.mxu1 %v425_v11 }
  0x23   :  { %383 = vmatprep.mubr.bf16.mxu0 %v422_v12  ;;  %391 = vmatprep.mubr.bf16.mxu1 %v426_v13 }
  0x2a   :  { %384 = vmatmul.mubr.bf16.gmra.mxu0 %v423_v14  ;;  %392 = vmatmul.mubr.bf16.gmra.mxu1 %v427_v15 }
  0xe2   :  { %v381_v17 = vpop.f32.mrf.mxu0  ;;  %v389_v18 = vpop.f32.mrf.mxu1 }
  0xe3   :  { %241 = vst [vmem:[%s557_s2 + $0x10] sm:$0xff] %v381_v17  ;;  %249 = vst [vmem:[%s557_s2 + $0x50] sm:$0xff] %v389_v18  ;;  %v284_v30 = vmul.f32 %v381_v17, %v381_v17  ;;  %v292_v60 = vmul.f32 %v389_v18, %v389_v18 }
  0xe4   :  { %v176_v19 = vpop.f32.mrf.mxu0  ;;  %v208_v20 = vpop.f32.mrf.mxu1 }
  0xe5   :  { %239 = vst [vmem:[%s557_s2] sm:$0xff] %v176_v19  ;;  %247 = vst [vmem:[%s557_s2 + $0x40] sm:$0xff] %v208_v20  ;;  %v282_v25 = vmul.f32 %v176_v19, %v176_v19  ;;  %v290_v54 = vmul.f32 %v208_v20, %v208_v20 }
  0xe6   :  { %v382_v21 = vpop.f32.mrf.mxu0  ;;  %v390_v22 = vpop.f32.mrf.mxu1 }
  0xe7   :  { %242 = vst [vmem:[%s557_s2 + $0x18] sm:$0xff] %v382_v21  ;;  %250 = vst [vmem:[%s557_s2 + $0x58] sm:$0xff] %v390_v22  ;;  %v285_v35 = vmul.f32 %v382_v21, %v382_v21  ;;  %v293_v63 = vmul.f32 %v390_v22, %v390_v22 }
  0xe8   :  { %v179_v23 = vpop.f32.mrf.mxu0  ;;  %v211_v24 = vpop.f32.mrf.mxu1 }
  0xe9   :  { %240 = vst [vmem:[%s557_s2 + $0x8] sm:$0xff] %v179_v23  ;;  %v261_v26 = vadd.f32 %v179_v23, %v176_v19  ;;  %v283_v27 = vmul.f32 %v179_v23, %v179_v23  ;;  %248 = vst [vmem:[%s557_s2 + $0x48] sm:$0xff] %v211_v24  ;;  %v291_v58 = vmul.f32 %v211_v24, %v211_v24 }
  0xea   :  { %v385_v28 = vpop.f32.mrf.mxu0  ;;  %v393_v29 = vpop.f32.mrf.mxu1 }
  0xeb   :  { %v262_v31 = vadd.f32 %v381_v17, %v261_v26  ;;  %v298_v32 = vadd.f32 %v283_v27, %v282_v25  ;;  %245 = vst [vmem:[%s557_s2 + $0x30] sm:$0xff] %v385_v28  ;;  %253 = vst [vmem:[%s557_s2 + $0x70] sm:$0xff] %v393_v29  ;;  %v288_v48 = vmul.f32 %v385_v28, %v385_v28  ;;  %v260_v25 = vld [vmem:[%s556_s3] sm:$0x3] }
  0xec   :  { %v192_v33 = vpop.f32.mrf.mxu0  ;;  %v224_v34 = vpop.f32.mrf.mxu1  ;;  %v296_v8 = vmul.f32 %v393_v29, %v393_v29 }
  0xed   :  { %v299_v36 = vadd.f32 %v298_v32, %v284_v30  ;;  %243 = vst [vmem:[%s557_s2 + $0x20] sm:$0xff] %v192_v33  ;;  %v263_v37 = vadd.f32 %v382_v21, %v262_v31  ;;  %251 = vst [vmem:[%s557_s2 + $0x60] sm:$0xff] %v224_v34  ;;  %v286_v41 = vmul.f32 %v192_v33, %v192_v33 }
  0xee   :  { %v386_v38 = vpop.f32.mrf.mxu0  ;;  %v394_v39 = vpop.f32.mrf.mxu1  ;;  %v294_v3 = vmul.f32 %v224_v34, %v224_v34 }
  0xef   :  { %v264_v40 = vadd.f32 %v263_v37, %v192_v33  ;;  %v300_v42 = vadd.f32 %v299_v36, %v285_v35  ;;  %246 = vst [vmem:[%s557_s2 + $0x38] sm:$0xff] %v386_v38  ;;  %254 = vst [vmem:[%s557_s2 + $0x78] sm:$0xff] %v394_v39  ;;  %v289_v51 = vmul.f32 %v386_v38, %v386_v38 }
  0xf0   :  { %v195_v43 = vpop.f32.mrf.mxu0  ;;  %v227_v44 = vpop.f32.mrf.mxu1  ;;  %v297_v11 = vmul.f32 %v394_v39, %v394_v39 }
  0xf1   :  { %v301_v45 = vadd.f32 %v300_v42, %v286_v41  ;;  %244 = vst [vmem:[%s557_s2 + $0x28] sm:$0xff] %v195_v43  ;;  %v265_v46 = vadd.f32 %v264_v40, %v195_v43  ;;  %v287_v47 = vmul.f32 %v195_v43, %v195_v43  ;;  %252 = vst [vmem:[%s557_s2 + $0x68] sm:$0xff] %v227_v44 }
  0xf2   :  { %v295_v7 = vmul.f32 %v227_v44, %v227_v44 }
  0xf3   :  { %v266_v49 = vadd.f32 %v385_v28, %v265_v46  ;;  %v302_v50 = vadd.f32 %v301_v45, %v287_v47 }
  0xf5   :  { %v267_v52 = vadd.f32 %v386_v38, %v266_v49  ;;  %v303_v53 = vadd.f32 %v302_v50, %v288_v48 }
  0xf7   :  { %v304_v55 = vadd.f32 %v303_v53, %v289_v51  ;;  %v268_v56 = vadd.f32 %v267_v52, %v208_v20 }
  0xf9   :  { %v269_v57 = vadd.f32 %v268_v56, %v211_v24  ;;  %v305_v59 = vadd.f32 %v304_v55, %v290_v54 }
  0xfb   :  { %v270_v61 = vadd.f32 %v389_v18, %v269_v57  ;;  %v306_v62 = vadd.f32 %v305_v59, %v291_v58 }
  0xfd   :  { %v307_v0 = vadd.f32 %v306_v62, %v292_v60  ;;  %v271_v1 = vadd.f32 %v390_v22, %v270_v61 }
  0xff   :  { %v272_v2 = vadd.f32 %v271_v1, %v224_v34  ;;  %v308_v4 = vadd.f32 %v307_v0, %v293_v63 }
 0x101   :  { %v309_v5 = vadd.f32 %v308_v4, %v294_v3  ;;  %v273_v6 = vadd.f32 %v272_v2, %v227_v44 }
 0x103   :  { %v274_v9 = vadd.f32 %v393_v29, %v273_v6  ;;  %v310_v10 = vadd.f32 %v309_v5, %v295_v7 }
 0x105   :  { %v275_v12 = vadd.f32 %v394_v39, %v274_v9  ;;  %v311_v13 = vadd.f32 %v310_v10, %v296_v8 }
 0x107   :  { %v276_v14 = vrot.slane %v275_v12, 4  ;;  %v312_v15 = vadd.f32 %v311_v13, %v297_v11 }
 0x109   :  { %v277_v16 = vadd.f32 %v276_v14, %v275_v12  ;;  %v313_v17 = vrot.slane %v312_v15, 4 }
 0x10b   :  { %v278_v18 = vrot.slane %v277_v16, 2  ;;  %v314_v19 = vadd.f32 %v313_v17, %v312_v15 }
 0x10d   :  { %v279_v20 = vadd.f32 %v278_v18, %v277_v16  ;;  %v315_v21 = vrot.slane %v314_v19, 2 }
 0x10f   :  { %v280_v22 = vrot.slane %v279_v20, 1  ;;  %v316_v23 = vadd.f32 %v315_v21, %v314_v19 }
 0x111   :  { %v317_v24 = vrot.slane %v316_v23, 1  ;;  %v281_v26 = vadd.f32 %v280_v22, %v279_v20 }
 0x113   :  { %v318_v27 = vadd.f32 %v317_v24, %v316_v23 }
 0x115   :  { %v320_v28 = vsel %vm319_vm0, %v281_v26, %v318_v27 }
 0x116   :  { %v321_v29 = vadd.f32 %v320_v28, %v260_v25 }
 0x118   :  { %322 = vst [vmem:[%s556_s3] sm:$0x3] %v321_v29 }

// kernel: bottleneck_forward.10
= control target key start
LH: loop header
LB: loop body
LE: loop exit
PB: predicated region body
PF: predicated region fallthrough
CT: control target
= control target key end

     0   :  { %s3087_s21 = smov 0   ;;  %s3512_s0 = inlined_call_operand.vmem [shape: bf16[2,10,10,128], index: 0, kind: input, shape index: {}]   ;;  %s3513_s1 = inlined_call_operand.vmem [shape: bf16[2,10,10,128], index: 1, kind: input, shape index: {}]   ;;  %s3514_s2 = inlined_call_operand.vmem [shape: bf16[2,10,10,128], index: 2, kind: input, shape index: {}]   ;;  %s3515_s3 = inlined_call_operand.vmem [shape: bf16[2,10,10,128], index: 3, kind: input, shape index: {}]   ;;  %s3516_s4 = inlined_call_operand.vmem [shape: bf16[9,128,128], index: 4, kind: input, shape index: {}]   ;;  %s3517_s5 = inlined_call_operand.vmem [shape: f32[2,64,128], index: 5, kind: output, shape index: {0}]   ;;  %s3518_s6 = inlined_call_operand.vmem [shape: f32[2,128], index: 6, kind: output, shape index: {1}]  }
   0x1 LB: > { %s3093_s22 = sadd.s32 4294967295, %s3049_s21   ;;  %p2318_p0 = scmp.ge.s32.totalorder %s3049_s21, 1  ;;  %s3049_s21 = sphi %s3087_s21, %s17_s21  }
   0x2   : > { %p240_p1 = scmp.lt.s32.totalorder %s3049_s21, 3 }
   0x4   : > { %p241_p2 = pnand %p2318_p0, %p240_p1 }
   0x6   : > { %244 = sbr.rel (%p241_p2) target bundleno = 409 (0x199), region = 40 }
   0xb   : > { %v2947_v0 = vld [vmem:[%s3516_s4 + $0x78] sm:$0xff]   ;;  %p285_p3 = scmp.lt.s32.totalorder %s3093_s22, 1  ;;  %v2949_v2 = vld [vmem:[%s3516_s4 + $0x70] sm:$0xff]   ;;  %v2951_v4 = vld [vmem:[%s3516_s4 + $0x68] sm:$0xff]   ;;  %vm650_vm0 = vsmask.f32 3328 }
   0xc   : > { %v2948_v1 = vld [vmem:[%s3516_s4 + $0x38] sm:$0xff]   ;;  %2705 = vmatprep.subr.bf16.mxu0 %v2947_v0  ;;  %v2950_v3 = vld [vmem:[%s3516_s4 + $0x30] sm:$0xff]   ;;  %v2952_v5 = vld [vmem:[%s3516_s4 + $0x28] sm:$0xff]   ;;  %vm651_vm1 = vsmask.f32 7440  ;;  %p2593_p4 = scmp.ne.s32.totalorder %s3093_s22, 0 }
   0xd   : > { %2729 = vmatprep.subr.bf16.mxu1 %v2948_v1  ;;  %2706 = vmatpush3.bf16.msra.mxu0 %v2947_v0  ;;  %s3117_s11 = scalar_select %p285_p3, %s3093_s22, 1  ;;  %v2953_v6 = vld [vmem:[%s3516_s4 + $0x60] sm:$0xff]   ;;  %v2955_v8 = vld [vmem:[%s3516_s4 + $0x58] sm:$0xff]   ;;  %v2957_v10 = vld [vmem:[%s3516_s4 + $0x50] sm:$0xff]  }
   0xe   : > { %2730 = vmatpush3.bf16.msra.mxu1 %v2948_v1  ;;  %2707 = vmatprep.subr.bf16.mxu0 %v2949_v2  ;;  %v2954_v7 = vld [vmem:[%s3516_s4 + $0x20] sm:$0xff]   ;;  %v2956_v9 = vld [vmem:[%s3516_s4 + $0x18] sm:$0xff]   ;;  %v2958_v11 = vld [vmem:[%s3516_s4 + $0x10] sm:$0xff]  }
   0xf   : > { %2731 = vmatprep.subr.bf16.mxu1 %v2950_v3  ;;  %s3126_s16 = smul.u32 80, %s3117_s11  ;;  %v2959_v14 = vld [vmem:[%s3516_s4 + $0x48] sm:$0xff]   ;;  %v2961_v16 = vld [vmem:[%s3516_s4 + $0x40] sm:$0xff]   ;;  %v2967_v19 = vld [vmem:[%s3516_s4 + $0xb8] sm:$0xff]   ;;  %s2596_s29 = sshll.u32 %s3117_s11, 6 }
  0x10   : > { %v2960_v15 = vld [vmem:[%s3516_s4 + $0x8] sm:$0xff]   ;;  %v2962_v17 = vld [vmem:[%s3516_s4] sm:$0xff]   ;;  %v2968_v20 = vld [vmem:[%s3516_s4 + $0xf8] sm:$0xff]   ;;  %s3486_s9 = scalar_lea.vmem %s3517_s5, %s2596_s29 }
  0x11   : > { %2708 = vmatpush3.bf16.msra.mxu0 %v2949_v2  ;;  %s3138_s25 = scalar_lea.vmem %s3513_s1, %s3126_s16  ;;  %s3147_s30 = scalar_lea.vmem %s3512_s0, %s3126_s16  ;;  %v2969_v22 = vld [vmem:[%s3516_s4 + $0xb0] sm:$0xff]   ;;  %v2971_v26 = vld [vmem:[%s3516_s4 + $0xa8] sm:$0xff]   ;;  %v2973_v28 = vld [vmem:[%s3516_s4 + $0xa0] sm:$0xff]  }
  0x12   : > { %2732 = vmatpush3.bf16.msra.mxu1 %v2950_v3  ;;  %2709 = vmatprep.subr.bf16.mxu0 %v2951_v4  ;;  %v2963_v12 = vld [vmem:[%s3138_s25] ss:$8 sps:$4 sm:$0xff]   ;;  %v2965_v18 = vld [vmem:[%s3138_s25 + $0x10] ss:$8 sps:$4 sm:$0xff]   ;;  %s3200_s19 = scalar_lea.vmem %s3514_s2, %s3126_s16  ;;  %v635_v33 = vld [vmem:[%s3147_s30 + $0x4] sm:$0x1]  ;;  %s3293_s14 = scalar_lea.vmem %s3515_s3, %s3126_s16 }
  0x13   : > { %2733 = vmatprep.subr.bf16.mxu1 %v2952_v5  ;;  %v2964_v13 = vld [vmem:[%s3147_s30] ss:$8 sps:$4 sm:$0xff]   ;;  %2721 = vmatprep.mubr.bf16.mxu0 %v2963_v12  ;;  %v2966_v21 = vld [vmem:[%s3147_s30 + $0x10] ss:$8 sps:$4 sm:$0xff]   ;;  %v637_v35 = vld [vmem:[%s3147_s30 + $0xc] sm:$0x1] }
  0x14   : > { %2745 = vmatprep.mubr.bf16.mxu1 %v2964_v13  ;;  %v2970_v23 = vld [vmem:[%s3516_s4 + $0xf0] sm:$0xff]   ;;  %v2977_v24 = vld [vmem:[%s3138_s25 + $0x20] ss:$8 sps:$4 sm:$0xff]   ;;  %v2975_v36 = vld [vmem:[%s3516_s4 + $0x98] sm:$0xff]   ;;  %v663_v39 = vshll.u32 %v635_v33, 16  ;;  %v677_v42 = vshll.u32 %v637_v35, 16 }
  0x15   : > { %2710 = vmatpush3.bf16.msra.mxu0 %v2951_v4  ;;  %v2978_v25 = vld [vmem:[%s3147_s30 + $0x20] ss:$8 sps:$4 sm:$0xff]   ;;  %v2979_v29 = vld [vmem:[%s3138_s25 + $0x30] ss:$8 sps:$4 sm:$0xff]   ;;  %v639_v51 = vld [vmem:[%s3147_s30 + $0x14] sm:$0x1] }
  0x16   : > { %2734 = vmatpush3.bf16.msra.mxu1 %v2952_v5  ;;  %2711 = vmatprep.subr.bf16.mxu0 %v2953_v6  ;;  %v2972_v27 = vld [vmem:[%s3516_s4 + $0xe8] sm:$0xff]   ;;  %v2974_v30 = vld [vmem:[%s3516_s4 + $0xe0] sm:$0xff]   ;;  %v2980_v31 = vld [vmem:[%s3147_s30 + $0x30] ss:$8 sps:$4 sm:$0xff]   ;;  %v665_v49 = vrot.slane %v663_v39, 5  ;;  %v691_v57 = vshll.u32 %v639_v51, 16 }
  0x17   : > { %2735 = vmatprep.subr.bf16.mxu1 %v2954_v7  ;;  %v634_v32 = vld [vmem:[%s3147_s30] sm:$0xf]  ;;  %v636_v34 = vld [vmem:[%s3147_s30 + $0x8] sm:$0xf]  ;;  %v2976_v44 = vld [vmem:[%s3516_s4 + $0xd8] sm:$0xff]   ;;  %v679_v61 = vrot.slane %v677_v42, 5 }
  0x18   : > { %v654_v37 = vshrl.u32 %v634_v32, 16  ;;  %v657_v38 = vshll.u32 %v634_v32, 16  ;;  %v668_v40 = vshrl.u32 %v636_v34, 16  ;;  %v671_v41 = vshll.u32 %v636_v34, 16  ;;  %v2987_v43 = vld [vmem:[%s3200_s19] ss:$8 sps:$4 sm:$0xff]   ;;  %vm3222_vm2 = vmor %vm650_vm0, %vm651_vm1 }
  0x19   : > { %2712 = vmatpush3.bf16.msra.mxu0 %v2953_v6  ;;  %v638_v48 = vld [vmem:[%s3147_s30 + $0x10] sm:$0xf]  ;;  %v640_v52 = vld [vmem:[%s3147_s30 + $0x18] sm:$0xf]  ;;  %v641_v54 = vld [vmem:[%s3147_s30 + $0x1c] sm:$0x1] }
  0x1a   : > { %2736 = vmatpush3.bf16.msra.mxu1 %v2954_v7  ;;  %2713 = vmatprep.subr.bf16.mxu0 %v2955_v8  ;;  %v656_v45 = vrot.slane %v654_v37, 4  ;;  %v659_v46 = vrot.slane %v657_v38, 5  ;;  %v670_v47 = vrot.slane %v668_v40, 4  ;;  %v673_v50 = vrot.slane %v671_v41, 5  ;;  %v2981_v58 = vld [vmem:[%s3516_s4 + $0x90] sm:$0xff]   ;;  %v2989_v51 = vld [vmem:[%s3516_s4 + $0x138] sm:$0xff]  }
  0x1b   : > { %2737 = vmatprep.subr.bf16.mxu1 %v2956_v9  ;;  %v682_v55 = vshrl.u32 %v638_v48, 16  ;;  %v685_v56 = vshll.u32 %v638_v48, 16  ;;  %v696_v62 = vshrl.u32 %v640_v52, 16  ;;  %v699_v63 = vshll.u32 %v640_v52, 16  ;;  %v2982_v4 = vld [vmem:[%s3516_s4 + $0xd0] sm:$0xff]  }
  0x1c   : > { %v660_v53 = vor.u32 %v659_v46, %v656_v45  ;;  %v674_v60 = vor.u32 %v673_v50, %v670_v47  ;;  %v705_v3 = vshll.u32 %v641_v54, 16  ;;  %v3229_v6 = vrot.slane %v691_v57, 5  ;;  %v648_v40 = vld [vmem:[%s3147_s30 + $0x38] sm:$0xf] }
  0x1d   : > { %2714 = vmatpush3.bf16.msra.mxu0 %v2955_v8  ;;  %v684_v1 = vrot.slane %v682_v55, 4  ;;  %v687_v2 = vrot.slane %v685_v56, 5  ;;  %v698_v7 = vrot.slane %v696_v62, 4  ;;  %v701_v8 = vrot.slane %v699_v63, 5  ;;  %v2990_v55 = vld [vmem:[%s3516_s4 + $0x178] sm:$0xff]  }
  0x1e   : > { %2738 = vmatpush3.bf16.msra.mxu1 %v2956_v9  ;;  %2715 = vmatprep.subr.bf16.mxu0 %v2957_v10  ;;  %v661_v0 = vrot.slane %v660_v53, 4  ;;  %v675_v5 = vrot.slane %v674_v60, 4  ;;  %v2983_v9 = vld [vmem:[%s3516_s4 + $0x88] sm:$0xff]   ;;  %v755_v50 = vshll.u32 %v648_v40, 16 }
  0x1f   : > { %2739 = vmatprep.subr.bf16.mxu1 %v2958_v11  ;;  %v702_v13 = vor.u32 %v701_v8, %v698_v7  ;;  %v2992_v7 = vld [vmem:[%s3516_s4 + $0x170] sm:$0xff]  }
  0x20   : > { %v680_v12 = vsel %vm3222_vm2, %v675_v5, %v679_v61  ;;  %v2988_v61 = vld [vmem:[%s3200_s19 + $0x10] ss:$8 sps:$4 sm:$0xff]  }
  0x21   : > { %2716 = vmatpush3.bf16.msra.mxu0 %v2957_v10  ;;  %v666_v10 = vsel %vm3222_vm2, %v661_v0, %v665_v49  ;;  %v752_v49 = vshrl.u32 %v648_v40, 16  ;;  %v1264_v40 = vld [vmem:[%s3200_s19 + $0x14] sm:$0x1] }
  0x22   : > { %2740 = vmatpush3.bf16.msra.mxu1 %v2958_v11  ;;  %2717 = vmatprep.subr.bf16.mxu0 %v2959_v14  ;;  %v688_v11 = vor.u32 %v687_v2, %v684_v1 }
  0x23   : > { %2741 = vmatprep.subr.bf16.mxu1 %v2960_v15  ;;  %v754_v57 = vrot.slane %v752_v49, 4 }
  0x25   : > { %2718 = vmatpush3.bf16.msra.mxu0 %v2959_v14  ;;  %v2381_v14 = vcombine.low %v666_v10, %v680_v12  ;;  %v2993_v10 = vld [vmem:[%s3516_s4 + $0x128] sm:$0xff]  }
  0x26   : > { %2742 = vmatpush3.bf16.msra.mxu1 %v2960_v15  ;;  %2719 = vmatprep.subr.bf16.mxu0 %v2961_v16  ;;  %v689_v15 = vrot.slane %v688_v11, 4 }
  0x27   : > { %2743 = vmatprep.subr.bf16.mxu1 %v2962_v17 }
  0x29   : > { %2720 = vmatpush3.bf16.msra.mxu0 %v2961_v16  ;;  %v707_v16 = vrot.slane %v705_v3, 5 }
  0x2a   : > { %2744 = vmatpush3.bf16.msra.mxu1 %v2962_v17  ;;  %2753 = vmatprep.subr.bf16.mxu0 %v2967_v19  ;;  %v2984_v17 = vld [vmem:[%s3516_s4 + $0xc8] sm:$0xff]  }
  0x2b   : > { %2777 = vmatprep.subr.bf16.mxu1 %v2968_v20 }
  0x2c   : > { %2722 = vmatmul.mubr.bf16.vlgmr.msra.gmra.mxu0 %v2965_v18  ;;  %v703_v18 = vrot.slane %v702_v13, 4  ;;  %v2994_v13 = vld [vmem:[%s3516_s4 + $0x168] sm:$0xff]  }
  0x2d   : > { %2746 = vmatmul.mubr.bf16.vlgmr.msra.gmra.mxu1 %v2966_v21  ;;  %2754 = vmatpush3.bf16.msra.mxu0 %v2967_v19  ;;  %v642_v19 = vld [vmem:[%s3147_s30 + $0x20] sm:$0xf]  ;;  %v644_v21 = vld [vmem:[%s3147_s30 + $0x28] sm:$0xf] }
  0x2e   : > { %2778 = vmatpush3.bf16.msra.mxu1 %v2968_v20  ;;  %2755 = vmatprep.subr.bf16.mxu0 %v2969_v22  ;;  %v643_v20 = vld [vmem:[%s3147_s30 + $0x24] sm:$0x1]  ;;  %v708_v32 = vsel %vm3222_vm2, %v703_v18, %v707_v16  ;;  %v2999_v18 = vld [vmem:[%s3516_s4 + $0x118] sm:$0xff]  }
  0x2f   : > { %2779 = vmatprep.subr.bf16.mxu1 %v2970_v23  ;;  %2725 = vmatprep.mubr.bf16.mxu0 %v2977_v24  ;;  %v713_v24 = vshll.u32 %v642_v19, 16  ;;  %v2997_v16 = vld [vmem:[%s3516_s4 + $0x120] sm:$0xff]  }
  0x30   : > { %2749 = vmatprep.mubr.bf16.mxu1 %v2978_v25  ;;  %v2985_v25 = vld [vmem:[%s3516_s4 + $0x80] sm:$0xff]  }
  0x31   : > { %2756 = vmatpush3.bf16.msra.mxu0 %v2969_v22  ;;  %v645_v22 = vld [vmem:[%s3147_s30 + $0x2c] sm:$0x1]  ;;  %v715_v34 = vrot.slane %v713_v24, 5 }
  0x32   : > { %2780 = vmatpush3.bf16.msra.mxu1 %v2970_v23  ;;  %2757 = vmatprep.subr.bf16.mxu0 %v2971_v26  ;;  %v710_v23 = vshrl.u32 %v642_v19, 16  ;;  %v733_v35 = vshll.u32 %v645_v22, 16  ;;  %v3007_v19 = vld [vmem:[%s3293_s14] ss:$8 sps:$4 sm:$0xff]  }
  0x33   : > { %2781 = vmatprep.subr.bf16.mxu1 %v2972_v27  ;;  %v1261_v22 = vld [vmem:[%s3200_s19 + $0x8] sm:$0xf] }
  0x34   : > { %2726 = vmatmul.mubr.bf16.gmra.mxu0 %v2979_v29  ;;  %v727_v29 = vshll.u32 %v644_v21, 16  ;;  %v712_v33 = vrot.slane %v710_v23, 4  ;;  %v1262_v23 = vld [vmem:[%s3200_s19 + $0xc] sm:$0x1] }
  0x35   : > { %2758 = vmatpush3.bf16.msra.mxu0 %v2971_v26  ;;  %2750 = vmatmul.mubr.bf16.gmra.mxu1 %v2980_v31  ;;  %v694_v26 = vsel %vm3222_vm2, %v689_v15, %v3229_v6  ;;  %v2986_v31 = vld [vmem:[%s3516_s4 + $0xc0] sm:$0xff]   ;;  %v2996_v15 = vld [vmem:[%s3200_s19 + $0x30] ss:$8 sps:$4 sm:$0xff]  }
  0x36   : > { %2782 = vmatpush3.bf16.msra.mxu1 %v2972_v27  ;;  %2759 = vmatprep.subr.bf16.mxu0 %v2973_v28  ;;  %v719_v27 = vshll.u32 %v643_v20, 16  ;;  %v729_v39 = vrot.slane %v727_v29, 5  ;;  %v716_v42 = vor.u32 %v715_v34, %v712_v33  ;;  %v2382_v60 = vcombine.low %v694_v26, %v708_v32  ;;  %v2995_v6 = vld [vmem:[%s3200_s19 + $0x20] ss:$8 sps:$4 sm:$0xff]   ;;  %v3001_v33 = vld [vmem:[%s3516_s4 + $0x110] sm:$0xff]  }
  0x37   : > { %2783 = vmatprep.subr.bf16.mxu1 %v2974_v30  ;;  %2793 = vmatprep.mubr.bf16.mxu1 %v2987_v43  ;;  %v735_v43 = vrot.slane %v733_v35, 5  ;;  %v1259_v20 = vld [vmem:[%s3200_s19] sm:$0xf]  ;;  %v1299_v29 = vshll.u32 %v1262_v23, 16  ;;  %v1271_v23 = vld [vmem:[%s3200_s19 + $0x30] sm:$0xf] }
  0x38   : > { %2769 = vmatprep.mubr.bf16.mxu0 %v2381_v14  ;;  %v721_v37 = vrot.slane %v719_v27, 5  ;;  %v717_v52 = vrot.slane %v716_v42, 4  ;;  %v1276_v24 = vshrl.u32 %v1259_v20, 16  ;;  %v1290_v27 = vshrl.u32 %v1261_v22, 16  ;;  %v1266_v42 = vld [vmem:[%s3200_s19 + $0x1c] sm:$0x1] }
  0x39   : > { %2760 = vmatpush3.bf16.msra.mxu0 %v2973_v28  ;;  %v724_v28 = vshrl.u32 %v644_v21, 16  ;;  %v1260_v21 = vld [vmem:[%s3200_s19 + $0x4] sm:$0x1] }
  0x3a   : > { %2784 = vmatpush3.bf16.msra.mxu1 %v2974_v30  ;;  %2761 = vmatprep.subr.bf16.mxu0 %v2975_v36  ;;  %v646_v30 = vld [vmem:[%s3147_s30 + $0x30] sm:$0xf]  ;;  %v722_v62 = vsel %vm3222_vm2, %v717_v52, %v721_v37  ;;  %v1285_v26 = vshll.u32 %v1260_v21, 16  ;;  %v1292_v35 = vrot.slane %v1290_v27, 4  ;;  %v1301_v37 = vrot.slane %v1299_v29, 5 }
  0x3b   : > { %2785 = vmatprep.subr.bf16.mxu1 %v2976_v44  ;;  %v726_v38 = vrot.slane %v724_v28, 4  ;;  %v738_v41 = vshrl.u32 %v646_v30, 16  ;;  %v741_v45 = vshll.u32 %v646_v30, 16  ;;  %v1293_v28 = vshll.u32 %v1261_v22, 16  ;;  %v3000_v30 = vld [vmem:[%s3516_s4 + $0x158] sm:$0xff]  }
  0x3c   : > { %v1287_v34 = vrot.slane %v1285_v26, 5  ;;  %v1273_v29 = vld [vmem:[%s3200_s19 + $0x38] sm:$0xf] }
  0x3d   : > { %2762 = vmatpush3.bf16.msra.mxu0 %v2975_v36  ;;  %v647_v36 = vld [vmem:[%s3147_s30 + $0x34] sm:$0x1]  ;;  %v730_v47 = vor.u32 %v729_v39, %v726_v38  ;;  %v740_v48 = vrot.slane %v738_v41, 4  ;;  %v743_v53 = vrot.slane %v741_v45, 5  ;;  %v1263_v38 = vld [vmem:[%s3200_s19 + $0x10] sm:$0xf] }
  0x3e   : > { %2786 = vmatpush3.bf16.msra.mxu1 %v2976_v44  ;;  %2763 = vmatprep.subr.bf16.mxu0 %v2981_v58  ;;  %v649_v44 = vld [vmem:[%s3147_s30 + $0x3c] sm:$0x1]  ;;  %v747_v46 = vshll.u32 %v647_v36, 16  ;;  %v1295_v36 = vrot.slane %v1293_v28, 5  ;;  %v1265_v41 = vld [vmem:[%s3200_s19 + $0x18] sm:$0xf] }
  0x3f   : > { %2787 = vmatprep.subr.bf16.mxu1 %v2982_v4  ;;  %v761_v54 = vshll.u32 %v649_v44, 16  ;;  %v731_v56 = vrot.slane %v730_v47, 4  ;;  %v744_v63 = vor.u32 %v743_v53, %v740_v48  ;;  %v1304_v45 = vshrl.u32 %v1263_v38, 16 }
  0x40   : > { %v749_v1 = vrot.slane %v747_v46, 5  ;;  %v1296_v44 = vor.u32 %v1295_v36, %v1292_v35  ;;  %v1307_v46 = vshll.u32 %v1263_v38, 16  ;;  %v1313_v47 = vshll.u32 %v1264_v40, 16  ;;  %v3013_v35 = vld [vmem:[%s3293_s14 + $0x20] ss:$8 sps:$4 sm:$0xff]   ;;  %v3011_v40 = vld [vmem:[%s3516_s4 + $0x1b0] sm:$0xff]  }
  0x41   : > { %2764 = vmatpush3.bf16.msra.mxu0 %v2981_v58  ;;  %v757_v58 = vrot.slane %v755_v50, 5  ;;  %v736_v0 = vsel %vm3222_vm2, %v731_v56, %v735_v43  ;;  %v763_v3 = vrot.slane %v761_v54, 5  ;;  %v745_v5 = vrot.slane %v744_v63, 4  ;;  %v3002_v43 = vld [vmem:[%s3516_s4 + $0x150] sm:$0xff]  }
  0x42   : > { %2788 = vmatpush3.bf16.msra.mxu1 %v2982_v4  ;;  %2765 = vmatprep.subr.bf16.mxu0 %v2983_v9  ;;  %v2991_v4 = vld [vmem:[%s3516_s4 + $0x130] sm:$0xff]   ;;  %v2383_v8 = vcombine.low %v722_v62, %v736_v0  ;;  %v1318_v49 = vshrl.u32 %v1265_v41, 16  ;;  %v1321_v50 = vshll.u32 %v1265_v41, 16  ;;  %v1297_v52 = vrot.slane %v1296_v44, 4 }
  0x43   : > { %2789 = vmatprep.subr.bf16.mxu1 %v2984_v17  ;;  %v758_v2 = vor.u32 %v757_v58, %v754_v57  ;;  %v750_v11 = vsel %vm3222_vm2, %v745_v5, %v749_v1  ;;  %v1306_v53 = vrot.slane %v1304_v45, 4  ;;  %v1309_v54 = vrot.slane %v1307_v46, 5  ;;  %v3012_v45 = vld [vmem:[%s3516_s4 + $0x1f0] sm:$0xff]  }
  0x44   : > { %v1320_v57 = vrot.slane %v1318_v49, 4  ;;  %v1323_v58 = vrot.slane %v1321_v50, 5  ;;  %v1315_v0 = vrot.slane %v1313_v47, 5  ;;  %v1374_v38 = vshrl.u32 %v1273_v29, 16 }
  0x45   : > { %2766 = vmatpush3.bf16.msra.mxu0 %v2983_v9  ;;  %v759_v9 = vrot.slane %v758_v2, 4  ;;  %v1310_v62 = vor.u32 %v1309_v54, %v1306_v53 }
  0x46   : > { %2790 = vmatpush3.bf16.msra.mxu1 %v2984_v17  ;;  %2767 = vmatprep.subr.bf16.mxu0 %v2985_v25  ;;  %v2998_v17 = vld [vmem:[%s3516_s4 + $0x160] sm:$0xff]   ;;  %v1324_v1 = vor.u32 %v1323_v58, %v1320_v57  ;;  %v1376_v47 = vrot.slane %v1374_v38, 4  ;;  %v3016_v58 = vld [vmem:[%s3516_s4 + $0x1e8] sm:$0xff]   ;;  %v3032_v38 = vld [vmem:[%s3516_s4 + $0x230] sm:$0xff]  }
  0x47   : > { %2791 = vmatprep.subr.bf16.mxu1 %v2986_v31  ;;  %v764_v12 = vsel %vm3222_vm2, %v759_v9, %v763_v3  ;;  %v1311_v3 = vrot.slane %v1310_v62, 4  ;;  %v3009_v9 = vld [vmem:[%s3516_s4 + $0x1b8] sm:$0xff]  }
  0x48   : > { %v2384_v14 = vcombine.low %v750_v11, %v764_v12  ;;  %v1325_v5 = vrot.slane %v1324_v1, 4  ;;  %v1268_v11 = vld [vmem:[%s3200_s19 + $0x24] sm:$0x1]  ;;  %v1269_v12 = vld [vmem:[%s3200_s19 + $0x28] sm:$0xf] }
  0x49   : > { %2768 = vmatpush3.bf16.msra.mxu0 %v2985_v25  ;;  %v1279_v25 = vshll.u32 %v1259_v20, 16  ;;  %v1349_v21 = vshll.u32 %v1269_v12, 16  ;;  %v3014_v62 = vld [vmem:[%s3293_s14 + $0x30] ss:$8 sps:$4 sm:$0xff]  }
  0x4a   : > { %2792 = vmatpush3.bf16.msra.mxu1 %v2986_v31  ;;  %2801 = vmatprep.subr.bf16.mxu0 %v2989_v51  ;;  %v1278_v31 = vrot.slane %v1276_v24, 4  ;;  %v1272_v24 = vld [vmem:[%s3200_s19 + $0x34] sm:$0x1] }
  0x4b   : > { %2825 = vmatprep.subr.bf16.mxu1 %v2990_v55  ;;  %v1281_v32 = vrot.slane %v1279_v25, 5 }
  0x4c   : > { %2770 = vmatmul.mubr.bf16.vlgmr.msra.gmra.mxu0 %v2382_v60  ;;  %v3004_v60 = vld [vmem:[%s3516_s4 + $0x148] sm:$0xff]  }
  0x4d   : > { %2794 = vmatmul.mubr.bf16.vlgmr.msra.gmra.mxu1 %v2988_v61  ;;  %2802 = vmatpush3.bf16.msra.mxu0 %v2989_v51  ;;  %v1282_v39 = vor.u32 %v1281_v32, %v1278_v31  ;;  %v1327_v51 = vshll.u32 %v1266_v42, 16  ;;  %v1302_v61 = vsel %vm3222_vm2, %v1297_v52, %v1301_v37  ;;  %v1274_v32 = vld [vmem:[%s3200_s19 + $0x3c] sm:$0x1]  ;;  %v1369_v37 = vshll.u32 %v1272_v24, 16  ;;  %v2557_v24 = vld [vmem:[%s3147_s30 + $0x28] sm:$0xf] }
  0x4e   : > { %2826 = vmatpush3.bf16.msra.mxu1 %v2990_v55  ;;  %2803 = vmatprep.subr.bf16.mxu0 %v2991_v4  ;;  %v3003_v55 = vld [vmem:[%s3516_s4 + $0x108] sm:$0xff]   ;;  %v1383_v44 = vshll.u32 %v1274_v32, 16  ;;  %v2560_v32 = vld [vmem:[%s3147_s30 + $0x34] sm:$0x1] }
  0x4f   : > { %2827 = vmatprep.subr.bf16.mxu1 %v2992_v7  ;;  %2773 = vmatprep.mubr.bf16.mxu0 %v2383_v8  ;;  %v1283_v48 = vrot.slane %v1282_v39, 4  ;;  %v1329_v2 = vrot.slane %v1327_v51, 5  ;;  %v1377_v39 = vshll.u32 %v1273_v29, 16  ;;  %v1371_v51 = vrot.slane %v1369_v37, 5 }
  0x50   : > { %2797 = vmatprep.mubr.bf16.mxu1 %v2995_v6  ;;  %v3006_v6 = vld [vmem:[%s3516_s4 + $0x140] sm:$0xff]   ;;  %v1385_v54 = vrot.slane %v1383_v44, 5  ;;  %v1959_v37 = vshll.u32 %v2557_v24, 16 }
  0x51   : > { %2804 = vmatpush3.bf16.msra.mxu0 %v2991_v4  ;;  %v1288_v56 = vsel %vm3222_vm2, %v1283_v48, %v1287_v34  ;;  %v3005_v4 = vld [vmem:[%s3516_s4 + $0x100] sm:$0xff]   ;;  %v1330_v8 = vsel %vm3222_vm2, %v1325_v5, %v1329_v2  ;;  %v1363_v34 = vshll.u32 %v1271_v23, 16  ;;  %v1379_v48 = vrot.slane %v1377_v39, 5  ;;  %v3027_v5 = vld [vmem:[%s3147_s30 + $0x8] ss:$8 sps:$4 sm:$0xff]  }
  0x52   : > { %2828 = vmatpush3.bf16.msra.mxu1 %v2992_v7  ;;  %2805 = vmatprep.subr.bf16.mxu0 %v2993_v10  ;;  %v2465_v63 = vcombine.low %v1288_v56, %v1302_v61  ;;  %v1316_v7 = vsel %vm3222_vm2, %v1311_v3, %v1315_v0  ;;  %v3017_v2 = vld [vmem:[%s3516_s4 + $0x1a0] sm:$0xff]  }
  0x53   : > { %2829 = vmatprep.subr.bf16.mxu1 %v2994_v13  ;;  %v2466_v20 = vcombine.low %v1316_v7, %v1330_v8  ;;  %v1380_v53 = vor.u32 %v1379_v48, %v1376_v47  ;;  %v3018_v3 = vld [vmem:[%s3516_s4 + $0x1e0] sm:$0xff]   ;;  %v3020_v7 = vld [vmem:[%s3516_s4 + $0x1d8] sm:$0xff]   ;;  %v3021_v8 = vld [vmem:[%s3516_s4 + $0x190] sm:$0xff]   ;;  %v1979_v47 = vshll.u32 %v2560_v32, 16 }
  0x54   : > { %2774 = vmatmul.mubr.bf16.gmra.mxu0 %v2384_v14  ;;  %v1270_v14 = vld [vmem:[%s3200_s19 + $0x2c] sm:$0x1]  ;;  %v3036_v48 = vld [vmem:[%s3138_s25 + $0x28] ss:$8 sps:$4 sm:$0xff]   ;;  %v2564_v32 = vld [vmem:[%s3147_s30 + $0x44] sm:$0x1] }
  0x55   : > { %2806 = vmatpush3.bf16.msra.mxu0 %v2993_v10  ;;  %2798 = vmatmul.mubr.bf16.gmra.mxu1 %v2996_v15  ;;  %v1267_v10 = vld [vmem:[%s3200_s19 + $0x20] sm:$0xf]  ;;  %v1355_v22 = vshll.u32 %v1270_v14, 16  ;;  %v1381_v61 = vrot.slane %v1380_v53, 4  ;;  %v3031_v14 = vld [vmem:[%s3516_s4 + $0x238] sm:$0xff]  }
  0x56   : > { %2830 = vmatpush3.bf16.msra.mxu1 %v2994_v13  ;;  %2807 = vmatprep.subr.bf16.mxu0 %v2997_v16  ;;  %v3010_v13 = vld [vmem:[%s3516_s4 + $0x1f8] sm:$0xff]   ;;  %v1332_v15 = vshrl.u32 %v1267_v10, 16 }
  0x57   : > { %2831 = vmatprep.subr.bf16.mxu1 %v2998_v17  ;;  %2817 = vmatprep.mubr.bf16.mxu0 %v3007_v19  ;;  %v3008_v19 = vld [vmem:[%s3293_s14 + $0x10] ss:$8 sps:$4 sm:$0xff]   ;;  %v1357_v31 = vrot.slane %v1355_v22, 5  ;;  %v1386_v0 = vsel %vm3222_vm2, %v1381_v61, %v1385_v54 }
  0x58   : > { %2841 = vmatprep.mubr.bf16.mxu1 %v2465_v63  ;;  %v1334_v25 = vrot.slane %v1332_v15, 4  ;;  %v2549_v15 = vld [vmem:[%s3147_s30 + $0x8] sm:$0xf]  ;;  %v3034_v61 = vld [vmem:[%s3147_s30 + $0x38] ss:$8 sps:$4 sm:$0xff]  }
  0x59   : > { %2808 = vmatpush3.bf16.msra.mxu0 %v2997_v16  ;;  %v1335_v16 = vshll.u32 %v1267_v10, 16  ;;  %v3023_v10 = vld [vmem:[%s3516_s4 + $0x188] sm:$0xff]  }
  0x5a   : > { %2832 = vmatpush3.bf16.msra.mxu1 %v2998_v17  ;;  %2809 = vmatprep.subr.bf16.mxu0 %v2999_v18  ;;  %v1341_v17 = vshll.u32 %v1268_v11, 16  ;;  %v3024_v11 = vld [vmem:[%s3516_s4 + $0x1c8] sm:$0xff]  }
  0x5b   : > { %2833 = vmatprep.subr.bf16.mxu1 %v3000_v30  ;;  %v1337_v26 = vrot.slane %v1335_v16, 5  ;;  %v2550_v16 = vld [vmem:[%s3147_s30 + $0xc] sm:$0x1] }
  0x5c   : > { %v1343_v27 = vrot.slane %v1341_v17, 5  ;;  %v2551_v17 = vld [vmem:[%s3147_s30 + $0x10] sm:$0xf]  ;;  %v1909_v22 = vshll.u32 %v2550_v16, 16 }
  0x5d   : > { %2810 = vmatpush3.bf16.msra.mxu0 %v2999_v18  ;;  %v1346_v18 = vshrl.u32 %v1269_v12, 16  ;;  %v1338_v36 = vor.u32 %v1337_v26, %v1334_v25  ;;  %v3025_v12 = vld [vmem:[%s3516_s4 + $0x180] sm:$0xff]   ;;  %v1917_v25 = vshll.u32 %v2551_v17, 16  ;;  %v2558_v26 = vld [vmem:[%s3147_s30 + $0x2c] sm:$0x1] }
  0x5e   : > { %2834 = vmatpush3.bf16.msra.mxu1 %v3000_v30  ;;  %2811 = vmatprep.subr.bf16.mxu0 %v3001_v33  ;;  %v1351_v30 = vrot.slane %v1349_v21, 5  ;;  %v1903_v21 = vshll.u32 %v2549_v15, 16 }
  0x5f   : > { %2835 = vmatprep.subr.bf16.mxu1 %v3002_v43  ;;  %v1348_v28 = vrot.slane %v1346_v18, 4  ;;  %v1339_v46 = vrot.slane %v1338_v36, 4  ;;  %v2552_v18 = vld [vmem:[%s3147_s30 + $0x14] sm:$0x1]  ;;  %v1956_v36 = vshrl.u32 %v2557_v24, 16 }
  0x60   : > { %v1905_v29 = vrot.slane %v1903_v21, 5  ;;  %v2554_v21 = vld [vmem:[%s3147_s30 + $0x1c] sm:$0x1] }
  0x61   : > { %2812 = vmatpush3.bf16.msra.mxu0 %v3001_v33  ;;  %v1360_v33 = vshrl.u32 %v1271_v23, 16  ;;  %v1352_v41 = vor.u32 %v1351_v30, %v1348_v28  ;;  %v1344_v52 = vsel %vm3222_vm2, %v1339_v46, %v1343_v27  ;;  %v1914_v23 = vshrl.u32 %v2551_v17, 16  ;;  %v2559_v27 = vld [vmem:[%s3147_s30 + $0x30] sm:$0xf] }
  0x62   : > { %2836 = vmatpush3.bf16.msra.mxu1 %v3002_v43  ;;  %2813 = vmatprep.subr.bf16.mxu0 %v3003_v55  ;;  %v1365_v43 = vrot.slane %v1363_v34, 5  ;;  %v1911_v34 = vrot.slane %v1909_v22, 5  ;;  %v1961_v46 = vrot.slane %v1959_v37, 5  ;;  %v3041_v37 = vld [vmem:[%s3516_s4 + $0x208] sm:$0xff]  }
  0x63   : > { %2837 = vmatprep.subr.bf16.mxu1 %v3004_v60  ;;  %v1362_v42 = vrot.slane %v1360_v33, 4  ;;  %v1353_v49 = vrot.slane %v1352_v41, 4  ;;  %v1916_v30 = vrot.slane %v1914_v23, 4  ;;  %v3030_v33 = vld [vmem:[%s3138_s25 + $0x18] ss:$8 sps:$4 sm:$0xff]   ;;  %v1970_v41 = vshrl.u32 %v2559_v27, 16 }
  0x65   : > { %2814 = vmatpush3.bf16.msra.mxu0 %v3003_v55  ;;  %v1366_v50 = vor.u32 %v1365_v43, %v1362_v42  ;;  %v3015_v55 = vld [vmem:[%s3516_s4 + $0x1a8] sm:$0xff]   ;;  %v1358_v56 = vsel %vm3222_vm2, %v1353_v49, %v1357_v31  ;;  %v1923_v31 = vshll.u32 %v2552_v18, 16  ;;  %v1973_v42 = vshll.u32 %v2559_v27, 16 }
  0x66   : > { %2838 = vmatpush3.bf16.msra.mxu1 %v3004_v60  ;;  %2815 = vmatprep.subr.bf16.mxu0 %v3005_v4  ;;  %v2467_v60 = vcombine.low %v1344_v52, %v1358_v56  ;;  %v3033_v43 = vld [vmem:[%s3147_s30 + $0x28] ss:$8 sps:$4 sm:$0xff]  }
  0x67   : > { %2839 = vmatprep.subr.bf16.mxu1 %v3006_v6  ;;  %v1367_v57 = vrot.slane %v1366_v50, 4  ;;  %v1925_v50 = vrot.slane %v1923_v31, 5  ;;  %v1975_v52 = vrot.slane %v1973_v42, 5  ;;  %v3035_v56 = vld [vmem:[%s3516_s4 + $0x228] sm:$0xff]   ;;  %v2562_v31 = vld [vmem:[%s3147_s30 + $0x3c] sm:$0x1] }
  0x69   : > { %2816 = vmatpush3.bf16.msra.mxu0 %v3005_v4  ;;  %v1372_v63 = vsel %vm3222_vm2, %v1367_v57, %v1371_v51  ;;  %v3019_v4 = vld [vmem:[%s3516_s4 + $0x198] sm:$0xff]   ;;  %v1972_v51 = vrot.slane %v1970_v41, 4  ;;  %v2007_v41 = vshll.u32 %v2564_v32, 16 }
  0x6a   : > { %2840 = vmatpush3.bf16.msra.mxu1 %v3006_v6  ;;  %2849 = vmatprep.subr.bf16.mxu0 %v3009_v9  ;;  %v2468_v1 = vcombine.low %v1372_v63, %v1386_v0  ;;  %v3028_v6 = vld [vmem:[%s3138_s25 + $0x8] ss:$8 sps:$4 sm:$0xff]  }
  0x6b   : > { %2873 = vmatprep.subr.bf16.mxu1 %v3010_v13  ;;  %v1976_v57 = vor.u32 %v1975_v52, %v1972_v51 }
  0x6c   : > { %2818 = vmatmul.mubr.bf16.vlgmr.msra.gmra.mxu0 %v3008_v19  ;;  %v3029_v19 = vld [vmem:[%s3147_s30 + $0x18] ss:$8 sps:$4 sm:$0xff]  }
  0x6d   : > { %2842 = vmatmul.mubr.bf16.vlgmr.msra.gmra.mxu1 %v2466_v20  ;;  %2850 = vmatpush3.bf16.msra.mxu0 %v3009_v9  ;;  %v3022_v9 = vld [vmem:[%s3516_s4 + $0x1d0] sm:$0xff]   ;;  %v1900_v20 = vshrl.u32 %v2549_v15, 16  ;;  %v1977_v0 = vrot.slane %v1976_v57, 4  ;;  %v3039_v15 = vld [vmem:[%s3516_s4 + $0x218] sm:$0xff]  }
  0x6e   : > { %2874 = vmatpush3.bf16.msra.mxu1 %v3010_v13  ;;  %2851 = vmatprep.subr.bf16.mxu0 %v3011_v40  ;;  %v3026_v13 = vld [vmem:[%s3516_s4 + $0x1c0] sm:$0xff]  }
  0x6f   : > { %2875 = vmatprep.subr.bf16.mxu1 %v3012_v45  ;;  %2821 = vmatprep.mubr.bf16.mxu0 %v3013_v35  ;;  %v1902_v28 = vrot.slane %v1900_v20, 4  ;;  %v1919_v35 = vrot.slane %v1917_v25, 5  ;;  %v3040_v20 = vld [vmem:[%s3516_s4 + $0x210] sm:$0xff]  }
  0x70   : > { %2845 = vmatprep.mubr.bf16.mxu1 %v2467_v60 }
  0x71   : > { %2852 = vmatpush3.bf16.msra.mxu0 %v3011_v40  ;;  %v1906_v39 = vor.u32 %v1905_v29, %v1902_v28  ;;  %v1965_v40 = vshll.u32 %v2558_v26, 16  ;;  %v1920_v44 = vor.u32 %v1919_v35, %v1916_v30  ;;  %v2556_v26 = vld [vmem:[%s3147_s30 + $0x24] sm:$0x1] }
  0x72   : > { %2876 = vmatpush3.bf16.msra.mxu1 %v3012_v45  ;;  %2853 = vmatprep.subr.bf16.mxu0 %v3015_v55  ;;  %v1958_v45 = vrot.slane %v1956_v36, 4  ;;  %v1951_v36 = vshll.u32 %v2556_v26, 16 }
  0x73   : > { %2877 = vmatprep.subr.bf16.mxu1 %v3016_v58  ;;  %v1907_v49 = vrot.slane %v1906_v39, 4  ;;  %v1921_v53 = vrot.slane %v1920_v44, 4  ;;  %v1993_v39 = vshll.u32 %v2562_v31, 16 }
  0x74   : > { %2822 = vmatmul.mubr.bf16.gmra.mxu0 %v3014_v62  ;;  %v1962_v54 = vor.u32 %v1961_v46, %v1958_v45  ;;  %v1953_v45 = vrot.slane %v1951_v36, 5  ;;  %v3042_v46 = vld [vmem:[%s3516_s4 + $0x200] sm:$0xff]  }
  0x75   : > { %2854 = vmatpush3.bf16.msra.mxu0 %v3015_v55  ;;  %2846 = vmatmul.mubr.bf16.gmra.mxu1 %v2468_v1  ;;  %v1967_v55 = vrot.slane %v1965_v40, 5  ;;  %v1912_v62 = vsel %vm3222_vm2, %v1907_v49, %v1911_v34  ;;  %v1926_v63 = vsel %vm3222_vm2, %v1921_v53, %v1925_v50  ;;  %v3037_v1 = vld [vmem:[%s3138_s25 + $0x38] ss:$8 sps:$4 sm:$0xff]   ;;  %v1937_v34 = vshll.u32 %v2554_v21, 16 }
  0x76   : > { %2878 = vmatpush3.bf16.msra.mxu1 %v3016_v58  ;;  %2855 = vmatprep.subr.bf16.mxu0 %v3017_v2  ;;  %v1981_v58 = vrot.slane %v1979_v47, 5  ;;  %v1963_v60 = vrot.slane %v1962_v54, 4  ;;  %v2009_v50 = vrot.slane %v2007_v41, 5 }
  0x77   : > { %2879 = vmatprep.subr.bf16.mxu1 %v3018_v3  ;;  %2865 = vmatprep.mubr.bf16.mxu0 %v3027_v5  ;;  %v2553_v5 = vld [vmem:[%s3147_s30 + $0x18] sm:$0xf] }
  0x78   : > { %2889 = vmatprep.mubr.bf16.mxu1 %v3028_v6  ;;  %v2555_v6 = vld [vmem:[%s3147_s30 + $0x20] sm:$0xf] }
  0x79   : > { %2856 = vmatpush3.bf16.msra.mxu0 %v3017_v2  ;;  %v1968_v2 = vsel %vm3222_vm2, %v1963_v60, %v1967_v55 }
  0x7a   : > { %2880 = vmatpush3.bf16.msra.mxu1 %v3018_v3  ;;  %2857 = vmatprep.subr.bf16.mxu0 %v3019_v4  ;;  %v3038_v3 = vld [vmem:[%s3516_s4 + $0x220] sm:$0xff]  }
  0x7b   : > { %2881 = vmatprep.subr.bf16.mxu1 %v3020_v7 }
  0x7d   : > { %2858 = vmatpush3.bf16.msra.mxu0 %v3019_v4  ;;  %v1982_v4 = vsel %vm3222_vm2, %v1977_v0, %v1981_v58 }
  0x7e   : > { %2882 = vmatpush3.bf16.msra.mxu1 %v3020_v7  ;;  %2859 = vmatprep.subr.bf16.mxu0 %v3021_v8  ;;  %v2581_v7 = vcombine.low %v1912_v62, %v1926_v63 }
  0x7f   : > { %2883 = vmatprep.subr.bf16.mxu1 %v3022_v9 }
  0x81   : > { %2860 = vmatpush3.bf16.msra.mxu0 %v3021_v8  ;;  %v2561_v8 = vld [vmem:[%s3147_s30 + $0x38] sm:$0xf] }
  0x82   : > { %2884 = vmatpush3.bf16.msra.mxu1 %v3022_v9  ;;  %2861 = vmatprep.subr.bf16.mxu0 %v3023_v10  ;;  %v2563_v9 = vld [vmem:[%s3147_s30 + $0x40] sm:$0xf]  ;;  %v1984_v16 = vshrl.u32 %v2561_v8, 16  ;;  %v1987_v17 = vshll.u32 %v2561_v8, 16 }
  0x83   : > { %2885 = vmatprep.subr.bf16.mxu1 %v3024_v11  ;;  %v1998_v18 = vshrl.u32 %v2563_v9, 16 }
  0x84   : > { %v1986_v27 = vrot.slane %v1984_v16, 4  ;;  %v1989_v28 = vrot.slane %v1987_v17, 5 }
  0x85   : > { %2862 = vmatpush3.bf16.msra.mxu0 %v3023_v10  ;;  %v2583_v10 = vcombine.low %v1968_v2, %v1982_v4  ;;  %v2000_v29 = vrot.slane %v1998_v18, 4 }
  0x86   : > { %2886 = vmatpush3.bf16.msra.mxu1 %v3024_v11  ;;  %2863 = vmatprep.subr.bf16.mxu0 %v3025_v12  ;;  %v1928_v11 = vshrl.u32 %v2553_v5, 16 }
  0x87   : > { %2887 = vmatprep.subr.bf16.mxu1 %v3026_v13 }
  0x88   : > { %v1930_v22 = vrot.slane %v1928_v11, 4 }
  0x89   : > { %2864 = vmatpush3.bf16.msra.mxu0 %v3025_v12  ;;  %v1931_v12 = vshll.u32 %v2553_v5, 16 }
  0x8a   : > { %2888 = vmatpush3.bf16.msra.mxu1 %v3026_v13  ;;  %2897 = vmatprep.subr.bf16.mxu0 %v3031_v14  ;;  %v1942_v13 = vshrl.u32 %v2555_v6, 16 }
  0x8b   : > { %2921 = vmatprep.subr.bf16.mxu1 %v3031_v14  ;;  %v1933_v23 = vrot.slane %v1931_v12, 5 }
  0x8c   : > { %2866 = vmatmul.mubr.bf16.vlgmr.msra.gmra.mxu0 %v3029_v19  ;;  %v2001_v19 = vshll.u32 %v2563_v9, 16  ;;  %v1944_v24 = vrot.slane %v1942_v13, 4 }
  0x8d   : > { %2890 = vmatmul.mubr.bf16.vlgmr.msra.gmra.mxu1 %v3030_v33  ;;  %2898 = vmatpush3.bf16.msra.mxu0 %v3031_v14  ;;  %v1934_v33 = vor.u32 %v1933_v23, %v1930_v22 }
  0x8e   : > { %2929 = vmatpush3.bf16.msra.mxu1 %v3031_v14  ;;  %2899 = vmatprep.subr.bf16.mxu0 %v3032_v38  ;;  %v1945_v14 = vshll.u32 %v2555_v6, 16  ;;  %v2003_v30 = vrot.slane %v2001_v19, 5 }
  0x8f   : > { %2922 = vmatprep.subr.bf16.mxu1 %v3032_v38  ;;  %2869 = vmatprep.mubr.bf16.mxu0 %v3033_v43  ;;  %v1935_v42 = vrot.slane %v1934_v33, 4  ;;  %v1939_v43 = vrot.slane %v1937_v34, 5 }
  0x90   : > { %2893 = vmatprep.mubr.bf16.mxu1 %v3036_v48  ;;  %v1947_v25 = vrot.slane %v1945_v14, 5  ;;  %v2004_v40 = vor.u32 %v2003_v30, %v2000_v29  ;;  %v1995_v48 = vrot.slane %v1993_v39, 5 }
  0x91   : > { %2900 = vmatpush3.bf16.msra.mxu0 %v3032_v38  ;;  %v1940_v51 = vsel %vm3222_vm2, %v1935_v42, %v1939_v43 }
  0x92   : > { %2930 = vmatpush3.bf16.msra.mxu1 %v3032_v38  ;;  %2901 = vmatprep.subr.bf16.mxu0 %v3035_v56  ;;  %v1948_v35 = vor.u32 %v1947_v25, %v1944_v24  ;;  %v1990_v38 = vor.u32 %v1989_v28, %v1986_v27  ;;  %v2005_v49 = vrot.slane %v2004_v40, 4 }
  0x93   : > { %2923 = vmatprep.subr.bf16.mxu1 %v3035_v56 }
  0x94   : > { %2870 = vmatmul.mubr.bf16.gmra.mxu0 %v3034_v61  ;;  %v1949_v44 = vrot.slane %v1948_v35, 4  ;;  %v1991_v47 = vrot.slane %v1990_v38, 4  ;;  %v2010_v54 = vsel %vm3222_vm2, %v2005_v49, %v2009_v50 }
  0x95   : > { %2902 = vmatpush3.bf16.msra.mxu0 %v3035_v56  ;;  %2894 = vmatmul.mubr.bf16.gmra.mxu1 %v3037_v1 }
  0x96   : > { %2931 = vmatpush3.bf16.msra.mxu1 %v3035_v56  ;;  %2903 = vmatprep.subr.bf16.mxu0 %v3038_v3  ;;  %v1954_v52 = vsel %vm3222_vm2, %v1949_v44, %v1953_v45  ;;  %v1996_v53 = vsel %vm3222_vm2, %v1991_v47, %v1995_v48 }
  0x97   : > { %2924 = vmatprep.subr.bf16.mxu1 %v3038_v3  ;;  %2913 = vmatprep.mubr.bf16.mxu0 %v2581_v7  ;;  %v2582_v55 = vcombine.low %v1940_v51, %v1954_v52  ;;  %v2584_v56 = vcombine.low %v1996_v53, %v2010_v54 }
  0x98   : > { %2917 = vmatprep.mubr.bf16.mxu1 %v2583_v10 }
  0x99   : > { %2904 = vmatpush3.bf16.msra.mxu0 %v3038_v3 }
  0x9a   : > { %2932 = vmatpush3.bf16.msra.mxu1 %v3038_v3  ;;  %2905 = vmatprep.subr.bf16.mxu0 %v3039_v15 }
  0x9b   : > { %2925 = vmatprep.subr.bf16.mxu1 %v3039_v15 }
  0x9d   : > { %2906 = vmatpush3.bf16.msra.mxu0 %v3039_v15 }
  0x9e   : > { %2933 = vmatpush3.bf16.msra.mxu1 %v3039_v15  ;;  %2907 = vmatprep.subr.bf16.mxu0 %v3040_v20 }
  0x9f   : > { %2926 = vmatprep.subr.bf16.mxu1 %v3040_v20 }
  0xa1   : > { %2908 = vmatpush3.bf16.msra.mxu0 %v3040_v20 }
  0xa2   : > { %2934 = vmatpush3.bf16.msra.mxu1 %v3040_v20  ;;  %2909 = vmatprep.subr.bf16.mxu0 %v3041_v37 }
  0xa3   : > { %2927 = vmatprep.subr.bf16.mxu1 %v3041_v37 }
  0xa5   : > { %2910 = vmatpush3.bf16.msra.mxu0 %v3041_v37 }
  0xa6   : > { %2935 = vmatpush3.bf16.msra.mxu1 %v3041_v37  ;;  %2911 = vmatprep.subr.bf16.mxu0 %v3042_v46 }
  0xa7   : > { %2928 = vmatprep.subr.bf16.mxu1 %v3042_v46 }
  0xa9   : > { %2912 = vmatpush3.bf16.msra.mxu0 %v3042_v46 }
  0xaa   : > { %2936 = vmatpush3.bf16.msra.mxu1 %v3042_v46 }
  0xac   : > { %2914 = vmatmul.mubr.bf16.vlgmr.msra.gmra.mxu0 %v2582_v55 }
  0xad   : > { %2918 = vmatmul.mubr.bf16.vlgmr.msra.gmra.mxu1 %v2584_v56 }
  0xec   : > { %v2723_v57 = vpop.f32.mrf.mxu0 }
  0xed   : > { %v2747_v60 = vpop.f32.mrf.mxu1 }
  0xee   : > { %v466_v58 = vpop.f32.mrf.mxu0  ;;  %v612_v46 = vadd.f32 %v2747_v60, %v2723_v57 }
  0xef   : > { %v603_v62 = vpop.f32.mrf.mxu1 }
  0xf0   : > { %v2724_v61 = vpop.f32.mrf.mxu0  ;;  %v604_v50 = vadd.f32 %v603_v62, %v466_v58 }
  0xf1   : > { %v2748_v1 = vpop.f32.mrf.mxu1 }
  0xf2   : > { %v469_v63 = vpop.f32.mrf.mxu0  ;;  %v615_v54 = vadd.f32 %v2748_v1, %v2724_v61 }
  0xf3   : > { %v606_v3 = vpop.f32.mrf.mxu1 }
  0xf4   : > { %v2727_v0 = vpop.f32.mrf.mxu0  ;;  %v607_v60 = vadd.f32 %v606_v3, %v469_v63 }
  0xf5   : > { %v2751_v4 = vpop.f32.mrf.mxu1 }
  0xf6   : > { %v482_v2 = vpop.f32.mrf.mxu0  ;;  %v628_v48 = vadd.f32 %v2751_v4, %v2727_v0 }
  0xf7   : > { %v619_v5 = vpop.f32.mrf.mxu1 }
  0xf8   : > { %v2728_v59 = vpop.f32.mrf.mxu0  ;;  %v620_v52 = vadd.f32 %v619_v5, %v482_v2 }
  0xf9   : > { %v2752_v8 = vpop.f32.mrf.mxu1 }
  0xfa   : > { %v485_v6 = vpop.f32.mrf.mxu0 }
  0xfb   : > { %v622_v10 = vpop.f32.mrf.mxu1 }
  0xfc   : > { %v623_v58 = vadd.f32 %v622_v10, %v485_v6 }
 0x10c   : > { %v2771_v7 = vpop.f32.mrf.mxu0 }
 0x10d   : > { %v2795_v11 = vpop.f32.mrf.mxu1  ;;  %v913_v51 = vadd.f32 %v2771_v7, %v612_v46 }
 0x10e   : > { %v880_v9 = vpop.f32.mrf.mxu0 }
 0x10f   : > { %v1050_v13 = vpop.f32.mrf.mxu1  ;;  %v911_v55 = vadd.f32 %v880_v9, %v604_v50 }
 0x110   : > { %v2772_v12 = vpop.f32.mrf.mxu0 }
 0x111   : > { %v2796_v15 = vpop.f32.mrf.mxu1  ;;  %v914_v0 = vadd.f32 %v2772_v12, %v615_v54  ;;  %v1081_v46 = vadd.f32 %v1050_v13, %v911_v55 }
 0x112   : > { %v883_v14 = vpop.f32.mrf.mxu0 }
 0x113   : > { %v1053_v17 = vpop.f32.mrf.mxu1  ;;  %v912_v2 = vadd.f32 %v883_v14, %v607_v60  ;;  %v1084_v9 = vadd.f32 %v2796_v15, %v914_v0 }
 0x114   : > { %v2775_v16 = vpop.f32.mrf.mxu0 }
 0x115   : > { %v2799_v19 = vpop.f32.mrf.mxu1  ;;  %v917_v53 = vadd.f32 %v2775_v16, %v628_v48 }
 0x116   : > { %v896_v18 = vpop.f32.mrf.mxu0 }
 0x117   : > { %v1066_v21 = vpop.f32.mrf.mxu1  ;;  %v1087_v62 = vadd.f32 %v2799_v19, %v917_v53 }
 0x118   : > { %v2776_v20 = vpop.f32.mrf.mxu0 }
 0x119   : > { %v2800_v23 = vpop.f32.mrf.mxu1 }
 0x11a   : > { %v899_v22 = vpop.f32.mrf.mxu0 }
 0x11b   : > { %v1069_v25 = vpop.f32.mrf.mxu1  ;;  %v916_v48 = vadd.f32 %v899_v22, %v623_v58 }
 0x12c   : > { %v2819_v24 = vpop.f32.mrf.mxu0 }
 0x12d   : > { %v2843_v27 = vpop.f32.mrf.mxu1 }
 0x12e   : > { %v1220_v26 = vpop.f32.mrf.mxu0 }
 0x12f   : > { %v1502_v29 = vpop.f32.mrf.mxu1  ;;  %v1251_v50 = vadd.f32 %v1220_v26, %v1081_v46 }
 0x130   : > { %v2820_v28 = vpop.f32.mrf.mxu0 }
 0x131   : > { %v2844_v31 = vpop.f32.mrf.mxu1  ;;  %v1254_v3 = vadd.f32 %v2820_v28, %v1084_v9  ;;  %v1533_v13 = vadd.f32 %v1502_v29, %v1251_v50 }
 0x132   : > { %v1223_v30 = vpop.f32.mrf.mxu0 }
 0x133   : > { %v3473_v33 = vpop.f32.mrf.mxu1  ;;  %v1536_v15 = vadd.f32 %v2844_v31, %v1254_v3 }
 0x134   : > { %v2823_v32 = vpop.f32.mrf.mxu0  ;;  %3521 = vst [vmem:[#allocation2_spill] sm:$0xff] %v3473_v33  ;;  %v631_v33 = vadd.f32 %v2752_v8, %v2728_v59 }
 0x135   : > { %v2847_v34 = vpop.f32.mrf.mxu1  ;;  %v1257_v1 = vadd.f32 %v2823_v32, %v1087_v62 }
 0x136   : > { %v1236_v35 = vpop.f32.mrf.mxu0  ;;  %v918_v7 = vadd.f32 %v2776_v20, %v631_v33 }
 0x137   : > { %v1518_v36 = vpop.f32.mrf.mxu1  ;;  %v1539_v6 = vadd.f32 %v2847_v34, %v1257_v1 }
 0x138   : > { %v2824_v37 = vpop.f32.mrf.mxu0  ;;  %v1088_v59 = vadd.f32 %v2800_v23, %v918_v7 }
 0x139   : > { %v2848_v38 = vpop.f32.mrf.mxu1 }
 0x13a   : > { %v1239_v39 = vpop.f32.mrf.mxu0  ;;  %v1258_v10 = vadd.f32 %v2824_v37, %v1088_v59 }
 0x13b   : > { %v1521_v41 = vpop.f32.mrf.mxu1  ;;  %v3525_v33 = vld [vmem:[#allocation2_spill] sm:$0xff] }
 0x13c   : > { %v1540_v23 = vadd.f32 %v2848_v38, %v1258_v10 }
 0x14c   : > { %v2867_v40 = vpop.f32.mrf.mxu0 }
 0x14d   : > { %v2891_v42 = vpop.f32.mrf.mxu1 }
 0x14e   : > { %v1673_v43 = vpop.f32.mrf.mxu0 }
 0x14f   : > { %v3475_v44 = vpop.f32.mrf.mxu1  ;;  %v1704_v26 = vadd.f32 %v1673_v43, %v1533_v13 }
 0x150   : > { %3522 = vst [vmem:[#allocation3_spill] sm:$0xff] %v3475_v44  ;;  %v2868_v45 = vpop.f32.mrf.mxu0  ;;  %v915_v44 = vadd.f32 %v896_v18, %v620_v52  ;;  %v1082_v18 = vadd.f32 %v1053_v17, %v912_v2 }
 0x151   : > { %v3477_v47 = vpop.f32.mrf.mxu1 }
 0x152   : > { %3523 = vst [vmem:[#allocation4_spill] sm:$0xff] %v3477_v47  ;;  %v1676_v49 = vpop.f32.mrf.mxu0  ;;  %v1083_v47 = vadd.f32 %v2795_v11, %v913_v51  ;;  %v1085_v16 = vadd.f32 %v1066_v21, %v915_v44  ;;  %v1086_v11 = vadd.f32 %v1069_v25, %v916_v48  ;;  %v1252_v14 = vadd.f32 %v1223_v30, %v1082_v18 }
 0x153   : > { %v3479_v56 = vpop.f32.mrf.mxu1  ;;  %v1707_v25 = vadd.f32 %v2868_v45, %v1536_v15 }
 0x154   : > { %3524 = vst [vmem:[#allocation5_spill] sm:$0xff] %v3479_v56  ;;  %v2871_v57 = vpop.f32.mrf.mxu0  ;;  %v1253_v5 = vadd.f32 %v2819_v24, %v1083_v47  ;;  %v1255_v8 = vadd.f32 %v1236_v35, %v1085_v16  ;;  %v1256_v22 = vadd.f32 %v1239_v39, %v1086_v11 }
 0x155   : > { %v2895_v4 = vpop.f32.mrf.mxu1  ;;  %v1710_v24 = vadd.f32 %v2871_v57, %v1539_v6 }
 0x156   : > { %v1689_v61 = vpop.f32.mrf.mxu0  ;;  %v1535_v63 = vadd.f32 %v2843_v27, %v1253_v5  ;;  %v1537_v21 = vadd.f32 %v1518_v36, %v1255_v8  ;;  %v1534_v27 = vadd.f32 %v3525_v33, %v1252_v14  ;;  %v1538_v35 = vadd.f32 %v1521_v41, %v1256_v22 }
 0x157   : > { %v1860_v56 = vpop.f32.mrf.mxu1  ;;  %v1881_v37 = vadd.f32 %v2895_v4, %v1710_v24  ;;  %v3526_v31 = vld [vmem:[#allocation3_spill] sm:$0xff] }
 0x158   : > { %v2872_v12 = vpop.f32.mrf.mxu0  ;;  %v1706_v19 = vadd.f32 %v2867_v40, %v1535_v63  ;;  %v1708_v32 = vadd.f32 %v1689_v61, %v1537_v21  ;;  %v1875_v36 = vadd.f32 %v3526_v31, %v1704_v26  ;;  %v1705_v38 = vadd.f32 %v1676_v49, %v1534_v27 }
 0x159   : > { %v2896_v20 = vpop.f32.mrf.mxu1  ;;  %v1711_v29 = vadd.f32 %v2872_v12, %v1540_v23  ;;  %v3527_v45 = vld [vmem:[#allocation4_spill] sm:$0xff] }
 0x15a   : > { %v1692_v17 = vpop.f32.mrf.mxu0  ;;  %v1877_v28 = vadd.f32 %v2891_v42, %v1706_v19  ;;  %v1879_v42 = vadd.f32 %v1860_v56, %v1708_v32  ;;  %v1878_v47 = vadd.f32 %v3527_v45, %v1707_v25 }
 0x15b   : > { %v1863_v34 = vpop.f32.mrf.mxu1  ;;  %v1709_v43 = vadd.f32 %v1692_v17, %v1538_v35  ;;  %v1882_v53 = vadd.f32 %v2896_v20, %v1711_v29  ;;  %v3528_v55 = vld [vmem:[#allocation5_spill] sm:$0xff] }
 0x15c   : > { %v1876_v57 = vadd.f32 %v3528_v55, %v1705_v38 }
 0x15d   : > { %v1880_v0 = vadd.f32 %v1863_v34, %v1709_v43 }
 0x16c   : > { %v2915_v30 = vpop.f32.mrf.mxu0 }
 0x16d   : > { %v2159_v39 = vadd.f32 %v2915_v30, %v1877_v28  ;;  %v2919_v40 = vpop.f32.mrf.mxu1 }
 0x16e   : > { %v2163_v41 = vadd.f32 %v2919_v40, %v1881_v37  ;;  %v2126_v44 = vpop.f32.mrf.mxu0 }
 0x16f   : > { %2167 = vst [vmem:[%s3486_s9 + $0x10] sm:$0xff] %v2159_v39  ;;  %v2157_v51 = vadd.f32 %v2126_v44, %v1875_v36  ;;  %v2142_v52 = vpop.f32.mrf.mxu1 }
 0x170   : > { %2171 = vst [vmem:[%s3486_s9 + $0x30] sm:$0xff] %v2163_v41  ;;  %v2161_v54 = vadd.f32 %v2142_v52, %v1879_v42  ;;  %v2916_v49 = vpop.f32.mrf.mxu0 }
 0x171   : > { %2165 = vst [vmem:[%s3486_s9] sm:$0xff] %v2157_v51  ;;  %v2160_v56 = vadd.f32 %v2916_v49, %v1878_v47  ;;  %v2920_v60 = vpop.f32.mrf.mxu1 }
 0x172   : > { %2169 = vst [vmem:[%s3486_s9 + $0x20] sm:$0xff] %v2161_v54  ;;  %v2164_v4 = vadd.f32 %v2920_v60, %v1882_v53  ;;  %v2129_v58 = vpop.f32.mrf.mxu0  ;;  %2176 = sbr.rel (%p2593_p4) target bundleno = 377 (0x179), region = 44 }
 0x173   : > { %2168 = vst [vmem:[%s3486_s9 + $0x18] sm:$0xff] %v2160_v56  ;;  %v2158_v62 = vadd.f32 %v2129_v58, %v1876_v57  ;;  %v2145_v7 = vpop.f32.mrf.mxu1 }
 0x174   : > { %2172 = vst [vmem:[%s3486_s9 + $0x38] sm:$0xff] %v2164_v4  ;;  %v2162_v46 = vadd.f32 %v2145_v7, %v1880_v0 }
 0x175   : > { %2166 = vst [vmem:[%s3486_s9 + $0x8] sm:$0xff] %v2158_v62 }
 0x176   : > { %2170 = vst [vmem:[%s3486_s9 + $0x28] sm:$0xff] %v2162_v46 }
 0x177   : > { %v3051_v2 = vmov 0.0  }
 0x178   : > { %2177 = vst [vmem:[%s3518_s6] sm:$0x3] %v3051_v2 }
 0x179 PF: > { %v2179_v5 = vadd.f32 %v2158_v62, %v2157_v51  ;;  %v2192_v16 = vmul.f32 %v2157_v51, %v2157_v51  ;;  %v2193_v48 = vmul.f32 %v2158_v62, %v2158_v62  ;;  %v2194_v1 = vmul.f32 %v2159_v39, %v2159_v39 }
 0x17a   : > { %v2195_v9 = vmul.f32 %v2160_v56, %v2160_v56  ;;  %v2196_v8 = vmul.f32 %v2161_v54, %v2161_v54  ;;  %v2197_v3 = vmul.f32 %v2162_v46, %v2162_v46  ;;  %v2198_v10 = vmul.f32 %v2163_v41, %v2163_v41 }
 0x17b   : > { %v2180_v61 = vadd.f32 %v2179_v5, %v2159_v39  ;;  %v2200_v50 = vadd.f32 %v2193_v48, %v2192_v16  ;;  %v2199_v14 = vmul.f32 %v2164_v4, %v2164_v4  ;;  %vm2213_vm3 = vcmask 1040384  }
 0x17d   : > { %v2181_v59 = vadd.f32 %v2180_v61, %v2160_v56  ;;  %v2201_v18 = vadd.f32 %v2200_v50, %v2194_v1 }
 0x17f   : > { %v2182_v63 = vadd.f32 %v2181_v59, %v2161_v54  ;;  %v2202_v11 = vadd.f32 %v2201_v18, %v2195_v9  ;;  %v2178_v35 = vld [vmem:[%s3518_s6] sm:$0x3] }
 0x181   : > { %v2183_v6 = vadd.f32 %v2182_v63, %v2162_v46  ;;  %v2203_v12 = vadd.f32 %v2202_v11, %v2196_v8 }
 0x183   : > { %v2184_v13 = vadd.f32 %v2183_v6, %v2163_v41  ;;  %v2204_v19 = vadd.f32 %v2203_v12, %v2197_v3 }
 0x185   : > { %v2185_v20 = vadd.f32 %v2184_v13, %v2164_v4  ;;  %v2205_v21 = vadd.f32 %v2204_v19, %v2198_v10 }
 0x187   : > { %v2186_v22 = vrot.slane %v2185_v20, 4  ;;  %v2206_v24 = vadd.f32 %v2205_v21, %v2199_v14 }
 0x189   : > { %v2187_v15 = vadd.f32 %v2186_v22, %v2185_v20  ;;  %v2207_v26 = vrot.slane %v2206_v24, 4 }
 0x18b   : > { %v2188_v23 = vrot.slane %v2187_v15, 2  ;;  %v2208_v32 = vadd.f32 %v2207_v26, %v2206_v24 }
 0x18d   : > { %v2189_v17 = vadd.f32 %v2188_v23, %v2187_v15  ;;  %v2209_v33 = vrot.slane %v2208_v32, 2 }
 0x18f   : > { %v2190_v27 = vrot.slane %v2189_v17, 1  ;;  %v2210_v28 = vadd.f32 %v2209_v33, %v2208_v32 }
 0x191   : > { %v2191_v25 = vadd.f32 %v2190_v27, %v2189_v17  ;;  %v2211_v34 = vrot.slane %v2210_v28, 1 }
 0x193   : > { %v2212_v37 = vadd.f32 %v2211_v34, %v2210_v28 }
 0x195   : > { %v2214_v29 = vsel %vm2213_vm3, %v2191_v25, %v2212_v37 }
 0x196   : > { %v2215_v30 = vadd.f32 %v2214_v29, %v2178_v35 }
 0x198   : > { %2216 = vst [vmem:[%s3518_s6] sm:$0x3] %v2215_v30 }
 0x199 PF: > { %s17_s21 = sadd.s32 1, %s3049_s21  }
 0x19a   : > { %p14_p5 = scmp.ge.s32.totalorder %s17_s21, 4  }
 0x19c   :  { %16 = sbr.rel (!%p14_p5) target bundleno = 1 (0x1), region = 101 }

// kernel: bottleneck_forward.13
= control target key start
LH: loop header
LB: loop body
LE: loop exit
PB: predicated region body
PF: predicated region fallthrough
CT: control target
= control target key end

     0   :  { %v132_v7 = vmov 1966171168   ;;  %v32_v9 = vlaneseq  ;;  %s263_s1 = inlined_call_operand.vmem [shape: f32[2,128], index: 1, kind: input, shape index: {}]   ;;  %s264_s2 = inlined_call_operand.vmem [shape: f32[1,128], index: 2, kind: input, shape index: {}]   ;;  %s265_s0 = inlined_call_operand.vmem [shape: f32[128,128], index: 0, kind: input, shape index: {}]   ;;  %s266_s3 = inlined_call_operand.vmem [shape: f32[1,128], index: 3, kind: input, shape index: {}]   ;;  %s267_s4 = inlined_call_operand.vmem [shape: f32[128,128], index: 4, kind: output, shape index: {}]  }
   0x1   :  { %v17_v0 = vld [vmem:[%s263_s1] sm:$0x3]  ;;  %v30_v8 = vunpack.c.l.s4 %v132_v7  ;;  %v50_v22 = vld [vmem:[%s265_s0 + $0x8] sm:$0xff]  ;;  %v51_v23 = vld [vmem:[%s265_s0 + $0x10] sm:$0xff] }
   0x2   :  { %v18_v1 = vmul.f32 0.0078125, %v17_v0  ;;  %v33_v11 = vshrl.u32 %v32_v9, 7  ;;  %v25_v16 = vld [vmem:[%s264_s2] sm:$0x1]  ;;  %v52_v24 = vld [vmem:[%s265_s0 + $0x18] sm:$0xff]  ;;  %v54_v28 = vld [vmem:[%s265_s0 + $0x28] sm:$0xff] }
   0x3   :  { %v31_v10 = vunpack.c.0.s8 %v30_v8  ;;  %v46_v20 = vld [vmem:[%s266_s3] sm:$0x1]  ;;  %v55_v29 = vld [vmem:[%s265_s0 + $0x30] sm:$0xff]  ;;  %v56_v30 = vld [vmem:[%s265_s0 + $0x38] sm:$0xff] }
   0x4   :  { %v19_v2 = vmul.f32 %v18_v1, %v18_v1  ;;  %v68_v18 = vsub.s32 0, %v33_v11  ;;  %v49_v21 = vld [vmem:[%s265_s0] sm:$0xff]  ;;  %v58_v32 = vld [vmem:[%s265_s0 + $0x48] sm:$0xff]  ;;  %v59_v33 = vld [vmem:[%s265_s0 + $0x50] sm:$0xff] }
   0x5   :  { %v34_v12 = vsub.s32 %v31_v10, %v33_v11  ;;  %v53_v25 = vld [vmem:[%s265_s0 + $0x20] sm:$0xff]  ;;  %v60_v38 = vld [vmem:[%s265_s0 + $0x58] sm:$0xff]  ;;  %v62_v40 = vld [vmem:[%s265_s0 + $0x68] sm:$0xff] }
   0x6   :  { %v21_v3 = vrot.slane %v19_v2, 7  ;;  %v57_v31 = vld [vmem:[%s265_s0 + $0x40] sm:$0xff]  ;;  %v63_v57 = vld [vmem:[%s265_s0 + $0x70] sm:$0xff]  ;;  %v64_v58 = vld [vmem:[%s265_s0 + $0x78] sm:$0xff] }
   0x7   :  { %v61_v39 = vld [vmem:[%s265_s0 + $0x60] sm:$0xff] }
   0x8   :  { %v23_v4 = vsub.f32 %v18_v1, %v21_v3 }
   0xa   :  { %v24_v5 = vmax.f32 %v23_v4, 0.0 }
   0xc   :  { %v26_v6 = vadd.f32 1e-05, %v24_v5 }
   0xe   :  { %130 = vrsqrt.f32 %v26_v6 }
  0x1b   :  { %v131_v13 = vpop.eup %130 }
  0x1c   :  { %v35_v14 = vrot.slane %v131_v13, %v34_v12 }
  0x1e   :  { %v36_v15 = vcombine.high %v35_v14, %v35_v14 }
  0x20   :  { %v43_v17 = vrot.slane %v36_v15, %v34_v12 }
  0x22   :  { %v45_v19 = vmul.f32 %v43_v17, %v25_v16 }
  0x24   :  { %v47_v26 = vmul.f32 %v45_v19, %v18_v1  ;;  %v69_v27 = vrot.slane %v45_v19, %v68_v18 }
  0x26   :  { %v48_v34 = vsub.f32 %v46_v20, %v47_v26  ;;  %v71_v35 = vmul.f32 %v69_v27, %v49_v21  ;;  %v72_v36 = vmul.f32 %v69_v27, %v50_v22  ;;  %v73_v37 = vmul.f32 %v69_v27, %v51_v23 }
  0x27   :  { %v74_v41 = vmul.f32 %v69_v27, %v52_v24  ;;  %v75_v42 = vmul.f32 %v69_v27, %v53_v25  ;;  %v76_v43 = vmul.f32 %v69_v27, %v54_v28  ;;  %v77_v44 = vmul.f32 %v69_v27, %v55_v29 }
  0x28   :  { %v91_v45 = vrot.slane %v48_v34, %v68_v18  ;;  %v78_v46 = vmul.f32 %v69_v27, %v56_v30  ;;  %v79_v47 = vmul.f32 %v69_v27, %v57_v31  ;;  %v80_v48 = vmul.f32 %v69_v27, %v58_v32 }
  0x29   :  { %v81_v49 = vmul.f32 %v69_v27, %v59_v33  ;;  %v82_v50 = vmul.f32 %v69_v27, %v60_v38  ;;  %v83_v51 = vmul.f32 %v69_v27, %v61_v39  ;;  %v84_v52 = vmul.f32 %v69_v27, %v62_v40 }
  0x2a   :  { %v93_v53 = vadd.f32 %v91_v45, %v71_v35  ;;  %v94_v54 = vadd.f32 %v91_v45, %v72_v36  ;;  %v95_v55 = vadd.f32 %v91_v45, %v73_v37  ;;  %v96_v56 = vadd.f32 %v91_v45, %v74_v41 }
  0x2b   :  { %v97_v59 = vadd.f32 %v91_v45, %v75_v42  ;;  %v98_v60 = vadd.f32 %v91_v45, %v76_v43  ;;  %v99_v61 = vadd.f32 %v91_v45, %v77_v44  ;;  %v100_v62 = vadd.f32 %v91_v45, %v78_v46 }
  0x2c   :  { %109 = vst [vmem:[%s267_s4] sm:$0xff] %v93_v53  ;;  %110 = vst [vmem:[%s267_s4 + $0x8] sm:$0xff] %v94_v54  ;;  %v101_v63 = vadd.f32 %v91_v45, %v79_v47  ;;  %v102_v0 = vadd.f32 %v91_v45, %v80_v48  ;;  %v103_v1 = vadd.f32 %v91_v45, %v81_v49 }
  0x2d   :  { %111 = vst [vmem:[%s267_s4 + $0x10] sm:$0xff] %v95_v55  ;;  %112 = vst [vmem:[%s267_s4 + $0x18] sm:$0xff] %v96_v56  ;;  %v104_v2 = vadd.f32 %v91_v45, %v82_v50  ;;  %v105_v3 = vadd.f32 %v91_v45, %v83_v51  ;;  %v106_v4 = vadd.f32 %v91_v45, %v84_v52 }
  0x2e   :  { %113 = vst [vmem:[%s267_s4 + $0x20] sm:$0xff] %v97_v59  ;;  %114 = vst [vmem:[%s267_s4 + $0x28] sm:$0xff] %v98_v60  ;;  %v85_v5 = vmul.f32 %v69_v27, %v63_v57  ;;  %v86_v6 = vmul.f32 %v69_v27, %v64_v58 }
  0x2f   :  { %115 = vst [vmem:[%s267_s4 + $0x30] sm:$0xff] %v99_v61  ;;  %116 = vst [vmem:[%s267_s4 + $0x38] sm:$0xff] %v100_v62 }
  0x30   :  { %117 = vst [vmem:[%s267_s4 + $0x40] sm:$0xff] %v101_v63  ;;  %118 = vst [vmem:[%s267_s4 + $0x48] sm:$0xff] %v102_v0  ;;  %v107_v7 = vadd.f32 %v91_v45, %v85_v5  ;;  %v108_v8 = vadd.f32 %v91_v45, %v86_v6 }
  0x31   :  { %119 = vst [vmem:[%s267_s4 + $0x50] sm:$0xff] %v103_v1  ;;  %120 = vst [vmem:[%s267_s4 + $0x58] sm:$0xff] %v104_v2 }
  0x32   :  { %121 = vst [vmem:[%s267_s4 + $0x60] sm:$0xff] %v105_v3  ;;  %122 = vst [vmem:[%s267_s4 + $0x68] sm:$0xff] %v106_v4 }
  0x33   :  { %123 = vst [vmem:[%s267_s4 + $0x70] sm:$0xff] %v107_v7  ;;  %124 = vst [vmem:[%s267_s4 + $0x78] sm:$0xff] %v108_v8 }

// kernel: bottleneck_forward.15
= control target key start
LH: loop header
LB: loop body
LE: loop exit
PB: predicated region body
PF: predicated region fallthrough
CT: control target
= control target key end

     0   :  { %v183_v7 = vmov 1966171168   ;;  %v35_v9 = vlaneseq  ;;  %s403_s1 = inlined_call_operand.vmem [shape: f32[2,128], index: 1, kind: input, shape index: {}]   ;;  %s404_s2 = inlined_call_operand.vmem [shape: f32[1,128], index: 2, kind: input, shape index: {}]   ;;  %s405_s0 = inlined_call_operand.vmem [shape: f32[128,128], index: 0, kind: input, shape index: {}]   ;;  %s406_s3 = inlined_call_operand.vmem [shape: f32[1,128], index: 3, kind: input, shape index: {}]   ;;  %s407_s4 = inlined_call_operand.vmem [shape: f32[128,128], index: 4, kind: input, shape index: {}]   ;;  %s408_s5 = inlined_call_operand.vmem [shape: f32[128,128], index: 5, kind: output, shape index: {}]  }
   0x1   :  { %v20_v0 = vld [vmem:[%s403_s1] sm:$0x3]  ;;  %v33_v8 = vunpack.c.l.s4 %v183_v7  ;;  %v53_v22 = vld [vmem:[%s405_s0 + $0x8] sm:$0xff]  ;;  %v54_v23 = vld [vmem:[%s405_s0 + $0x10] sm:$0xff] }
   0x2   :  { %v21_v1 = vmul.f32 0.0078125, %v20_v0  ;;  %v36_v11 = vshrl.u32 %v35_v9, 7  ;;  %v28_v16 = vld [vmem:[%s404_s2] sm:$0x1]  ;;  %v55_v24 = vld [vmem:[%s405_s0 + $0x18] sm:$0xff]  ;;  %v57_v28 = vld [vmem:[%s405_s0 + $0x28] sm:$0xff] }
   0x3   :  { %v34_v10 = vunpack.c.0.s8 %v33_v8  ;;  %v49_v20 = vld [vmem:[%s406_s3] sm:$0x1]  ;;  %v58_v29 = vld [vmem:[%s405_s0 + $0x30] sm:$0xff]  ;;  %v59_v30 = vld [vmem:[%s405_s0 + $0x38] sm:$0xff] }
   0x4   :  { %v22_v2 = vmul.f32 %v21_v1, %v21_v1  ;;  %v71_v18 = vsub.s32 0, %v36_v11  ;;  %v52_v21 = vld [vmem:[%s405_s0] sm:$0xff]  ;;  %v61_v32 = vld [vmem:[%s405_s0 + $0x48] sm:$0xff]  ;;  %v62_v33 = vld [vmem:[%s405_s0 + $0x50] sm:$0xff] }
   0x5   :  { %v37_v12 = vsub.s32 %v34_v10, %v36_v11  ;;  %v56_v25 = vld [vmem:[%s405_s0 + $0x20] sm:$0xff]  ;;  %v63_v38 = vld [vmem:[%s405_s0 + $0x58] sm:$0xff]  ;;  %v65_v40 = vld [vmem:[%s405_s0 + $0x68] sm:$0xff] }
   0x6   :  { %v24_v3 = vrot.slane %v22_v2, 7  ;;  %v60_v31 = vld [vmem:[%s405_s0 + $0x40] sm:$0xff]  ;;  %v113_v47 = vld [vmem:[%s407_s4 + $0x8] sm:$0xff]  ;;  %v114_v51 = vld [vmem:[%s407_s4 + $0x10] sm:$0xff] }
   0x7   :  { %v64_v39 = vld [vmem:[%s405_s0 + $0x60] sm:$0xff]  ;;  %v115_v52 = vld [vmem:[%s407_s4 + $0x18] sm:$0xff]  ;;  %v117_v62 = vld [vmem:[%s407_s4 + $0x28] sm:$0xff] }
   0x8   :  { %v26_v4 = vsub.f32 %v21_v1, %v24_v3  ;;  %v112_v46 = vld [vmem:[%s407_s4] sm:$0xff]  ;;  %v118_v63 = vld [vmem:[%s407_s4 + $0x30] sm:$0xff]  ;;  %v119_v0 = vld [vmem:[%s407_s4 + $0x38] sm:$0xff] }
   0x9   :  { %v116_v53 = vld [vmem:[%s407_s4 + $0x20] sm:$0xff] }
   0xa   :  { %v27_v5 = vmax.f32 %v26_v4, 0.0 }
   0xc   :  { %v29_v6 = vadd.f32 1e-05, %v27_v5 }
   0xe   :  { %181 = vrsqrt.f32 %v29_v6 }
  0x1b   :  { %v182_v13 = vpop.eup %181 }
  0x1c   :  { %v38_v14 = vrot.slane %v182_v13, %v37_v12  ;;  %v120_v13 = vld [vmem:[%s407_s4 + $0x40] sm:$0xff] }
  0x1e   :  { %v39_v15 = vcombine.high %v38_v14, %v38_v14  ;;  %v121_v14 = vld [vmem:[%s407_s4 + $0x48] sm:$0xff] }
  0x20   :  { %v46_v17 = vrot.slane %v39_v15, %v37_v12 }
  0x22   :  { %v48_v19 = vmul.f32 %v46_v17, %v28_v16 }
  0x24   :  { %v50_v26 = vmul.f32 %v48_v19, %v21_v1  ;;  %v238_v27 = vrot.slane %v48_v19, %v71_v18  ;;  %v66_v19 = vld [vmem:[%s405_s0 + $0x70] sm:$0xff] }
  0x26   :  { %v51_v34 = vsub.f32 %v49_v20, %v50_v26  ;;  %v74_v35 = vmul.f32 %v238_v27, %v52_v21  ;;  %v75_v36 = vmul.f32 %v238_v27, %v53_v22  ;;  %v76_v37 = vmul.f32 %v238_v27, %v54_v23  ;;  %v67_v20 = vld [vmem:[%s405_s0 + $0x78] sm:$0xff] }
  0x27   :  { %v77_v41 = vmul.f32 %v238_v27, %v55_v24  ;;  %v78_v42 = vmul.f32 %v238_v27, %v56_v25  ;;  %v79_v43 = vmul.f32 %v238_v27, %v57_v28  ;;  %v80_v44 = vmul.f32 %v238_v27, %v58_v29  ;;  %v122_v25 = vld [vmem:[%s407_s4 + $0x50] sm:$0xff]  ;;  %v123_v26 = vld [vmem:[%s407_s4 + $0x58] sm:$0xff] }
  0x28   :  { %v274_v45 = vrot.slane %v51_v34, %v71_v18  ;;  %v81_v48 = vmul.f32 %v238_v27, %v59_v30  ;;  %v82_v49 = vmul.f32 %v238_v27, %v60_v31  ;;  %v83_v50 = vmul.f32 %v238_v27, %v61_v32  ;;  %v124_v32 = vld [vmem:[%s407_s4 + $0x60] sm:$0xff] }
  0x29   :  { %v84_v54 = vmul.f32 %v238_v27, %v62_v33  ;;  %v85_v55 = vmul.f32 %v238_v27, %v63_v38  ;;  %v86_v56 = vmul.f32 %v238_v27, %v64_v39  ;;  %v87_v57 = vmul.f32 %v238_v27, %v65_v40  ;;  %v125_v33 = vld [vmem:[%s407_s4 + $0x68] sm:$0xff] }
  0x2a   :  { %v96_v58 = vadd.f32 %v274_v45, %v74_v35  ;;  %v97_v59 = vadd.f32 %v274_v45, %v75_v36  ;;  %v98_v60 = vadd.f32 %v274_v45, %v76_v37  ;;  %v99_v61 = vadd.f32 %v274_v45, %v77_v41 }
  0x2b   :  { %v100_v1 = vadd.f32 %v274_v45, %v78_v42  ;;  %v101_v2 = vadd.f32 %v274_v45, %v79_v43  ;;  %v102_v3 = vadd.f32 %v274_v45, %v80_v44  ;;  %v103_v4 = vadd.f32 %v274_v45, %v81_v48  ;;  %v126_v42 = vld [vmem:[%s407_s4 + $0x70] sm:$0xff]  ;;  %v127_v43 = vld [vmem:[%s407_s4 + $0x78] sm:$0xff] }
  0x2c   :  { %v128_v5 = vadd.f32 %v112_v46, %v96_v58  ;;  %v129_v6 = vadd.f32 %v113_v47, %v97_v59  ;;  %v130_v7 = vadd.f32 %v114_v51, %v98_v60  ;;  %v131_v8 = vadd.f32 %v115_v52, %v99_v61 }
  0x2d   :  { %v132_v9 = vadd.f32 %v116_v53, %v100_v1  ;;  %v133_v10 = vadd.f32 %v117_v62, %v101_v2  ;;  %v134_v11 = vadd.f32 %v118_v63, %v102_v3  ;;  %v135_v12 = vadd.f32 %v119_v0, %v103_v4 }
  0x2e   :  { %v144_v15 = vmax.f32 %v128_v5, 0.0  ;;  %v145_v16 = vmax.f32 %v129_v6, 0.0  ;;  %v146_v17 = vmax.f32 %v130_v7, 0.0  ;;  %v147_v18 = vmax.f32 %v131_v8, 0.0 }
  0x2f   :  { %v148_v21 = vmax.f32 %v132_v9, 0.0  ;;  %v149_v22 = vmax.f32 %v133_v10, 0.0  ;;  %v150_v23 = vmax.f32 %v134_v11, 0.0  ;;  %v151_v24 = vmax.f32 %v135_v12, 0.0 }
  0x30   :  { %160 = vst [vmem:[%s408_s5] sm:$0xff] %v144_v15  ;;  %161 = vst [vmem:[%s408_s5 + $0x8] sm:$0xff] %v145_v16  ;;  %v104_v28 = vadd.f32 %v274_v45, %v82_v49  ;;  %v105_v29 = vadd.f32 %v274_v45, %v83_v50  ;;  %v106_v30 = vadd.f32 %v274_v45, %v84_v54 }
  0x31   :  { %162 = vst [vmem:[%s408_s5 + $0x10] sm:$0xff] %v146_v17  ;;  %163 = vst [vmem:[%s408_s5 + $0x18] sm:$0xff] %v147_v18  ;;  %v107_v31 = vadd.f32 %v274_v45, %v85_v55  ;;  %v108_v34 = vadd.f32 %v274_v45, %v86_v56  ;;  %v109_v35 = vadd.f32 %v274_v45, %v87_v57 }
  0x32   :  { %164 = vst [vmem:[%s408_s5 + $0x20] sm:$0xff] %v148_v21  ;;  %165 = vst [vmem:[%s408_s5 + $0x28] sm:$0xff] %v149_v22  ;;  %v88_v36 = vmul.f32 %v238_v27, %v66_v19  ;;  %v89_v37 = vmul.f32 %v238_v27, %v67_v20  ;;  %v136_v38 = vadd.f32 %v120_v13, %v104_v28 }
  0x33   :  { %166 = vst [vmem:[%s408_s5 + $0x30] sm:$0xff] %v150_v23  ;;  %167 = vst [vmem:[%s408_s5 + $0x38] sm:$0xff] %v151_v24  ;;  %v137_v39 = vadd.f32 %v121_v14, %v105_v29  ;;  %v138_v40 = vadd.f32 %v122_v25, %v106_v30  ;;  %v139_v41 = vadd.f32 %v123_v26, %v107_v31 }
  0x34   :  { %v140_v44 = vadd.f32 %v124_v32, %v108_v34  ;;  %v141_v46 = vadd.f32 %v125_v33, %v109_v35  ;;  %v110_v47 = vadd.f32 %v274_v45, %v88_v36  ;;  %v111_v48 = vadd.f32 %v274_v45, %v89_v37 }
  0x35   :  { %v152_v49 = vmax.f32 %v136_v38, 0.0  ;;  %v153_v27 = vmax.f32 %v137_v39, 0.0  ;;  %v154_v50 = vmax.f32 %v138_v40, 0.0  ;;  %v155_v51 = vmax.f32 %v139_v41, 0.0 }
  0x36   :  { %v156_v52 = vmax.f32 %v140_v44, 0.0  ;;  %v157_v53 = vmax.f32 %v141_v46, 0.0  ;;  %v142_v54 = vadd.f32 %v126_v42, %v110_v47  ;;  %v143_v55 = vadd.f32 %v127_v43, %v111_v48 }
  0x37   :  { %168 = vst [vmem:[%s408_s5 + $0x40] sm:$0xff] %v152_v49  ;;  %169 = vst [vmem:[%s408_s5 + $0x48] sm:$0xff] %v153_v27 }
  0x38   :  { %170 = vst [vmem:[%s408_s5 + $0x50] sm:$0xff] %v154_v50  ;;  %171 = vst [vmem:[%s408_s5 + $0x58] sm:$0xff] %v155_v51  ;;  %v158_v45 = vmax.f32 %v142_v54, 0.0  ;;  %v159_v56 = vmax.f32 %v143_v55, 0.0 }
  0x39   :  { %172 = vst [vmem:[%s408_s5 + $0x60] sm:$0xff] %v156_v52  ;;  %173 = vst [vmem:[%s408_s5 + $0x68] sm:$0xff] %v157_v53 }
  0x3a   :  { %174 = vst [vmem:[%s408_s5 + $0x70] sm:$0xff] %v158_v45  ;;  %175 = vst [vmem:[%s408_s5 + $0x78] sm:$0xff] %v159_v56 }

</bundles_post_ra>
